<compile_context>
chip_gen: v7x
topology: tpu7x:2x2x1
jax: 0.10.0
libtpu: 0.0.40
codegen_flags: <defaults>
</compile_context>

<pallas_src>
import math

import jax
import jax.numpy as jnp
from jax.experimental import pallas as pl
from jax.experimental.pallas import tpu as pltpu

LANE = 128        # lane width: every feature-like dim is padded to this
GRAPH_PAD = 16    # graph-row padding (multiple of bf16 sublane packing)


def _rpad(n, m):
    return ((n + m - 1) // m) * m


def _pad2(a, rows, cols):
    a = jnp.asarray(a, jnp.float32)
    out = jnp.zeros((rows, cols), jnp.float32)
    return out.at[:a.shape[0], :a.shape[1]].set(a)


# ----------------------------------------------------------------------------
# single fused kernel: GIN stack -> GT stack -> pooling -> readout MLP
# ----------------------------------------------------------------------------
def make_fused_kernel(num_gin, num_gt, n_p, e_p, b_p, d):
    f32 = jnp.float32
    bf16 = jnp.bfloat16

    def kernel(struct_ref, mdst_ref, bsum_ref, x_ref, ea_ref,
               gin_w_ref, gin_b_ref, gt_wqkvs_ref, gt_bqkvs_ref,
               gt_we_ref, gt_wbeta_ref, ro_w_ref, ro_b_ref, out_ref):
        # structural operands: exact 0/1 (and small int) matrices in bf16,
        # fed straight to the bf16 MXU (no f32 upcast copies).
        adj = struct_ref[0:n_p, :]                                 # [N, N] A + I
        s_src = struct_ref[n_p:n_p + e_p, :]                       # [E, N]
        s_dst = struct_ref[n_p + e_p:n_p + 2 * e_p, :]             # [E, N]
        p_add = struct_ref[n_p + 2 * e_p:n_p + 2 * e_p + b_p, :]   # [B, N]
        m_dst = mdst_ref[...]                                      # [N, E]
        bsum = bsum_ref[...]                                       # [D, D]
        ea = ea_ref[...]                                           # [E, D] bf16

        # ------------------------------ GIN stack ----------------------------
        h = x_ref[...]                                             # bf16 [N, D]
        for l in range(num_gin):
            w1 = gin_w_ref[2 * l]                                  # bf16 [D, D]
            w2 = gin_w_ref[2 * l + 1]
            b1 = gin_b_ref[2 * l:2 * l + 1, :]                     # f32 [1, D]
            b2 = gin_b_ref[2 * l + 1:2 * l + 2, :]
            # GIN (eps = 0): nn((1+eps) x_i + sum_j x_j) via (A + I) @ h
            agg = jnp.dot(adj, h, preferred_element_type=f32)
            t = jnp.maximum(
                jnp.dot(agg.astype(bf16), w1, preferred_element_type=f32) + b1,
                0.0)
            h = (jnp.dot(t.astype(bf16), w2, preferred_element_type=f32)
                 + b2).astype(bf16)
        gin_embed = h                                              # bf16 [N, D]

        # ------------------------ TransformerConv stack ----------------------
        g = gin_embed
        for l in range(num_gt):
            wqkvs = gt_wqkvs_ref[l]                                # bf16 [D, 4D]
            bqkvs = gt_bqkvs_ref[l:l + 1, :]                       # f32 [1, 4D]
            we = gt_we_ref[l]                                      # bf16 [D, D]
            wbeta = gt_wbeta_ref[l]                                # f32 [2, D]
            wbx = wbeta[0:1, :]                                    # multiplies x_r
            wbm = wbeta[1:2, :]                                    # multiplies msg

            # fused Q|K|V|skip projection; 1/sqrt(C) is folded into the Q columns
            qkvs = jnp.dot(g, wqkvs, preferred_element_type=f32) + bqkvs
            q = qkvs[:, 0:d]
            kv = qkvs[:, d:3 * d]
            x_r = qkvs[:, 3 * d:4 * d]

            e = jnp.dot(ea, we, preferred_element_type=f32)        # lin_edge
            q_e = jnp.dot(s_dst, q.astype(bf16),
                          preferred_element_type=f32)              # [E, D]
            kv_e = jnp.dot(s_src, kv.astype(bf16),
                           preferred_element_type=f32)             # [E, 2D]
            k_e = kv_e[:, 0:d] + e
            v_e = kv_e[:, d:2 * d] + e

            # per-head logits replicated over channels: one lane-dense block-sum
            # matmul (no narrow [E, heads] MXU outputs).
            scores = jnp.dot((q_e * k_e).astype(bf16), bsum,
                             preferred_element_type=f32)
            # TODO(synk): single global shift instead of PyG's per-destination
            # shift; exact up to exp underflow for strongly negative logits.
            expa = jnp.exp(scores - jnp.max(scores))
            # node-level softmax normalization: numerator + denominator in ONE
            # 256-lane aggregation matmul, no per-edge attn tensor.
            agg_in = jnp.concatenate([expa * v_e, expa], axis=-1).astype(bf16)
            agg2 = jnp.dot(m_dst, agg_in, preferred_element_type=f32)  # [N, 2D]
            msg = agg2[:, 0:d] * pl.reciprocal(
                jnp.maximum(agg2[:, d:2 * d], 1e-20), approx=True)
            # TODO(synk): attention dropout omitted -- inference semantics.

            # beta gate, PyG order cat([x_r, msg, x_r - msg]) folded into two
            # VPU multiplies + one lane reduce; sigmoid on the EUP.
            blogit = jnp.sum(x_r * wbx + msg * wbm, axis=-1, keepdims=True)
            beta = pl.reciprocal(1.0 + jnp.exp(-blogit), approx=True)
            g = (beta * x_r + (1.0 - beta) * msg).astype(bf16)
        gt_embed = g                                               # bf16 [N, D]

        # --------------------------- pooling + readout -----------------------
        # both pools in ONE [B, 2D] matmul; exact mean via in-kernel counts.
        emb_cat = jnp.concatenate([gin_embed, gt_embed], axis=-1)  # bf16 [N, 2D]
        pools = jnp.dot(p_add, emb_cat, preferred_element_type=f32)
        counts = jnp.sum(p_add.astype(f32), axis=-1, keepdims=True)
        inv_cnt = 1.0 / jnp.maximum(counts, 1.0)
        pool_cat = jnp.concatenate(
            [pools[:, 0:d], pools[:, d:2 * d] * inv_cnt], axis=-1).astype(bf16)

        rw1 = ro_w_ref[0:2 * d, :]                                 # bf16 [2D, D]
        rw2 = ro_w_ref[2 * d:3 * d, :]                             # bf16 [D, D]
        rb1 = ro_b_ref[0:1, :]                                     # f32 [1, D]
        rb2 = ro_b_ref[1:2, :]
        hr = jnp.maximum(
            jnp.dot(pool_cat, rw1, preferred_element_type=f32) + rb1, 0.0)
        out_ref[...] = (jnp.dot(hr.astype(bf16), rw2,
                                preferred_element_type=f32) + rb2)
    return kernel


# ----------------------------------------------------------------------------
# dense structural matrices from edge_index / batch (stacked, bf16)
# ----------------------------------------------------------------------------
def build_structs(edge_index, batch, n_real, n_pad, e_pad, b_pad):
    src, dst = edge_index[0], edge_index[1]
    e_real = src.shape[0]
    e_ids = jnp.arange(e_real)
    s_src = jnp.zeros((e_pad, n_pad), jnp.float32).at[e_ids, src].set(1.0)
    s_dst = jnp.zeros((e_pad, n_pad), jnp.float32).at[e_ids, dst].set(1.0)
    adj_pi = (jnp.zeros((n_pad, n_pad), jnp.float32).at[dst, src].add(1.0)
              + jnp.eye(n_pad, dtype=jnp.float32))          # adjacency + I (eps=0)
    p_add = jnp.zeros((b_pad, n_pad), jnp.float32).at[
        batch, jnp.arange(n_real)].set(1.0)
    # 0/1 and small-integer structure matrices are exact in bf16.
    struct_n = jnp.concatenate([adj_pi, s_src, s_dst, p_add],
                               axis=0).astype(jnp.bfloat16)  # [N+2E+B, N]
    m_dst = s_dst.T.astype(jnp.bfloat16)                     # [N, E] dst scatter
    return struct_n, m_dst


# ----------------------------------------------------------------------------
# deterministic parameter init (synthetic; PyTorch-Linear-like uniform init)
# ----------------------------------------------------------------------------
def init_linear(key, fan_in, fan_out, bias=True):
    kw, kb = jax.random.split(key)
    bound = 1.0 / math.sqrt(fan_in)
    w = jax.random.uniform(kw, (fan_in, fan_out), jnp.float32, -bound, bound)
    b = (jax.random.uniform(kb, (1, fan_out), jnp.float32, -bound, bound)
         if bias else None)
    return w, b


def init_params(key, hidden, n_gin, n_gt, num_features, num_targets, edge_dim, heads):
    C, HC = hidden, heads * hidden
    keys = iter(jax.random.split(key, 2 * n_gin + 6 * n_gt + 2))

    gin = []
    in_dim = num_features
    for _ in range(n_gin):
        w1, b1 = init_linear(next(keys), in_dim, C)
        w2, b2 = init_linear(next(keys), C, C)
        gin.append((w1, b1, w2, b2))
        in_dim = C

    gt = []
    in_dim = C
    for _ in range(n_gt):
        wq, bq = init_linear(next(keys), in_dim, HC)
        wk, bk = init_linear(next(keys), in_dim, HC)
        wv, bv = init_linear(next(keys), in_dim, HC)
        we, _ = init_linear(next(keys), edge_dim, HC, bias=False)
        wskip, bskip = init_linear(next(keys), in_dim, HC)
        wbeta, _ = init_linear(next(keys), 3 * HC, 1, bias=False)
        gt.append(dict(wq=wq, bq=bq, wk=wk, bk=bk, wv=wv, bv=bv, we=we,
                       wskip=wskip, bskip=bskip, wbeta=wbeta))
        in_dim = HC

    w1, b1 = init_linear(next(keys), C + HC, C)
    w2, b2 = init_linear(next(keys), C, num_targets)
    return dict(gin=gin, gt=gt, readout=dict(w1=w1, b1=b1, w2=w2, b2=b2))


# ----------------------------------------------------------------------------
# pack + pad parameters into a handful of stacked tensors
# (weights bf16 for the MXU; biases / gate vectors stay f32, they are tiny and
#  are added/multiplied on the VPU where v5e has no bf16)
# ----------------------------------------------------------------------------
def prepare_packed_params(params, C, HC, D):
    bf16 = jnp.bfloat16
    scale = 1.0 / math.sqrt(C)          # fold 1/sqrt(out_channels) into wq / bq

    gin_w_list, gin_b_list = [], []
    for (w1, b1, w2, b2) in params["gin"]:
        gin_w_list += [_pad2(w1, D, D), _pad2(w2, D, D)]
        gin_b_list += [_pad2(b1, 1, D)[0], _pad2(b2, 1, D)[0]]
    gin_w = jnp.stack(gin_w_list).astype(bf16)            # [2*n_gin, D, D]
    gin_b = jnp.stack(gin_b_list)                          # [2*n_gin, D] f32

    qkvs_l, bqkvs_l, we_l, wbeta_l = [], [], [], []
    for lp in params["gt"]:
        qkvs_l.append(jnp.concatenate([
            _pad2(lp["wq"] * scale, D, D), _pad2(lp["wk"], D, D),
            _pad2(lp["wv"], D, D), _pad2(lp["wskip"], D, D)], axis=1))
        bqkvs_l.append(jnp.concatenate([
            _pad2(lp["bq"] * scale, 1, D), _pad2(lp["bk"], 1, D),
            _pad2(lp["bv"], 1, D), _pad2(lp["bskip"], 1, D)], axis=1)[0])
        we_l.append(_pad2(lp["we"], D, D))
        # PyG lin_beta input order is cat([x_r, out, x_r - out]):
        #   logit = x_r . (wb1 + wb3) + msg . (wb2 - wb3)
        wbeta = lp["wbeta"][:, 0]
        wb1, wb2, wb3 = wbeta[:HC], wbeta[HC:2 * HC], wbeta[2 * HC:]
        wbx = _pad2((wb1 + wb3)[None, :], 1, D)[0]         # multiplies x_r
        wbm = _pad2((wb2 - wb3)[None, :], 1, D)[0]         # multiplies msg
        wbeta_l.append(jnp.stack([wbx, wbm]))
    gt_wqkvs = jnp.stack(qkvs_l).astype(bf16)              # [n_gt, D, 4D]
    gt_bqkvs = jnp.stack(bqkvs_l)                           # [n_gt, 4D] f32
    gt_we = jnp.stack(we_l).astype(bf16)                    # [n_gt, D, D]
    gt_wbeta = jnp.stack(wbeta_l)                           # [n_gt, 2, D] f32

    rp = params["readout"]
    ro_w = jnp.concatenate([
        _pad2(rp["w1"][:C], D, D),                          # gin half of concat
        _pad2(rp["w1"][C:], D, D),                          # gt half of concat
        _pad2(rp["w2"], D, D)], axis=0).astype(bf16)        # [3D, D]
    ro_b = jnp.stack([_pad2(rp["b1"], 1, D)[0],
                      _pad2(rp["b2"], 1, D)[0]])            # [2, D] f32
    return (gin_w, gin_b, gt_wqkvs, gt_bqkvs, gt_we, gt_wbeta, ro_w, ro_b)


# ----------------------------------------------------------------------------
# full forward (single fused pallas_call)
# ----------------------------------------------------------------------------
def forward(params, x, edge_attr, edge_index, batch, num_graphs,
            hidden, heads, edge_dim, num_targets):
    N, F = x.shape
    E = edge_attr.shape[0]
    C, HC = hidden, heads * hidden

    D = _rpad(max(F, C, HC, edge_dim, num_targets), LANE)   # unified lane width
    N_P = _rpad(N, LANE)
    E_P = _rpad(E, LANE)
    B_P = _rpad(num_graphs, GRAPH_PAD)

    struct_n, m_dst = build_structs(edge_index, batch, N, N_P, E_P, B_P)
    x_p = _pad2(x, N_P, D).astype(jnp.bfloat16)
    ea_p = _pad2(edge_attr, E_P, D).astype(jnp.bfloat16)

    # per-head block-sum/broadcast matrix: bsum[i, j] = 1 iff i, j in same head block
    bsum = jnp.zeros((D, D), jnp.float32)
    for h in range(heads):
        bsum = bsum.at[h * C:(h + 1) * C, h * C:(h + 1) * C].set(1.0)
    bsum = bsum.astype(jnp.bfloat16)

    packed = prepare_packed_params(params, C, HC, D)
    num_gin, num_gt = len(params["gin"]), len(params["gt"])

    kernel = make_fused_kernel(num_gin, num_gt, N_P, E_P, B_P, D)
    inputs = (struct_n, m_dst, bsum, x_p, ea_p) + packed
    out_p = pl.pallas_call(
        kernel,
        out_shape=jax.ShapeDtypeStruct((B_P, D), jnp.float32),
        in_specs=[pl.BlockSpec(memory_space=pltpu.MemorySpace.VMEM)] * len(inputs),
        out_specs=pl.BlockSpec(memory_space=pltpu.MemorySpace.VMEM),
        compiler_params=pltpu.CompilerParams(
            vmem_limit_bytes=64 * 1024 * 1024),
    )(*inputs)
    return out_p[:num_graphs, :num_targets]


if __name__ == "__main__":
    # module hyperparameters
    hidden_size = 32
    num_layers_GIN = 2
    num_layers_GT = 2
    dropout = 0.0            # inference: dropout is identity
    num_features = 16
    num_targets = 3
    edge_dim = 8
    heads = 2

    # graph sizes
    N = 16                   # total nodes
    E = 32                   # total edges
    B = 2                    # graphs in the batch

    key = jax.random.PRNGKey(0)
    k_x, k_ea, k_s0, k_d0, k_s1, k_d1, k_p = jax.random.split(key, 7)

    x = jax.random.normal(k_x, (N, num_features), jnp.float32)
    edge_attr = jax.random.normal(k_ea, (E, edge_dim), jnp.float32)

    # edges kept within each graph: graph 0 -> nodes [0, 8), graph 1 -> nodes [8, 16)
    src0 = jax.random.randint(k_s0, (E // 2,), 0, N // 2)
    dst0 = jax.random.randint(k_d0, (E // 2,), 0, N // 2)
    src1 = jax.random.randint(k_s1, (E // 2,), N // 2, N)
    dst1 = jax.random.randint(k_d1, (E // 2,), N // 2, N)
    edge_index = jnp.stack([jnp.concatenate([src0, src1]),
                            jnp.concatenate([dst0, dst1])]).astype(jnp.int32)
    batch = jnp.concatenate([jnp.zeros(N // 2, jnp.int32),
                             jnp.ones(N - N // 2, jnp.int32)])

    params = init_params(k_p, hidden_size, num_layers_GIN, num_layers_GT,
                         num_features, num_targets, edge_dim, heads)

    out = forward(params, x, edge_attr, edge_index, batch, B,
                  hidden_size, heads, edge_dim, num_targets)
    out = jax.block_until_ready(out)
    assert out.shape == (B, num_targets)
    assert bool(jnp.all(jnp.isfinite(out)))
    print("KERNEL_OK")
</pallas_src>

<mosaic_0001>
module attributes {stable_mosaic.version = 11 : i64} {
  func.func @kernel(%arg0: memref<400x128xbf16, #tpu.memory_space<vmem>>, %arg1: memref<128x128xbf16, #tpu.memory_space<vmem>>, %arg2: memref<128x128xbf16, #tpu.memory_space<vmem>>, %arg3: memref<128x128xbf16, #tpu.memory_space<vmem>>, %arg4: memref<128x128xbf16, #tpu.memory_space<vmem>>, %arg5: memref<4x128x128xbf16, #tpu.memory_space<vmem>>, %arg6: memref<4x128xf32, #tpu.memory_space<vmem>>, %arg7: memref<2x128x512xbf16, #tpu.memory_space<vmem>>, %arg8: memref<2x512xf32, #tpu.memory_space<vmem>>, %arg9: memref<2x128x128xbf16, #tpu.memory_space<vmem>>, %arg10: memref<2x2x128xf32, #tpu.memory_space<vmem>>, %arg11: memref<384x128xbf16, #tpu.memory_space<vmem>>, %arg12: memref<2x128xf32, #tpu.memory_space<vmem>>, %arg13: memref<16x128xf32, #tpu.memory_space<vmem>>) attributes {dimension_semantics = [], scalar_prefetch = 0 : i64, scratch_operands = 0 : i64, tpu.core_type = #tpu.core_type<tc>} {
    %c0 = arith.constant 0 : index
    %c0_0 = arith.constant 0 : index
    %0 = vector.load %arg0[%c0, %c0_0] : memref<400x128xbf16, #tpu.memory_space<vmem>>, vector<128x128xbf16>
    %c128 = arith.constant 128 : index
    %c0_1 = arith.constant 0 : index
    %1 = vector.load %arg0[%c128, %c0_1] : memref<400x128xbf16, #tpu.memory_space<vmem>>, vector<128x128xbf16>
    %c256 = arith.constant 256 : index
    %c0_2 = arith.constant 0 : index
    %2 = vector.load %arg0[%c256, %c0_2] : memref<400x128xbf16, #tpu.memory_space<vmem>>, vector<128x128xbf16>
    %c384 = arith.constant 384 : index
    %c0_3 = arith.constant 0 : index
    %3 = vector.load %arg0[%c384, %c0_3] : memref<400x128xbf16, #tpu.memory_space<vmem>>, vector<16x128xbf16>
    %c0_4 = arith.constant 0 : index
    %c0_5 = arith.constant 0 : index
    %4 = vector.load %arg1[%c0_4, %c0_5] : memref<128x128xbf16, #tpu.memory_space<vmem>>, vector<128x128xbf16>
    %c0_6 = arith.constant 0 : index
    %c0_7 = arith.constant 0 : index
    %5 = vector.load %arg2[%c0_6, %c0_7] : memref<128x128xbf16, #tpu.memory_space<vmem>>, vector<128x128xbf16>
    %c0_8 = arith.constant 0 : index
    %c0_9 = arith.constant 0 : index
    %6 = vector.load %arg4[%c0_8, %c0_9] : memref<128x128xbf16, #tpu.memory_space<vmem>>, vector<128x128xbf16>
    %c0_10 = arith.constant 0 : index
    %c0_11 = arith.constant 0 : index
    %7 = vector.load %arg3[%c0_10, %c0_11] : memref<128x128xbf16, #tpu.memory_space<vmem>>, vector<128x128xbf16>
    %c0_12 = arith.constant 0 : index
    %c0_13 = arith.constant 0 : index
    %c0_14 = arith.constant 0 : index
    %8 = vector.load %arg5[%c0_12, %c0_13, %c0_14] : memref<4x128x128xbf16, #tpu.memory_space<vmem>>, vector<1x128x128xbf16>
    %9 = vector.shape_cast %8 : vector<1x128x128xbf16> to vector<128x128xbf16>
    %c1 = arith.constant 1 : index
    %c0_15 = arith.constant 0 : index
    %c0_16 = arith.constant 0 : index
    %10 = vector.load %arg5[%c1, %c0_15, %c0_16] : memref<4x128x128xbf16, #tpu.memory_space<vmem>>, vector<1x128x128xbf16>
    %11 = vector.shape_cast %10 : vector<1x128x128xbf16> to vector<128x128xbf16>
    %c0_17 = arith.constant 0 : index
    %c0_18 = arith.constant 0 : index
    %12 = vector.load %arg6[%c0_17, %c0_18] : memref<4x128xf32, #tpu.memory_space<vmem>>, vector<1x128xf32>
    %c1_19 = arith.constant 1 : index
    %c0_20 = arith.constant 0 : index
    %13 = vector.load %arg6[%c1_19, %c0_20] : memref<4x128xf32, #tpu.memory_space<vmem>>, vector<1x128xf32>
    %cst = arith.constant dense<0.000000e+00> : vector<128x128xf32>
    %14 = tpu.matmul %0, %7, %cst {dimension_numbers = #tpu.dot_dimension_numbers<[1], [0], [0], [1], [0, 0, 1, 1], [], []>} : vector<128x128xbf16>, vector<128x128xbf16>, vector<128x128xf32> -> vector<128x128xf32>
    %15 = arith.truncf %14 : vector<128x128xf32> to vector<128x128xbf16>
    %cst_21 = arith.constant dense<0.000000e+00> : vector<128x128xf32>
    %16 = tpu.matmul %15, %9, %cst_21 {dimension_numbers = #tpu.dot_dimension_numbers<[1], [0], [0], [1], [0, 0, 1, 1], [], []>} : vector<128x128xbf16>, vector<128x128xbf16>, vector<128x128xf32> -> vector<128x128xf32>
    %17 = vector.broadcast %12 : vector<1x128xf32> to vector<128x128xf32>
    %18 = arith.addf %16, %17 : vector<128x128xf32>
    %cst_22 = arith.constant 0.000000e+00 : f32
    %19 = vector.broadcast %cst_22 : f32 to vector<128x128xf32>
    %20 = arith.maximumf %18, %19 : vector<128x128xf32>
    %21 = arith.truncf %20 : vector<128x128xf32> to vector<128x128xbf16>
    %cst_23 = arith.constant dense<0.000000e+00> : vector<128x128xf32>
    %22 = tpu.matmul %21, %11, %cst_23 {dimension_numbers = #tpu.dot_dimension_numbers<[1], [0], [0], [1], [0, 0, 1, 1], [], []>} : vector<128x128xbf16>, vector<128x128xbf16>, vector<128x128xf32> -> vector<128x128xf32>
    %23 = vector.broadcast %13 : vector<1x128xf32> to vector<128x128xf32>
    %24 = arith.addf %22, %23 : vector<128x128xf32>
    %25 = arith.truncf %24 : vector<128x128xf32> to vector<128x128xbf16>
    %c2 = arith.constant 2 : index
    %c0_24 = arith.constant 0 : index
    %c0_25 = arith.constant 0 : index
    %26 = vector.load %arg5[%c2, %c0_24, %c0_25] : memref<4x128x128xbf16, #tpu.memory_space<vmem>>, vector<1x128x128xbf16>
    %27 = vector.shape_cast %26 : vector<1x128x128xbf16> to vector<128x128xbf16>
    %c3 = arith.constant 3 : index
    %c0_26 = arith.constant 0 : index
    %c0_27 = arith.constant 0 : index
    %28 = vector.load %arg5[%c3, %c0_26, %c0_27] : memref<4x128x128xbf16, #tpu.memory_space<vmem>>, vector<1x128x128xbf16>
    %29 = vector.shape_cast %28 : vector<1x128x128xbf16> to vector<128x128xbf16>
    %c2_28 = arith.constant 2 : index
    %c0_29 = arith.constant 0 : index
    %30 = vector.load %arg6[%c2_28, %c0_29] : memref<4x128xf32, #tpu.memory_space<vmem>>, vector<1x128xf32>
    %c3_30 = arith.constant 3 : index
    %c0_31 = arith.constant 0 : index
    %31 = vector.load %arg6[%c3_30, %c0_31] : memref<4x128xf32, #tpu.memory_space<vmem>>, vector<1x128xf32>
    %cst_32 = arith.constant dense<0.000000e+00> : vector<128x128xf32>
    %32 = tpu.matmul %0, %25, %cst_32 {dimension_numbers = #tpu.dot_dimension_numbers<[1], [0], [0], [1], [0, 0, 1, 1], [], []>} : vector<128x128xbf16>, vector<128x128xbf16>, vector<128x128xf32> -> vector<128x128xf32>
    %33 = arith.truncf %32 : vector<128x128xf32> to vector<128x128xbf16>
    %cst_33 = arith.constant dense<0.000000e+00> : vector<128x128xf32>
    %34 = tpu.matmul %33, %27, %cst_33 {dimension_numbers = #tpu.dot_dimension_numbers<[1], [0], [0], [1], [0, 0, 1, 1], [], []>} : vector<128x128xbf16>, vector<128x128xbf16>, vector<128x128xf32> -> vector<128x128xf32>
    %35 = vector.broadcast %30 : vector<1x128xf32> to vector<128x128xf32>
    %36 = arith.addf %34, %35 : vector<128x128xf32>
    %cst_34 = arith.constant 0.000000e+00 : f32
    %37 = vector.broadcast %cst_34 : f32 to vector<128x128xf32>
    %38 = arith.maximumf %36, %37 : vector<128x128xf32>
    %39 = arith.truncf %38 : vector<128x128xf32> to vector<128x128xbf16>
    %cst_35 = arith.constant dense<0.000000e+00> : vector<128x128xf32>
    %40 = tpu.matmul %39, %29, %cst_35 {dimension_numbers = #tpu.dot_dimension_numbers<[1], [0], [0], [1], [0, 0, 1, 1], [], []>} : vector<128x128xbf16>, vector<128x128xbf16>, vector<128x128xf32> -> vector<128x128xf32>
    %41 = vector.broadcast %31 : vector<1x128xf32> to vector<128x128xf32>
    %42 = arith.addf %40, %41 : vector<128x128xf32>
    %43 = arith.truncf %42 : vector<128x128xf32> to vector<128x128xbf16>
    %c0_36 = arith.constant 0 : index
    %c0_37 = arith.constant 0 : index
    %c0_38 = arith.constant 0 : index
    %44 = vector.load %arg7[%c0_36, %c0_37, %c0_38] : memref<2x128x512xbf16, #tpu.memory_space<vmem>>, vector<1x128x512xbf16>
    %45 = vector.shape_cast %44 : vector<1x128x512xbf16> to vector<128x512xbf16>
    %c0_39 = arith.constant 0 : index
    %c0_40 = arith.constant 0 : index
    %46 = vector.load %arg8[%c0_39, %c0_40] : memref<2x512xf32, #tpu.memory_space<vmem>>, vector<1x512xf32>
    %c0_41 = arith.constant 0 : index
    %c0_42 = arith.constant 0 : index
    %c0_43 = arith.constant 0 : index
    %47 = vector.load %arg9[%c0_41, %c0_42, %c0_43] : memref<2x128x128xbf16, #tpu.memory_space<vmem>>, vector<1x128x128xbf16>
    %48 = vector.shape_cast %47 : vector<1x128x128xbf16> to vector<128x128xbf16>
    %c0_44 = arith.constant 0 : index
    %c0_45 = arith.constant 0 : index
    %c0_46 = arith.constant 0 : index
    %49 = vector.load %arg10[%c0_44, %c0_45, %c0_46] : memref<2x2x128xf32, #tpu.memory_space<vmem>>, vector<1x2x128xf32>
    %50 = vector.shape_cast %49 : vector<1x2x128xf32> to vector<2x128xf32>
    %51 = vector.extract_strided_slice %50 {offsets = [0, 0], sizes = [1, 128], strides = [1, 1]} : vector<2x128xf32> to vector<1x128xf32>
    %52 = vector.extract_strided_slice %50 {offsets = [1, 0], sizes = [1, 128], strides = [1, 1]} : vector<2x128xf32> to vector<1x128xf32>
    %cst_47 = arith.constant dense<0.000000e+00> : vector<128x512xf32>
    %53 = tpu.matmul %43, %45, %cst_47 {dimension_numbers = #tpu.dot_dimension_numbers<[1], [0], [0], [1], [0, 0, 1, 1], [], []>} : vector<128x128xbf16>, vector<128x512xbf16>, vector<128x512xf32> -> vector<128x512xf32>
    %54 = vector.broadcast %46 : vector<1x512xf32> to vector<128x512xf32>
    %55 = arith.addf %53, %54 : vector<128x512xf32>
    %56 = vector.extract_strided_slice %55 {offsets = [0, 0], sizes = [128, 128], strides = [1, 1]} : vector<128x512xf32> to vector<128x128xf32>
    %57 = vector.extract_strided_slice %55 {offsets = [0, 128], sizes = [128, 256], strides = [1, 1]} : vector<128x512xf32> to vector<128x256xf32>
    %58 = vector.extract_strided_slice %55 {offsets = [0, 384], sizes = [128, 128], strides = [1, 1]} : vector<128x512xf32> to vector<128x128xf32>
    %cst_48 = arith.constant dense<0.000000e+00> : vector<128x128xf32>
    %59 = tpu.matmul %6, %48, %cst_48 {dimension_numbers = #tpu.dot_dimension_numbers<[1], [0], [0], [1], [0, 0, 1, 1], [], []>} : vector<128x128xbf16>, vector<128x128xbf16>, vector<128x128xf32> -> vector<128x128xf32>
    %60 = arith.truncf %56 : vector<128x128xf32> to vector<128x128xbf16>
    %cst_49 = arith.constant dense<0.000000e+00> : vector<128x128xf32>
    %61 = tpu.matmul %2, %60, %cst_49 {dimension_numbers = #tpu.dot_dimension_numbers<[1], [0], [0], [1], [0, 0, 1, 1], [], []>} : vector<128x128xbf16>, vector<128x128xbf16>, vector<128x128xf32> -> vector<128x128xf32>
    %62 = arith.truncf %57 : vector<128x256xf32> to vector<128x256xbf16>
    %cst_50 = arith.constant dense<0.000000e+00> : vector<128x256xf32>
    %63 = tpu.matmul %1, %62, %cst_50 {dimension_numbers = #tpu.dot_dimension_numbers<[1], [0], [0], [1], [0, 0, 1, 1], [], []>} : vector<128x128xbf16>, vector<128x256xbf16>, vector<128x256xf32> -> vector<128x256xf32>
    %64 = vector.extract_strided_slice %63 {offsets = [0, 0], sizes = [128, 128], strides = [1, 1]} : vector<128x256xf32> to vector<128x128xf32>
    %65 = arith.addf %64, %59 : vector<128x128xf32>
    %66 = vector.extract_strided_slice %63 {offsets = [0, 128], sizes = [128, 128], strides = [1, 1]} : vector<128x256xf32> to vector<128x128xf32>
    %67 = arith.addf %66, %59 : vector<128x128xf32>
    %68 = arith.mulf %61, %65 : vector<128x128xf32>
    %69 = arith.truncf %68 : vector<128x128xf32> to vector<128x128xbf16>
    %cst_51 = arith.constant dense<0.000000e+00> : vector<128x128xf32>
    %70 = tpu.matmul %69, %5, %cst_51 {dimension_numbers = #tpu.dot_dimension_numbers<[1], [0], [0], [1], [0, 0, 1, 1], [], []>} : vector<128x128xbf16>, vector<128x128xbf16>, vector<128x128xf32> -> vector<128x128xf32>
    %71 = vector.shape_cast %70 : vector<128x128xf32> to vector<1x128x128xf32>
    %cst_52 = arith.constant dense<0xFF800000> : vector<1xf32>
    %72 = vector.multi_reduction <maximumf>, %71, %cst_52 [1, 2] : vector<1x128x128xf32> to vector<1xf32>
    %73 = vector.shape_cast %72 : vector<1xf32> to vector<1x1x1xf32>
    %74 = vector.extract %73[0, 0, 0] : f32 from vector<1x1x1xf32>
    %75 = vector.broadcast %74 : f32 to vector<128x128xf32>
    %76 = arith.subf %70, %75 : vector<128x128xf32>
    %77 = math.exp %76 : vector<128x128xf32>
    %78 = arith.mulf %77, %67 : vector<128x128xf32>
    %79 = tpu.concatenate %78, %77 in 1 : vector<128x128xf32>, vector<128x128xf32> -> vector<128x256xf32>
    %80 = arith.truncf %79 : vector<128x256xf32> to vector<128x256xbf16>
    %cst_53 = arith.constant dense<0.000000e+00> : vector<128x256xf32>
    %81 = tpu.matmul %4, %80, %cst_53 {dimension_numbers = #tpu.dot_dimension_numbers<[1], [0], [0], [1], [0, 0, 1, 1], [], []>} : vector<128x128xbf16>, vector<128x256xbf16>, vector<128x256xf32> -> vector<128x256xf32>
    %82 = vector.extract_strided_slice %81 {offsets = [0, 0], sizes = [128, 128], strides = [1, 1]} : vector<128x256xf32> to vector<128x128xf32>
    %83 = vector.extract_strided_slice %81 {offsets = [0, 128], sizes = [128, 128], strides = [1, 1]} : vector<128x256xf32> to vector<128x128xf32>
    %cst_54 = arith.constant 9.99999968E-21 : f32
    %84 = vector.broadcast %cst_54 : f32 to vector<128x128xf32>
    %85 = arith.maximumf %83, %84 : vector<128x128xf32>
    %86 = tpu.reciprocal %85 {approx = true} : vector<128x128xf32> -> vector<128x128xf32>
    %87 = arith.mulf %82, %86 : vector<128x128xf32>
    %88 = vector.broadcast %51 : vector<1x128xf32> to vector<128x128xf32>
    %89 = arith.mulf %58, %88 : vector<128x128xf32>
    %90 = vector.broadcast %52 : vector<1x128xf32> to vector<128x128xf32>
    %91 = arith.mulf %87, %90 : vector<128x128xf32>
    %92 = arith.addf %89, %91 : vector<128x128xf32>
    %cst_55 = arith.constant dense<0.000000e+00> : vector<128xf32>
    %93 = vector.multi_reduction <add>, %92, %cst_55 [1] : vector<128x128xf32> to vector<128xf32>
    %94 = vector.shape_cast %93 : vector<128xf32> to vector<128x1xf32>
    %cst_56 = arith.constant 0.000000e+00 : f32
    %95 = vector.broadcast %cst_56 : f32 to vector<128x1xf32>
    %96 = arith.subf %95, %94 : vector<128x1xf32>
    %97 = math.exp %96 : vector<128x1xf32>
    %cst_57 = arith.constant 1.000000e+00 : f32
    %98 = vector.broadcast %cst_57 : f32 to vector<128x1xf32>
    %99 = arith.addf %98, %97 : vector<128x1xf32>
    %100 = tpu.reciprocal %99 {approx = true} : vector<128x1xf32> -> vector<128x1xf32>
    %101 = vector.broadcast %100 : vector<128x1xf32> to vector<128x128xf32>
    %102 = arith.mulf %101, %58 : vector<128x128xf32>
    %cst_58 = arith.constant 1.000000e+00 : f32
    %103 = vector.broadcast %cst_58 : f32 to vector<128x1xf32>
    %104 = arith.subf %103, %100 : vector<128x1xf32>
    %105 = vector.broadcast %104 : vector<128x1xf32> to vector<128x128xf32>
    %106 = arith.mulf %105, %87 : vector<128x128xf32>
    %107 = arith.addf %102, %106 : vector<128x128xf32>
    %108 = arith.truncf %107 : vector<128x128xf32> to vector<128x128xbf16>
    %c1_59 = arith.constant 1 : index
    %c0_60 = arith.constant 0 : index
    %c0_61 = arith.constant 0 : index
    %109 = vector.load %arg7[%c1_59, %c0_60, %c0_61] : memref<2x128x512xbf16, #tpu.memory_space<vmem>>, vector<1x128x512xbf16>
    %110 = vector.shape_cast %109 : vector<1x128x512xbf16> to vector<128x512xbf16>
    %c1_62 = arith.constant 1 : index
    %c0_63 = arith.constant 0 : index
    %111 = vector.load %arg8[%c1_62, %c0_63] : memref<2x512xf32, #tpu.memory_space<vmem>>, vector<1x512xf32>
    %c1_64 = arith.constant 1 : index
    %c0_65 = arith.constant 0 : index
    %c0_66 = arith.constant 0 : index
    %112 = vector.load %arg9[%c1_64, %c0_65, %c0_66] : memref<2x128x128xbf16, #tpu.memory_space<vmem>>, vector<1x128x128xbf16>
    %113 = vector.shape_cast %112 : vector<1x128x128xbf16> to vector<128x128xbf16>
    %c1_67 = arith.constant 1 : index
    %c0_68 = arith.constant 0 : index
    %c0_69 = arith.constant 0 : index
    %114 = vector.load %arg10[%c1_67, %c0_68, %c0_69] : memref<2x2x128xf32, #tpu.memory_space<vmem>>, vector<1x2x128xf32>
    %115 = vector.shape_cast %114 : vector<1x2x128xf32> to vector<2x128xf32>
    %116 = vector.extract_strided_slice %115 {offsets = [0, 0], sizes = [1, 128], strides = [1, 1]} : vector<2x128xf32> to vector<1x128xf32>
    %117 = vector.extract_strided_slice %115 {offsets = [1, 0], sizes = [1, 128], strides = [1, 1]} : vector<2x128xf32> to vector<1x128xf32>
    %cst_70 = arith.constant dense<0.000000e+00> : vector<128x512xf32>
    %118 = tpu.matmul %108, %110, %cst_70 {dimension_numbers = #tpu.dot_dimension_numbers<[1], [0], [0], [1], [0, 0, 1, 1], [], []>} : vector<128x128xbf16>, vector<128x512xbf16>, vector<128x512xf32> -> vector<128x512xf32>
    %119 = vector.broadcast %111 : vector<1x512xf32> to vector<128x512xf32>
    %120 = arith.addf %118, %119 : vector<128x512xf32>
    %121 = vector.extract_strided_slice %120 {offsets = [0, 0], sizes = [128, 128], strides = [1, 1]} : vector<128x512xf32> to vector<128x128xf32>
    %122 = vector.extract_strided_slice %120 {offsets = [0, 128], sizes = [128, 256], strides = [1, 1]} : vector<128x512xf32> to vector<128x256xf32>
    %123 = vector.extract_strided_slice %120 {offsets = [0, 384], sizes = [128, 128], strides = [1, 1]} : vector<128x512xf32> to vector<128x128xf32>
    %cst_71 = arith.constant dense<0.000000e+00> : vector<128x128xf32>
    %124 = tpu.matmul %6, %113, %cst_71 {dimension_numbers = #tpu.dot_dimension_numbers<[1], [0], [0], [1], [0, 0, 1, 1], [], []>} : vector<128x128xbf16>, vector<128x128xbf16>, vector<128x128xf32> -> vector<128x128xf32>
    %125 = arith.truncf %121 : vector<128x128xf32> to vector<128x128xbf16>
    %cst_72 = arith.constant dense<0.000000e+00> : vector<128x128xf32>
    %126 = tpu.matmul %2, %125, %cst_72 {dimension_numbers = #tpu.dot_dimension_numbers<[1], [0], [0], [1], [0, 0, 1, 1], [], []>} : vector<128x128xbf16>, vector<128x128xbf16>, vector<128x128xf32> -> vector<128x128xf32>
    %127 = arith.truncf %122 : vector<128x256xf32> to vector<128x256xbf16>
    %cst_73 = arith.constant dense<0.000000e+00> : vector<128x256xf32>
    %128 = tpu.matmul %1, %127, %cst_73 {dimension_numbers = #tpu.dot_dimension_numbers<[1], [0], [0], [1], [0, 0, 1, 1], [], []>} : vector<128x128xbf16>, vector<128x256xbf16>, vector<128x256xf32> -> vector<128x256xf32>
    %129 = vector.extract_strided_slice %128 {offsets = [0, 0], sizes = [128, 128], strides = [1, 1]} : vector<128x256xf32> to vector<128x128xf32>
    %130 = arith.addf %129, %124 : vector<128x128xf32>
    %131 = vector.extract_strided_slice %128 {offsets = [0, 128], sizes = [128, 128], strides = [1, 1]} : vector<128x256xf32> to vector<128x128xf32>
    %132 = arith.addf %131, %124 : vector<128x128xf32>
    %133 = arith.mulf %126, %130 : vector<128x128xf32>
    %134 = arith.truncf %133 : vector<128x128xf32> to vector<128x128xbf16>
    %cst_74 = arith.constant dense<0.000000e+00> : vector<128x128xf32>
    %135 = tpu.matmul %134, %5, %cst_74 {dimension_numbers = #tpu.dot_dimension_numbers<[1], [0], [0], [1], [0, 0, 1, 1], [], []>} : vector<128x128xbf16>, vector<128x128xbf16>, vector<128x128xf32> -> vector<128x128xf32>
    %136 = vector.shape_cast %135 : vector<128x128xf32> to vector<1x128x128xf32>
    %cst_75 = arith.constant dense<0xFF800000> : vector<1xf32>
    %137 = vector.multi_reduction <maximumf>, %136, %cst_75 [1, 2] : vector<1x128x128xf32> to vector<1xf32>
    %138 = vector.shape_cast %137 : vector<1xf32> to vector<1x1x1xf32>
    %139 = vector.extract %138[0, 0, 0] : f32 from vector<1x1x1xf32>
    %140 = vector.broadcast %139 : f32 to vector<128x128xf32>
    %141 = arith.subf %135, %140 : vector<128x128xf32>
    %142 = math.exp %141 : vector<128x128xf32>
    %143 = arith.mulf %142, %132 : vector<128x128xf32>
    %144 = tpu.concatenate %143, %142 in 1 : vector<128x128xf32>, vector<128x128xf32> -> vector<128x256xf32>
    %145 = arith.truncf %144 : vector<128x256xf32> to vector<128x256xbf16>
    %cst_76 = arith.constant dense<0.000000e+00> : vector<128x256xf32>
    %146 = tpu.matmul %4, %145, %cst_76 {dimension_numbers = #tpu.dot_dimension_numbers<[1], [0], [0], [1], [0, 0, 1, 1], [], []>} : vector<128x128xbf16>, vector<128x256xbf16>, vector<128x256xf32> -> vector<128x256xf32>
    %147 = vector.extract_strided_slice %146 {offsets = [0, 0], sizes = [128, 128], strides = [1, 1]} : vector<128x256xf32> to vector<128x128xf32>
    %148 = vector.extract_strided_slice %146 {offsets = [0, 128], sizes = [128, 128], strides = [1, 1]} : vector<128x256xf32> to vector<128x128xf32>
    %cst_77 = arith.constant 9.99999968E-21 : f32
    %149 = vector.broadcast %cst_77 : f32 to vector<128x128xf32>
    %150 = arith.maximumf %148, %149 : vector<128x128xf32>
    %151 = tpu.reciprocal %150 {approx = true} : vector<128x128xf32> -> vector<128x128xf32>
    %152 = arith.mulf %147, %151 : vector<128x128xf32>
    %153 = vector.broadcast %116 : vector<1x128xf32> to vector<128x128xf32>
    %154 = arith.mulf %123, %153 : vector<128x128xf32>
    %155 = vector.broadcast %117 : vector<1x128xf32> to vector<128x128xf32>
    %156 = arith.mulf %152, %155 : vector<128x128xf32>
    %157 = arith.addf %154, %156 : vector<128x128xf32>
    %cst_78 = arith.constant dense<0.000000e+00> : vector<128xf32>
    %158 = vector.multi_reduction <add>, %157, %cst_78 [1] : vector<128x128xf32> to vector<128xf32>
    %159 = vector.shape_cast %158 : vector<128xf32> to vector<128x1xf32>
    %cst_79 = arith.constant 0.000000e+00 : f32
    %160 = vector.broadcast %cst_79 : f32 to vector<128x1xf32>
    %161 = arith.subf %160, %159 : vector<128x1xf32>
    %162 = math.exp %161 : vector<128x1xf32>
    %cst_80 = arith.constant 1.000000e+00 : f32
    %163 = vector.broadcast %cst_80 : f32 to vector<128x1xf32>
    %164 = arith.addf %163, %162 : vector<128x1xf32>
    %165 = tpu.reciprocal %164 {approx = true} : vector<128x1xf32> -> vector<128x1xf32>
    %166 = vector.broadcast %165 : vector<128x1xf32> to vector<128x128xf32>
    %167 = arith.mulf %166, %123 : vector<128x128xf32>
    %cst_81 = arith.constant 1.000000e+00 : f32
    %168 = vector.broadcast %cst_81 : f32 to vector<128x1xf32>
    %169 = arith.subf %168, %165 : vector<128x1xf32>
    %170 = vector.broadcast %169 : vector<128x1xf32> to vector<128x128xf32>
    %171 = arith.mulf %170, %152 : vector<128x128xf32>
    %172 = arith.addf %167, %171 : vector<128x128xf32>
    %173 = arith.truncf %172 : vector<128x128xf32> to vector<128x128xbf16>
    %174 = tpu.concatenate %43, %173 in 1 : vector<128x128xbf16>, vector<128x128xbf16> -> vector<128x256xbf16>
    %cst_82 = arith.constant dense<0.000000e+00> : vector<16x256xf32>
    %175 = tpu.matmul %3, %174, %cst_82 {dimension_numbers = #tpu.dot_dimension_numbers<[1], [0], [0], [1], [0, 0, 1, 1], [], []>} : vector<16x128xbf16>, vector<128x256xbf16>, vector<16x256xf32> -> vector<16x256xf32>
    %176 = arith.extf %3 : vector<16x128xbf16> to vector<16x128xf32>
    %cst_83 = arith.constant dense<0.000000e+00> : vector<16xf32>
    %177 = vector.multi_reduction <add>, %176, %cst_83 [1] : vector<16x128xf32> to vector<16xf32>
    %178 = vector.shape_cast %177 : vector<16xf32> to vector<16x1xf32>
    %cst_84 = arith.constant 1.000000e+00 : f32
    %179 = vector.broadcast %cst_84 : f32 to vector<16x1xf32>
    %180 = arith.maximumf %178, %179 : vector<16x1xf32>
    %cst_85 = arith.constant 1.000000e+00 : f32
    %181 = vector.broadcast %cst_85 : f32 to vector<16x1xf32>
    %182 = arith.divf %181, %180 : vector<16x1xf32>
    %183 = vector.extract_strided_slice %175 {offsets = [0, 0], sizes = [16, 128], strides = [1, 1]} : vector<16x256xf32> to vector<16x128xf32>
    %184 = vector.extract_strided_slice %175 {offsets = [0, 128], sizes = [16, 128], strides = [1, 1]} : vector<16x256xf32> to vector<16x128xf32>
    %185 = vector.broadcast %182 : vector<16x1xf32> to vector<16x128xf32>
    %186 = arith.mulf %184, %185 : vector<16x128xf32>
    %187 = tpu.concatenate %183, %186 in 1 : vector<16x128xf32>, vector<16x128xf32> -> vector<16x256xf32>
    %188 = arith.truncf %187 : vector<16x256xf32> to vector<16x256xbf16>
    %c0_86 = arith.constant 0 : index
    %c0_87 = arith.constant 0 : index
    %189 = vector.load %arg11[%c0_86, %c0_87] : memref<384x128xbf16, #tpu.memory_space<vmem>>, vector<256x128xbf16>
    %c256_88 = arith.constant 256 : index
    %c0_89 = arith.constant 0 : index
    %190 = vector.load %arg11[%c256_88, %c0_89] : memref<384x128xbf16, #tpu.memory_space<vmem>>, vector<128x128xbf16>
    %c0_90 = arith.constant 0 : index
    %c0_91 = arith.constant 0 : index
    %191 = vector.load %arg12[%c0_90, %c0_91] : memref<2x128xf32, #tpu.memory_space<vmem>>, vector<1x128xf32>
    %c1_92 = arith.constant 1 : index
    %c0_93 = arith.constant 0 : index
    %192 = vector.load %arg12[%c1_92, %c0_93] : memref<2x128xf32, #tpu.memory_space<vmem>>, vector<1x128xf32>
    %cst_94 = arith.constant dense<0.000000e+00> : vector<16x128xf32>
    %193 = tpu.matmul %188, %189, %cst_94 {dimension_numbers = #tpu.dot_dimension_numbers<[1], [0], [0], [1], [0, 0, 1, 1], [], []>} : vector<16x256xbf16>, vector<256x128xbf16>, vector<16x128xf32> -> vector<16x128xf32>
    %194 = vector.broadcast %191 : vector<1x128xf32> to vector<16x128xf32>
    %195 = arith.addf %193, %194 : vector<16x128xf32>
    %cst_95 = arith.constant 0.000000e+00 : f32
    %196 = vector.broadcast %cst_95 : f32 to vector<16x128xf32>
    %197 = arith.maximumf %195, %196 : vector<16x128xf32>
    %198 = arith.truncf %197 : vector<16x128xf32> to vector<16x128xbf16>
    %cst_96 = arith.constant dense<0.000000e+00> : vector<16x128xf32>
    %199 = tpu.matmul %198, %190, %cst_96 {dimension_numbers = #tpu.dot_dimension_numbers<[1], [0], [0], [1], [0, 0, 1, 1], [], []>} : vector<16x128xbf16>, vector<128x128xbf16>, vector<16x128xf32> -> vector<16x128xf32>
    %200 = vector.broadcast %192 : vector<1x128xf32> to vector<16x128xf32>
    %201 = arith.addf %199, %200 : vector<16x128xf32>
    %c0_97 = arith.constant 0 : index
    %c0_98 = arith.constant 0 : index
    %202 = vector.load %arg13[%c0_97, %c0_98] : memref<16x128xf32, #tpu.memory_space<vmem>>, vector<16x128xf32>
    tpu.vector_store %arg13[%c0_97, %c0_98], %201 {strides = array<i32>} : memref<16x128xf32, #tpu.memory_space<vmem>>, vector<16x128xf32>,
    return
  }
}

</mosaic_0001>

<bundles_post_ra>
// kernel: tpu_custom_call.1
= control target key start
LH: loop header
LB: loop body
LE: loop exit
PB: predicated region body
PF: predicated region fallthrough
CT: control target
= control target key end

     0   :  { %18 = vsyncpa [#allocation3], 0  ;;  %s7983_s0 = inlined_call_operand.hbm [shape: bf16[400,128], index: 0, kind: input, shape index: {}]   ;;  %s7984_s1 = inlined_call_operand.hbm [shape: bf16[128,128], index: 1, kind: input, shape index: {}]   ;;  %s7985_s2 = inlined_call_operand.hbm [shape: bf16[128,128], index: 2, kind: input, shape index: {}]   ;;  %s7986_s3 = inlined_call_operand.hbm [shape: bf16[128,128], index: 3, kind: input, shape index: {}]   ;;  %s7987_s4 = inlined_call_operand.hbm [shape: bf16[128,128], index: 4, kind: input, shape index: {}]   ;;  %s7988_s5 = inlined_call_operand.hbm [shape: bf16[4,128,128], index: 5, kind: input, shape index: {}]   ;;  %s7989_s6 = inlined_call_operand.hbm [shape: f32[4,128], index: 6, kind: input, shape index: {}]   ;;  %s7990_s7 = inlined_call_operand.hbm [shape: bf16[2,128,512], index: 7, kind: input, shape index: {}]   ;;  %s7991_s8 = inlined_call_operand.hbm [shape: f32[2,512], index: 8, kind: input, shape index: {}]   ;;  %s7992_s9 = inlined_call_operand.hbm [shape: bf16[2,128,128], index: 9, kind: input, shape index: {}]   ;;  %s7993_s10 = inlined_call_operand.hbm [shape: f32[2,2,128], index: 10, kind: input, shape index: {}]   ;;  %s7994_s11 = inlined_call_operand.hbm [shape: bf16[384,128], index: 11, kind: input, shape index: {}]   ;;  %s7995_s12 = inlined_call_operand.hbm [shape: f32[2,128], index: 12, kind: input, shape index: {}]   ;;  %s7996_s13 = inlined_call_operand.hbm [shape: f32[16,128], index: 13, kind: output, shape index: {}]  }
   0x1   :  { %19 = vsyncpa [#allocation6], 0 }
   0x2   :  { %20 = vsyncpa [#allocation9], 0 }
   0x3   :  { %21 = vsyncpa [#allocation12], 0 }
   0x4   :  { %22 = vsyncpa [#allocation15], 0 }
   0x5   :  { %23 = vsyncpa [#allocation18], 0 }
   0x6   :  { %24 = vsyncpa [#allocation21], 0 }
   0x7   :  { %25 = vsyncpa [#allocation4], 0  ;;  %s6685_s25 = smov [#allocation5]   ;;  %s6686_s27 = smov [#allocation8]  }
   0x8   :  { %s43_s26 = sshll.u32 %s6685_s25, 4  ;;  %s67_s28 = sshll.u32 %s6686_s27, 4  ;;  %s44_s26 = int_to_ptr.vmem [resolvable:$true] %s43_s26  ;;  %s6780_s28 = int_to_ptr.vmem [resolvable:$true] %s67_s28 }
   0x9   :  { %s6361_s14 = scalar_lea.hbm %s7984_s1, 1024 }
   0xa   :  { %p6362_p0 = scmp.ne.s32.totalorder %s7984_s1, %s6361_s14  ;;  %p6365_p1 = scmp.lt.u32.totalorder %s6361_s14, %s7984_s1 }
   0xc   :  { %p6367_p2 = pnand %p6365_p1, %p6362_p0 }
   0xe   :  { %6370 = shalt.err (!%p6367_p2)
}
   0xf   :  { %s6371_s19 = scalar_lea.vmem %s44_s26, 1024  ;;  %p6376_p4 = scmp.lt.s32.totalorder %s44_s26, %s44_s26 }
  0x10   :  { %p6372_p3 = scmp.ne.s32.totalorder %s44_s26, %s6371_s19  ;;  %p6377_p5 = scmp.lt.s32.totalorder %s6371_s19, %s6371_s19 }
  0x12   :  { %p6378_p6 = por %p6377_p5, %p6376_p4 }
  0x14   :  { %p6379_p7 = pnand %p6378_p6, %p6372_p3 }
  0x16   :  { %6382 = shalt.err (!%p6379_p7)
}
  0x17   :  { %s6687_s20 = smov 64   ;;  %s6688_s21 = smov 4  }
  0x18   :  { %49 = dma.hbm_to_vmem [thread:$0]  %s7984_s1, 1024, %s44_s26, [#allocation6], %s6687_s20, %s6687_s20, %s6688_s21  }
  0x19   :  { %s6383_s27 = scalar_lea.hbm %s7986_s3, 1024 }
  0x1a   :  { %p6384_p8 = scmp.ne.s32.totalorder %s7986_s3, %s6383_s27  ;;  %p6387_p9 = scmp.lt.u32.totalorder %s6383_s27, %s7986_s3 }
  0x1c   :  { %p6389_p10 = pnand %p6387_p9, %p6384_p8 }
  0x1e   :  { %6392 = shalt.err (!%p6389_p10)
}
  0x1f   :  { %s6393_s16 = scalar_lea.vmem %s6780_s28, 1024  ;;  %p6398_p12 = scmp.lt.s32.totalorder %s6780_s28, %s6780_s28 }
  0x20   :  { %p6394_p11 = scmp.ne.s32.totalorder %s6780_s28, %s6393_s16  ;;  %p6399_p13 = scmp.lt.s32.totalorder %s6393_s16, %s6393_s16 }
  0x22   :  { %p6400_p0 = por %p6399_p13, %p6398_p12 }
  0x24   :  { %p6401_p1 = pnand %p6400_p0, %p6394_p11 }
  0x26   :  { %6404 = shalt.err (!%p6401_p1)
}
  0x27   :  { %73 = dma.hbm_to_vmem [thread:$0]  %s7986_s3, 1024, %s6780_s28, [#allocation9], %s6687_s20, %s6687_s20, %s6688_s21  }
  0x28   :  { %s6689_s17 = smov [#allocation11]   ;;  %s6690_s19 = smov [#allocation14]  }
  0x29   :  { %s91_s18 = sshll.u32 %s6689_s17, 4  ;;  %s113_s22 = sshll.u32 %s6690_s19, 4  ;;  %s92_s18 = int_to_ptr.vmem [resolvable:$true] %s91_s18  ;;  %s6817_s22 = int_to_ptr.vmem [resolvable:$true] %s113_s22 }
  0x2a   :  { %s6405_s25 = scalar_lea.hbm %s7988_s5, 4096 }
  0x2b   :  { %p6406_p2 = scmp.ne.s32.totalorder %s7988_s5, %s6405_s25  ;;  %p6409_p3 = scmp.lt.u32.totalorder %s6405_s25, %s7988_s5 }
  0x2d   :  { %p6411_p4 = pnand %p6409_p3, %p6406_p2 }
  0x2f   :  { %6414 = shalt.err (!%p6411_p4)
}
  0x30   :  { %s6415_s3 = scalar_lea.vmem %s92_s18, 4096  ;;  %p6420_p6 = scmp.lt.s32.totalorder %s92_s18, %s92_s18 }
  0x31   :  { %p6416_p5 = scmp.ne.s32.totalorder %s92_s18, %s6415_s3  ;;  %p6421_p7 = scmp.lt.s32.totalorder %s6415_s3, %s6415_s3 }
  0x33   :  { %p6422_p8 = por %p6421_p7, %p6420_p6 }
  0x35   :  { %p6423_p9 = pnand %p6422_p8, %p6416_p5 }
  0x37   :  { %6426 = shalt.err (!%p6423_p9)
}
  0x38   :  { %97 = dma.hbm_to_vmem [thread:$0]  %s7988_s5, 4096, %s92_s18, [#allocation12], %s6687_s20, %s6687_s20, %s6688_s21  }
  0x39   :  { %s6427_s26 = scalar_lea.hbm %s7990_s7, 8192 }
  0x3a   :  { %p6428_p10 = scmp.ne.s32.totalorder %s7990_s7, %s6427_s26  ;;  %p6431_p11 = scmp.lt.u32.totalorder %s6427_s26, %s7990_s7 }
  0x3c   :  { %p6433_p12 = pnand %p6431_p11, %p6428_p10 }
  0x3e   :  { %6436 = shalt.err (!%p6433_p12)
}
  0x3f   :  { %s6437_s25 = scalar_lea.vmem %s6817_s22, 8192  ;;  %p6442_p0 = scmp.lt.s32.totalorder %s6817_s22, %s6817_s22 }
  0x40   :  { %p6438_p13 = scmp.ne.s32.totalorder %s6817_s22, %s6437_s25  ;;  %p6443_p1 = scmp.lt.s32.totalorder %s6437_s25, %s6437_s25 }
  0x42   :  { %p6444_p2 = por %p6443_p1, %p6442_p0 }
  0x44   :  { %p6445_p3 = pnand %p6444_p2, %p6438_p13 }
  0x46   :  { %6448 = shalt.err (!%p6445_p3)
}
  0x47   :  { %s6691_s5 = smov 256   ;;  %s6692_s18 = smov 16  }
  0x48   :  { %119 = dma.hbm_to_vmem [thread:$0]  %s7990_s7, 8192, %s6817_s22, [#allocation15], %s6691_s5, %s6691_s5, %s6692_s18  }
  0x49   :  { %s6693_s30 = smov [#allocation17]   ;;  %s6694_s3 = smov [#allocation20]  }
  0x4a   :  { %s135_s14 = sshll.u32 %s6693_s30, 4  ;;  %s159_s28 = sshll.u32 %s6694_s3, 4  ;;  %s136_s14 = int_to_ptr.vmem [resolvable:$true] %s135_s14  ;;  %s6851_s28 = int_to_ptr.vmem [resolvable:$true] %s159_s28 }
  0x4b   :  { %s6449_s1 = scalar_lea.hbm %s7992_s9, 2048 }
  0x4c   :  { %p6450_p4 = scmp.ne.s32.totalorder %s7992_s9, %s6449_s1  ;;  %p6453_p5 = scmp.lt.u32.totalorder %s6449_s1, %s7992_s9 }
  0x4e   :  { %p6455_p6 = pnand %p6453_p5, %p6450_p4 }
  0x50   :  { %6458 = shalt.err (!%p6455_p6)
}
  0x51   :  { %s6459_s7 = scalar_lea.vmem %s136_s14, 2048  ;;  %p6464_p8 = scmp.lt.s32.totalorder %s136_s14, %s136_s14 }
  0x52   :  { %p6460_p7 = scmp.ne.s32.totalorder %s136_s14, %s6459_s7  ;;  %p6465_p9 = scmp.lt.s32.totalorder %s6459_s7, %s6459_s7 }
  0x54   :  { %p6466_p10 = por %p6465_p9, %p6464_p8 }
  0x56   :  { %p6467_p11 = pnand %p6466_p10, %p6460_p7 }
  0x58   :  { %6470 = shalt.err (!%p6467_p11)
}
  0x59   :  { %141 = dma.hbm_to_vmem [thread:$0]  %s7992_s9, 2048, %s136_s14, [#allocation18], %s6687_s20, %s6687_s20, %s6688_s21  }
  0x5a   :  { %s6471_s18 = scalar_lea.hbm %s7994_s11, 3072 }
  0x5b   :  { %p6472_p12 = scmp.ne.s32.totalorder %s7994_s11, %s6471_s18  ;;  %p6475_p13 = scmp.lt.u32.totalorder %s6471_s18, %s7994_s11 }
  0x5d   :  { %p6477_p0 = pnand %p6475_p13, %p6472_p12 }
  0x5f   :  { %6480 = shalt.err (!%p6477_p0)
}
  0x60   :  { %s6481_s15 = scalar_lea.vmem %s6851_s28, 3072  ;;  %p6486_p2 = scmp.lt.s32.totalorder %s6851_s28, %s6851_s28 }
  0x61   :  { %p6482_p1 = scmp.ne.s32.totalorder %s6851_s28, %s6481_s15  ;;  %p6487_p3 = scmp.lt.s32.totalorder %s6481_s15, %s6481_s15 }
  0x63   :  { %p6488_p4 = por %p6487_p3, %p6486_p2 }
  0x65   :  { %p6489_p5 = pnand %p6488_p4, %p6482_p1 }
  0x67   :  { %6492 = shalt.err (!%p6489_p5)
}
  0x68   :  { %165 = dma.hbm_to_vmem [thread:$0]  %s7994_s11, 3072, %s6851_s28, [#allocation21], %s6687_s20, %s6687_s20, %s6688_s21  }
  0x69   :  { %s6695_s16 = smov [#allocation2]   ;;  %s6696_s26 = smov [#allocation7]  }
  0x6a   :  { %s31_s1 = sshll.u32 %s6695_s16, 4  ;;  %s55_s17 = sshll.u32 %s6696_s26, 4  ;;  %s32_s1 = int_to_ptr.vmem [resolvable:$true] %s31_s1  ;;  %s6888_s17 = int_to_ptr.vmem [resolvable:$true] %s55_s17 }
  0x6b   :  { %s6493_s7 = scalar_lea.hbm %s7983_s0, 3200 }
  0x6c   :  { %p6494_p6 = scmp.ne.s32.totalorder %s7983_s0, %s6493_s7  ;;  %p6497_p7 = scmp.lt.u32.totalorder %s6493_s7, %s7983_s0 }
  0x6e   :  { %p6499_p8 = pnand %p6497_p7, %p6494_p6 }
  0x70   :  { %6502 = shalt.err (!%p6499_p8)
}
  0x71   :  { %s6503_s11 = scalar_lea.vmem %s32_s1, 3200  ;;  %p6508_p10 = scmp.lt.s32.totalorder %s32_s1, %s32_s1 }
  0x72   :  { %p6504_p9 = scmp.ne.s32.totalorder %s32_s1, %s6503_s11  ;;  %p6509_p11 = scmp.lt.s32.totalorder %s6503_s11, %s6503_s11 }
  0x74   :  { %p6510_p12 = por %p6509_p11, %p6508_p10 }
  0x76   :  { %p6511_p13 = pnand %p6510_p12, %p6504_p9 }
  0x78   :  { %6514 = shalt.err (!%p6511_p13)
}
  0x79   :  { %37 = dma.hbm_to_vmem [thread:$0]  %s7983_s0, 3200, %s32_s1, [#allocation3], %s6687_s20, %s6687_s20, %s6688_s21  }
  0x7a   :  { %s6515_s30 = scalar_lea.hbm %s7985_s2, 1024 }
  0x7b   :  { %p6516_p0 = scmp.ne.s32.totalorder %s7985_s2, %s6515_s30  ;;  %p6519_p1 = scmp.lt.u32.totalorder %s6515_s30, %s7985_s2 }
  0x7d   :  { %p6521_p2 = pnand %p6519_p1, %p6516_p0 }
  0x7f   :  { %6524 = shalt.err (!%p6521_p2)
}
  0x80   :  { %s6525_s16 = scalar_lea.vmem %s6888_s17, 1024  ;;  %p6530_p4 = scmp.lt.s32.totalorder %s6888_s17, %s6888_s17 }
  0x81   :  { %p6526_p3 = scmp.ne.s32.totalorder %s6888_s17, %s6525_s16  ;;  %p6531_p5 = scmp.lt.s32.totalorder %s6525_s16, %s6525_s16 }
  0x83   :  { %p6532_p6 = por %p6531_p5, %p6530_p4 }
  0x85   :  { %p6533_p7 = pnand %p6532_p6, %p6526_p3 }
  0x87   :  { %6536 = shalt.err (!%p6533_p7)
}
  0x88   :  { %61 = dma.hbm_to_vmem [thread:$0]  %s7985_s2, 1024, %s6888_s17, [#allocation6], %s6687_s20, %s6687_s20, %s6688_s21  }
  0x89   :  { %s6697_s26 = smov [#allocation10]   ;;  %s6698_s23 = smov [#allocation13]  }
  0x8a   :  { %s79_s19 = sshll.u32 %s6697_s26, 4  ;;  %s104_s7 = sshll.u32 %s6698_s23, 4  ;;  %s80_s19 = int_to_ptr.vmem [resolvable:$true] %s79_s19  ;;  %s105_s7 = int_to_ptr.vmem [resolvable:$true] %s104_s7 }
  0x8b   :  { %s6537_s25 = scalar_lea.hbm %s7987_s4, 1024 }
  0x8c   :  { %p6538_p8 = scmp.ne.s32.totalorder %s7987_s4, %s6537_s25  ;;  %p6541_p9 = scmp.lt.u32.totalorder %s6537_s25, %s7987_s4 }
  0x8e   :  { %p6543_p10 = pnand %p6541_p9, %p6538_p8 }
  0x90   :  { %6546 = shalt.err (!%p6543_p10)
}
  0x91   :  { %s6547_s2 = scalar_lea.vmem %s80_s19, 1024  ;;  %p6552_p12 = scmp.lt.s32.totalorder %s80_s19, %s80_s19 }
  0x92   :  { %p6548_p11 = scmp.ne.s32.totalorder %s80_s19, %s6547_s2  ;;  %p6553_p13 = scmp.lt.s32.totalorder %s6547_s2, %s6547_s2 }
  0x94   :  { %p6554_p0 = por %p6553_p13, %p6552_p12 }
  0x96   :  { %p6555_p1 = pnand %p6554_p0, %p6548_p11 }
  0x98   :  { %6558 = shalt.err (!%p6555_p1)
}
  0x99   :  { %85 = dma.hbm_to_vmem [thread:$0]  %s7987_s4, 1024, %s80_s19, [#allocation9], %s6687_s20, %s6687_s20, %s6688_s21  }
  0x9a   :  { %s6559_s3 = scalar_lea.hbm %s7989_s6, 64 }
  0x9b   :  { %p6560_p2 = scmp.ne.s32.totalorder %s7989_s6, %s6559_s3  ;;  %p6563_p3 = scmp.lt.u32.totalorder %s6559_s3, %s7989_s6 }
  0x9d   :  { %p6565_p4 = pnand %p6563_p3, %p6560_p2 }
  0x9f   :  { %6568 = shalt.err (!%p6565_p4)
}
  0xa0   :  { %s6569_s0 = scalar_lea.vmem %s105_s7, 64  ;;  %p6574_p6 = scmp.lt.s32.totalorder %s105_s7, %s105_s7 }
  0xa1   :  { %p6570_p5 = scmp.ne.s32.totalorder %s105_s7, %s6569_s0  ;;  %p6575_p7 = scmp.lt.s32.totalorder %s6569_s0, %s6569_s0 }
  0xa3   :  { %p6576_p8 = por %p6575_p7, %p6574_p6 }
  0xa5   :  { %p6577_p9 = pnand %p6576_p8, %p6570_p5 }
  0xa7   :  { %6580 = shalt.err (!%p6577_p9)
}
  0xa8   :  { %107 = dma.hbm_to_vmem [thread:$0]  %s7989_s6, 64, %s105_s7, [#allocation12]  }
  0xa9   :  { %s6699_s21 = smov [#allocation16]   ;;  %s6700_s26 = smov [#allocation19]  }
  0xaa   :  { %s126_s1 = sshll.u32 %s6699_s21, 4  ;;  %s147_s19 = sshll.u32 %s6700_s26, 4  ;;  %s127_s1 = int_to_ptr.vmem [resolvable:$true] %s126_s1  ;;  %s6952_s19 = int_to_ptr.vmem [resolvable:$true] %s147_s19 }
  0xab   :  { %s6581_s24 = scalar_lea.hbm %s7991_s8, 128 }
  0xac   :  { %p6582_p10 = scmp.ne.s32.totalorder %s7991_s8, %s6581_s24  ;;  %p6585_p11 = scmp.lt.u32.totalorder %s6581_s24, %s7991_s8 }
  0xae   :  { %p6587_p12 = pnand %p6585_p11, %p6582_p10 }
  0xb0   :  { %6590 = shalt.err (!%p6587_p12)
}
  0xb1   :  { %s6591_s6 = scalar_lea.vmem %s127_s1, 128  ;;  %p6596_p0 = scmp.lt.s32.totalorder %s127_s1, %s127_s1 }
  0xb2   :  { %p6592_p13 = scmp.ne.s32.totalorder %s127_s1, %s6591_s6  ;;  %p6597_p1 = scmp.lt.s32.totalorder %s6591_s6, %s6591_s6 }
  0xb4   :  { %p6598_p2 = por %p6597_p1, %p6596_p0 }
  0xb6   :  { %p6599_p3 = pnand %p6598_p2, %p6592_p13 }
  0xb8   :  { %6602 = shalt.err (!%p6599_p3)
}
  0xb9   :  { %129 = dma.hbm_to_vmem [thread:$0]  %s7991_s8, 128, %s127_s1, [#allocation15]  }
  0xba   :  { %s6603_s27 = scalar_lea.hbm %s7993_s10, 64 }
  0xbb   :  { %p6604_p4 = scmp.ne.s32.totalorder %s7993_s10, %s6603_s27  ;;  %p6607_p5 = scmp.lt.u32.totalorder %s6603_s27, %s7993_s10 }
  0xbd   :  { %p6609_p6 = pnand %p6607_p5, %p6604_p4 }
  0xbf   :  { %6612 = shalt.err (!%p6609_p6)
}
  0xc0   :  { %s6613_s9 = scalar_lea.vmem %s6952_s19, 64  ;;  %p6618_p8 = scmp.lt.s32.totalorder %s6952_s19, %s6952_s19 }
  0xc1   :  { %p6614_p7 = scmp.ne.s32.totalorder %s6952_s19, %s6613_s9  ;;  %p6619_p9 = scmp.lt.s32.totalorder %s6613_s9, %s6613_s9 }
  0xc3   :  { %p6620_p10 = por %p6619_p9, %p6618_p8 }
  0xc5   :  { %p6621_p11 = pnand %p6620_p10, %p6614_p7 }
  0xc7   :  { %6624 = shalt.err (!%p6621_p11)
}
  0xc8   :  { %s6701_s8 = smov 32   ;;  %s6702_s14 = smov 2  }
  0xc9   :  { %153 = dma.hbm_to_vmem [thread:$0]  %s7993_s10, 64, %s6952_s19, [#allocation18], %s6701_s8, %s6701_s8, %s6702_s14  }
  0xca   :  { %s6703_s4 = smov [#allocation22]   ;;  %s6625_s26 = scalar_lea.hbm %s7995_s12, 32 }
  0xcb   :  { %s172_s20 = sshll.u32 %s6703_s4, 4  ;;  %p6626_p12 = scmp.ne.s32.totalorder %s7995_s12, %s6625_s26  ;;  %s173_s20 = int_to_ptr.vmem [resolvable:$true] %s172_s20 }
  0xcc   :  { %p6629_p13 = scmp.lt.u32.totalorder %s6625_s26, %s7995_s12 }
  0xce   :  { %p6631_p0 = pnand %p6629_p13, %p6626_p12 }
  0xd0   :  { %6634 = shalt.err (!%p6631_p0)
}
  0xd1   :  { %s6635_s5 = scalar_lea.vmem %s173_s20, 32  ;;  %p6640_p2 = scmp.lt.s32.totalorder %s173_s20, %s173_s20 }
  0xd2   :  { %p6636_p1 = scmp.ne.s32.totalorder %s173_s20, %s6635_s5  ;;  %p6641_p3 = scmp.lt.s32.totalorder %s6635_s5, %s6635_s5 }
  0xd4   :  { %p6642_p4 = por %p6641_p3, %p6640_p2 }
  0xd6   :  { %p6643_p5 = pnand %p6642_p4, %p6636_p1 }
  0xd8   :  { %6646 = shalt.err (!%p6643_p5)
}
  0xd9   :  { %175 = dma.hbm_to_vmem [thread:$0]  %s7995_s12, 32, %s173_s20, [#allocation21]  }
  0xda   :  { %6669 = dma.done.wait [#allocation3], 3200  }
  0xdb   :  { %6670 = vsyncadd [#allocation3], 4294964096 }
  0xdc   :  { %6671 = dma.done.wait [#allocation6], 2048  }
  0xdd   :  { %6672 = vsyncadd [#allocation6], 4294965248 }
  0xde   :  { %6673 = dma.done.wait [#allocation9], 2048  }
  0xdf   :  { %6674 = vsyncadd [#allocation9], 4294965248 }
  0xe0   :  { %6675 = dma.done.wait [#allocation12], 4160  }
  0xe1   :  { %6676 = vsyncadd [#allocation12], 4294963136 }
  0xe2   :  { %6677 = dma.done.wait [#allocation15], 8320  }
  0xe3   :  { %6678 = vsyncadd [#allocation15], 4294958976 }
  0xe4   :  { %6679 = dma.done.wait [#allocation18], 2112  }
  0xe5   :  { %6680 = vsyncadd [#allocation18], 4294965184 }
  0xe6   :  { %6681 = dma.done.wait [#allocation21], 3104  }
  0xe7   :  { %6682 = vsyncadd [#allocation21], 4294964192  ;;  %v5833_v0 = vld [vmem:[#allocation8] sm:$0xff]   ;;  %v5834_v1 = vld [vmem:[#allocation8 + $0x8] sm:$0xff]   ;;  %vm6706_vm0 = vmmov 0   ;;  %s6707_s28 = smov [#allocation23]  }
  0xe8   :  { %5400 = vmatprep.subr.bf16.mxu0 %v5833_v0  ;;  %v5835_v2 = vld [vmem:[#allocation8 + $0x10] sm:$0xff]   ;;  %v5836_v3 = vld [vmem:[#allocation8 + $0x18] sm:$0xff]   ;;  %v5837_v5 = vld [vmem:[#allocation8 + $0x20] sm:$0xff]   ;;  %s4960_s6 = sshll.u32 %s6707_s28, 4  ;;  %s4961_s6 = int_to_ptr.vmem [resolvable:$true] %s4960_s6 }
  0xe9   :  { %5401 = vmatpush3.bf16.msra.mxu0 %v5833_v0  ;;  %v6995_v4 = vld [vmem:[#allocation2] sm:$0xff]   ;;  %v5838_v6 = vld [vmem:[#allocation8 + $0x28] sm:$0xff]   ;;  %v5849_v7 = vld [vmem:[#allocation11] sm:$0xff]   ;;  %s6647_s7 = scalar_lea.vmem %s4961_s6, 256  ;;  %p6652_p7 = scmp.lt.s32.totalorder %s4961_s6, %s4961_s6 }
  0xea   :  { %5402 = vmatprep.subr.bf16.mxu0 %v5834_v1  ;;  %5416 = vmatprep.mubr.bf16.mxu0 %v6995_v4  ;;  %v5850_v8 = vld [vmem:[#allocation11 + $0x8] sm:$0xff]   ;;  %v5839_v9 = vld [vmem:[#allocation8 + $0x30] sm:$0xff]   ;;  %v5840_v11 = vld [vmem:[#allocation8 + $0x38] sm:$0xff]   ;;  %p6648_p6 = scmp.ne.s32.totalorder %s4961_s6, %s6647_s7  ;;  %p6653_p8 = scmp.lt.s32.totalorder %s6647_s7, %s6647_s7 }
  0xeb   :  { %5432 = vmatprep.subr.bf16.mxu1 %v5849_v7  ;;  %v5851_v10 = vld [vmem:[#allocation11 + $0x10] sm:$0xff]   ;;  %v5852_v12 = vld [vmem:[#allocation11 + $0x18] sm:$0xff]   ;;  %v5853_v13 = vld [vmem:[#allocation11 + $0x20] sm:$0xff]  }
  0xec   :  { %5433 = vmatpush3.bf16.msra.mxu1 %v5849_v7  ;;  %v6998_v14 = vld [vmem:[#allocation2 + $0x8] sm:$0xff]   ;;  %v7000_v15 = vld [vmem:[#allocation2 + $0x10] sm:$0xff]   ;;  %v5855_v17 = vld [vmem:[#allocation11 + $0x30] sm:$0xff]   ;;  %p6654_p9 = por %p6653_p8, %p6652_p7 }
  0xed   :  { %5403 = vmatpush3.bf16.msra.mxu0 %v5834_v1  ;;  %5434 = vmatprep.subr.bf16.mxu1 %v5850_v8  ;;  %v5854_v16 = vld [vmem:[#allocation11 + $0x28] sm:$0xff]   ;;  %v7004_v18 = vld [vmem:[#allocation2 + $0x18] sm:$0xff]   ;;  %v7006_v19 = vld [vmem:[#allocation2 + $0x20] sm:$0xff]  }
  0xee   :  { %5404 = vmatprep.subr.bf16.mxu0 %v5835_v2  ;;  %v7010_v20 = vld [vmem:[#allocation2 + $0x28] sm:$0xff]   ;;  %v7012_v21 = vld [vmem:[#allocation2 + $0x30] sm:$0xff]   ;;  %v7016_v22 = vld [vmem:[#allocation2 + $0x38] sm:$0xff]   ;;  %p6655_p10 = pnand %p6654_p9, %p6648_p6 }
  0xef   :  { %v5856_v23 = vld [vmem:[#allocation11 + $0x38] sm:$0xff]   ;;  %v5857_v24 = vld [vmem:[#allocation11 + $0x40] sm:$0xff]   ;;  %v5858_v25 = vld [vmem:[#allocation11 + $0x48] sm:$0xff]  }
  0xf0   :  { %5435 = vmatpush3.bf16.msra.mxu1 %v5850_v8  ;;  %v5859_v26 = vld [vmem:[#allocation11 + $0x50] sm:$0xff]   ;;  %v5860_v27 = vld [vmem:[#allocation11 + $0x58] sm:$0xff]   ;;  %v5861_v28 = vld [vmem:[#allocation11 + $0x60] sm:$0xff]  }
  0xf1   :  { %5405 = vmatpush3.bf16.msra.mxu0 %v5835_v2  ;;  %5436 = vmatprep.subr.bf16.mxu1 %v5851_v10  ;;  %v5862_v29 = vld [vmem:[#allocation11 + $0x68] sm:$0xff]   ;;  %v5863_v54 = vld [vmem:[#allocation11 + $0x70] sm:$0xff]   ;;  %v5864_v55 = vld [vmem:[#allocation11 + $0x78] sm:$0xff]  }
  0xf2   :  { %5406 = vmatprep.subr.bf16.mxu0 %v5836_v3  ;;  %v4994_v56 = vld [vmem:[#allocation13] ss:$0 sm:$0xff] }
  0xf4   :  { %5437 = vmatpush3.bf16.msra.mxu1 %v5851_v10 }
  0xf5   :  { %5407 = vmatpush3.bf16.msra.mxu0 %v5836_v3  ;;  %5438 = vmatprep.subr.bf16.mxu1 %v5852_v12 }
  0xf6   :  { %5408 = vmatprep.subr.bf16.mxu0 %v5837_v5 }
  0xf8   :  { %5439 = vmatpush3.bf16.msra.mxu1 %v5852_v12 }
  0xf9   :  { %5409 = vmatpush3.bf16.msra.mxu0 %v5837_v5  ;;  %5440 = vmatprep.subr.bf16.mxu1 %v5853_v13 }
  0xfa   :  { %5410 = vmatprep.subr.bf16.mxu0 %v5838_v6 }
  0xfc   :  { %5441 = vmatpush3.bf16.msra.mxu1 %v5853_v13 }
  0xfd   :  { %5411 = vmatpush3.bf16.msra.mxu0 %v5838_v6  ;;  %5442 = vmatprep.subr.bf16.mxu1 %v5854_v16 }
  0xfe   :  { %5412 = vmatprep.subr.bf16.mxu0 %v5839_v9 }
 0x100   :  { %5443 = vmatpush3.bf16.msra.mxu1 %v5854_v16 }
 0x101   :  { %5413 = vmatpush3.bf16.msra.mxu0 %v5839_v9  ;;  %5444 = vmatprep.subr.bf16.mxu1 %v5855_v17 }
 0x102   :  { %5414 = vmatprep.subr.bf16.mxu0 %v5840_v11 }
 0x104   :  { %5445 = vmatpush3.bf16.msra.mxu1 %v5855_v17 }
 0x105   :  { %5415 = vmatpush3.bf16.msra.mxu0 %v5840_v11  ;;  %5446 = vmatprep.subr.bf16.mxu1 %v5856_v23 }
 0x106   :  { %5464 = vmatprep.subr.bf16.mxu0 %v5857_v24 }
 0x108   :  { %5417 = vmatmul.mubr.bf16.vlgmr.msra.gmra.mrb[0].mxu0 %v6998_v14  ;;  %5447 = vmatpush3.bf16.msra.mxu1 %v5856_v23 }
 0x109   :  { %5420 = vmatprep.mubr.bf16.mxu0 %v7000_v15  ;;  %5465 = vmatpush3.bf16.msra.mxu0 %v5857_v24 }
 0x10a   :  { %5466 = vmatprep.subr.bf16.mxu0 %v5858_v25 }
 0x10d   :  { %5467 = vmatpush3.bf16.msra.mxu0 %v5858_v25 }
 0x10e   :  { %5468 = vmatprep.subr.bf16.mxu0 %v5859_v26 }
 0x110   :  { %5421 = vmatmul.mubr.bf16.gmra.mrb[4].mxu0 %v7004_v18 }
 0x111   :  { %5424 = vmatprep.mubr.bf16.mxu0 %v7006_v19  ;;  %5469 = vmatpush3.bf16.msra.mxu0 %v5859_v26 }
 0x112   :  { %5470 = vmatprep.subr.bf16.mxu0 %v5860_v27 }
 0x115   :  { %5471 = vmatpush3.bf16.msra.mxu0 %v5860_v27 }
 0x116   :  { %5472 = vmatprep.subr.bf16.mxu0 %v5861_v28 }
 0x118   :  { %5425 = vmatmul.mubr.bf16.gmra.mrb[8].mxu0 %v7010_v20 }
 0x119   :  { %5428 = vmatprep.mubr.bf16.mxu0 %v7012_v21  ;;  %5473 = vmatpush3.bf16.msra.mxu0 %v5861_v28 }
 0x11a   :  { %5474 = vmatprep.subr.bf16.mxu0 %v5862_v29 }
 0x11d   :  { %5475 = vmatpush3.bf16.msra.mxu0 %v5862_v29 }
 0x11e   :  { %5476 = vmatprep.subr.bf16.mxu0 %v5863_v54 }
 0x120   :  { %5429 = vmatmul.mubr.bf16.gmra.mrb[12].mxu0 %v7016_v22 }
 0x121   :  { %5477 = vmatpush3.bf16.msra.mxu0 %v5863_v54 }
 0x122   :  { %5478 = vmatprep.subr.bf16.mxu0 %v5864_v55 }
 0x125   :  { %5479 = vmatpush3.bf16.msra.mxu0 %v5864_v55 }
 0x1db   :  { %v5418_v30 = vpop.f32.mrb[0].mxu0 }
 0x1dc   :  { %v495_v31 = vpop.f32.mrb[1].mxu0 }
 0x1dd   :  { %v5419_v32 = vpop.f32.mrb[2].mxu0 }
 0x1de   :  { %v559_v33 = vpack.c.bf16 %v5419_v32, %v5418_v30  ;;  %v498_v34 = vpop.f32.mrb[3].mxu0 }
 0x1df   :  { %v558_v35 = vpack.c.bf16 %v498_v34, %v495_v31 }
 0x1e1   :  { %5448 = vmatprep.mubr.bf16.mxu1 %v558_v35 }
 0x1e2   :  { %5449 = vmatmul.mubr.bf16.vlgmr.msra.gmra.mrb[0].mxu1 %v559_v33 }
 0x1e3   :  { %v5422_v36 = vpop.f32.mrb[4].mxu0 }
 0x1e4   :  { %v511_v37 = vpop.f32.mrb[5].mxu0 }
 0x1e5   :  { %v5423_v38 = vpop.f32.mrb[6].mxu0 }
 0x1e6   :  { %v561_v39 = vpack.c.bf16 %v5423_v38, %v5422_v36  ;;  %v514_v40 = vpop.f32.mrb[7].mxu0 }
 0x1e7   :  { %v560_v41 = vpack.c.bf16 %v514_v40, %v511_v37 }
 0x1e9   :  { %5452 = vmatprep.mubr.bf16.mxu1 %v560_v41 }
 0x1ea   :  { %5453 = vmatmul.mubr.bf16.gmra.mrb[4].mxu1 %v561_v39 }
 0x1eb   :  { %v5426_v42 = vpop.f32.mrb[8].mxu0 }
 0x1ec   :  { %v527_v43 = vpop.f32.mrb[9].mxu0 }
 0x1ed   :  { %v5427_v44 = vpop.f32.mrb[10].mxu0 }
 0x1ee   :  { %v563_v45 = vpack.c.bf16 %v5427_v44, %v5426_v42  ;;  %v530_v46 = vpop.f32.mrb[11].mxu0 }
 0x1ef   :  { %v562_v47 = vpack.c.bf16 %v530_v46, %v527_v43 }
 0x1f1   :  { %5456 = vmatprep.mubr.bf16.mxu1 %v562_v47 }
 0x1f2   :  { %5457 = vmatmul.mubr.bf16.gmra.mrb[8].mxu1 %v563_v45 }
 0x1f3   :  { %v5430_v48 = vpop.f32.mrb[12].mxu0 }
 0x1f4   :  { %v543_v49 = vpop.f32.mrb[13].mxu0 }
 0x1f5   :  { %v5431_v50 = vpop.f32.mrb[14].mxu0 }
 0x1f6   :  { %v565_v51 = vpack.c.bf16 %v5431_v50, %v5430_v48  ;;  %v546_v52 = vpop.f32.mrb[15].mxu0 }
 0x1f7   :  { %v564_v53 = vpack.c.bf16 %v546_v52, %v543_v49 }
 0x1f9   :  { %5460 = vmatprep.mubr.bf16.mxu1 %v564_v53 }
 0x1fa   :  { %5461 = vmatmul.mubr.bf16.gmra.mrb[12].mxu1 %v565_v51 }
 0x1fb   :  { %5512 = vmatprep.mubr.bf16.mxu1 %v6995_v4 }
 0x2b5   :  { %v5450_v57 = vpop.f32.mrb[0].mxu1 }
 0x2b6   :  { %v661_v58 = vadd.f32 %v5450_v57, %v4994_v56  ;;  %v652_v59 = vpop.f32.mrb[1].mxu1  ;;  %v5865_v57 = vld [vmem:[#allocation11 + $0x80] sm:$0xff]  }
 0x2b7   :  { %v653_v60 = vadd.f32 %v4994_v56, %v652_v59  ;;  %v5451_v61 = vpop.f32.mrb[2].mxu1  ;;  %5528 = vmatprep.subr.bf16.mxu0 %v5865_v57  ;;  %v5867_v59 = vld [vmem:[#allocation11 + $0x90] sm:$0xff]  }
 0x2b8   :  { %v664_v62 = vadd.f32 %v5451_v61, %v4994_v56  ;;  %v655_v63 = vpop.f32.mrb[3].mxu1  ;;  %v717_v1 = vmax.f32 %v661_v58, 0.0  ;;  %v5866_v58 = vld [vmem:[#allocation11 + $0x88] sm:$0xff]  }
 0x2b9   :  { %v656_v0 = vadd.f32 %v4994_v56, %v655_v63  ;;  %v715_v3 = vmax.f32 %v653_v60, 0.0  ;;  %v5868_v60 = vld [vmem:[#allocation11 + $0x98] sm:$0xff]   ;;  %v5870_v61 = vld [vmem:[#allocation11 + $0xa8] sm:$0xff]  }
 0x2ba   :  { %v718_v2 = vmax.f32 %v664_v62, 0.0  ;;  %v5871_v62 = vld [vmem:[#allocation11 + $0xb0] sm:$0xff]  }
 0x2bb   :  { %v716_v5 = vmax.f32 %v656_v0, 0.0  ;;  %v5003_v0 = vld [vmem:[#allocation13 + $0x1] ss:$0 sm:$0xff] }
 0x2bc   :  { %v732_v4 = vpack.c.bf16 %v718_v2, %v717_v1 }
 0x2bd   :  { %v731_v6 = vpack.c.bf16 %v716_v5, %v715_v3  ;;  %v5454_v7 = vpop.f32.mrb[4].mxu1 }
 0x2be   :  { %v677_v8 = vadd.f32 %v5454_v7, %v4994_v56  ;;  %v668_v9 = vpop.f32.mrb[5].mxu1 }
 0x2bf   :  { %v669_v10 = vadd.f32 %v4994_v56, %v668_v9  ;;  %v5455_v11 = vpop.f32.mrb[6].mxu1  ;;  %5480 = vmatprep.mubr.bf16.mxu0 %v731_v6 }
 0x2c0   :  { %v680_v12 = vadd.f32 %v5455_v11, %v4994_v56  ;;  %v671_v13 = vpop.f32.mrb[7].mxu1  ;;  %5481 = vmatmul.mubr.bf16.vlgmr.msra.gmra.mrb[16].mxu0 %v732_v4  ;;  %v721_v17 = vmax.f32 %v677_v8, 0.0 }
 0x2c1   :  { %v672_v16 = vadd.f32 %v4994_v56, %v671_v13  ;;  %v719_v24 = vmax.f32 %v669_v10, 0.0  ;;  %5529 = vmatpush3.bf16.msra.mxu0 %v5865_v57 }
 0x2c2   :  { %v722_v23 = vmax.f32 %v680_v12, 0.0  ;;  %5530 = vmatprep.subr.bf16.mxu0 %v5866_v58 }
 0x2c3   :  { %v720_v25 = vmax.f32 %v672_v16, 0.0 }
 0x2c4   :  { %v734_v26 = vpack.c.bf16 %v722_v23, %v721_v17 }
 0x2c5   :  { %v733_v27 = vpack.c.bf16 %v720_v25, %v719_v24  ;;  %v5458_v28 = vpop.f32.mrb[8].mxu1  ;;  %5531 = vmatpush3.bf16.msra.mxu0 %v5866_v58 }
 0x2c6   :  { %v693_v29 = vadd.f32 %v5458_v28, %v4994_v56  ;;  %v684_v30 = vpop.f32.mrb[9].mxu1  ;;  %5532 = vmatprep.subr.bf16.mxu0 %v5867_v59 }
 0x2c7   :  { %v685_v31 = vadd.f32 %v4994_v56, %v684_v30  ;;  %v5459_v32 = vpop.f32.mrb[10].mxu1  ;;  %5484 = vmatprep.mubr.bf16.mxu0 %v733_v27 }
 0x2c8   :  { %v696_v33 = vadd.f32 %v5459_v32, %v4994_v56  ;;  %v687_v34 = vpop.f32.mrb[11].mxu1  ;;  %5485 = vmatmul.mubr.bf16.gmra.mrb[20].mxu0 %v734_v26  ;;  %v725_v36 = vmax.f32 %v693_v29, 0.0 }
 0x2c9   :  { %v688_v35 = vadd.f32 %v4994_v56, %v687_v34  ;;  %v723_v38 = vmax.f32 %v685_v31, 0.0  ;;  %5533 = vmatpush3.bf16.msra.mxu0 %v5867_v59 }
 0x2ca   :  { %v726_v37 = vmax.f32 %v696_v33, 0.0  ;;  %5534 = vmatprep.subr.bf16.mxu0 %v5868_v60 }
 0x2cb   :  { %v724_v39 = vmax.f32 %v688_v35, 0.0 }
 0x2cc   :  { %v736_v40 = vpack.c.bf16 %v726_v37, %v725_v36 }
 0x2cd   :  { %v735_v41 = vpack.c.bf16 %v724_v39, %v723_v38  ;;  %v5462_v42 = vpop.f32.mrb[12].mxu1  ;;  %5535 = vmatpush3.bf16.msra.mxu0 %v5868_v60 }
 0x2ce   :  { %v709_v43 = vadd.f32 %v5462_v42, %v4994_v56  ;;  %v700_v44 = vpop.f32.mrb[13].mxu1 }
 0x2cf   :  { %v701_v45 = vadd.f32 %v4994_v56, %v700_v44  ;;  %v5463_v46 = vpop.f32.mrb[14].mxu1  ;;  %5488 = vmatprep.mubr.bf16.mxu0 %v735_v41 }
 0x2d0   :  { %v712_v47 = vadd.f32 %v5463_v46, %v4994_v56  ;;  %v703_v48 = vpop.f32.mrb[15].mxu1  ;;  %5489 = vmatmul.mubr.bf16.gmra.mrb[24].mxu0 %v736_v40  ;;  %v729_v50 = vmax.f32 %v709_v43, 0.0 }
 0x2d1   :  { %v704_v49 = vadd.f32 %v4994_v56, %v703_v48  ;;  %v727_v52 = vmax.f32 %v701_v45, 0.0  ;;  %v5869_v56 = vld [vmem:[#allocation11 + $0xa0] sm:$0xff]  }
 0x2d2   :  { %v730_v51 = vmax.f32 %v712_v47, 0.0  ;;  %5536 = vmatprep.subr.bf16.mxu0 %v5869_v56  ;;  %v5872_v47 = vld [vmem:[#allocation11 + $0xb8] sm:$0xff]   ;;  %v5873_v48 = vld [vmem:[#allocation11 + $0xc0] sm:$0xff]  }
 0x2d3   :  { %v728_v53 = vmax.f32 %v704_v49, 0.0  ;;  %5537 = vmatpush3.bf16.msra.mxu0 %v5869_v56  ;;  %v5874_v49 = vld [vmem:[#allocation11 + $0xc8] sm:$0xff]  }
 0x2d4   :  { %v738_v54 = vpack.c.bf16 %v730_v51, %v729_v50  ;;  %5538 = vmatprep.subr.bf16.mxu0 %v5870_v61 }
 0x2d5   :  { %v737_v55 = vpack.c.bf16 %v728_v53, %v727_v52 }
 0x2d7   :  { %5492 = vmatprep.mubr.bf16.mxu0 %v737_v55  ;;  %5539 = vmatpush3.bf16.msra.mxu0 %v5870_v61 }
 0x2d8   :  { %5493 = vmatmul.mubr.bf16.gmra.mrb[28].mxu0 %v738_v54  ;;  %5540 = vmatprep.subr.bf16.mxu0 %v5871_v62 }
 0x2db   :  { %5541 = vmatpush3.bf16.msra.mxu0 %v5871_v62 }
 0x2dc   :  { %5542 = vmatprep.subr.bf16.mxu0 %v5872_v47 }
 0x2df   :  { %5543 = vmatpush3.bf16.msra.mxu0 %v5872_v47 }
 0x393   :  { %v5482_v63 = vpop.f32.mrb[16].mxu0 }
 0x394   :  { %v825_v1 = vpop.f32.mrb[17].mxu0  ;;  %v834_v3 = vadd.f32 %v5482_v63, %v5003_v0 }
 0x395   :  { %v5483_v2 = vpop.f32.mrb[18].mxu0  ;;  %v826_v6 = vadd.f32 %v5003_v0, %v825_v1 }
 0x396   :  { %v837_v5 = vadd.f32 %v5483_v2, %v5003_v0  ;;  %v828_v4 = vpop.f32.mrb[19].mxu0 }
 0x397   :  { %v829_v7 = vadd.f32 %v5003_v0, %v828_v4 }
 0x398   :  { %v889_v8 = vpack.c.bf16 %v837_v5, %v834_v3 }
 0x399   :  { %v888_v9 = vpack.c.bf16 %v829_v7, %v826_v6  ;;  %v5879_v7 = vld [vmem:[#allocation11 + $0xf0] sm:$0xff]  }
 0x39b   :  { %v5486_v10 = vpop.f32.mrb[20].mxu0  ;;  %5496 = vmatprep.subr.bf16.mxu1 %v888_v9 }
 0x39c   :  { %v841_v11 = vpop.f32.mrb[21].mxu0  ;;  %5497 = vmatpush3.bf16.msra.mxu1 %v888_v9  ;;  %v850_v13 = vadd.f32 %v5486_v10, %v5003_v0  ;;  %v5881_v9 = vld [vmem:[#allocation14] ss:$16 sps:$4 sm:$0xff]   ;;  %v5883_v10 = vld [vmem:[#allocation14 + $0x4] ss:$16 sps:$4 sm:$0xff]  }
 0x39d   :  { %v5487_v12 = vpop.f32.mrb[22].mxu0  ;;  %5498 = vmatprep.subr.bf16.mxu1 %v889_v8  ;;  %v842_v23 = vadd.f32 %v5003_v0, %v841_v11  ;;  %v5886_v11 = vld [vmem:[#allocation14 + $0xc] ss:$16 sps:$4 sm:$0xff]   ;;  %1598 = vmatprep.subr.bf16.mxu0 %v5883_v10  ;;  %v5908_v10 = vld [vmem:[#allocation14 + $0x88] ss:$16 sps:$4 sm:$0xff]  }
 0x39e   :  { %v853_v16 = vadd.f32 %v5487_v12, %v5003_v0  ;;  %v844_v17 = vpop.f32.mrb[23].mxu0  ;;  %v5889_v12 = vld [vmem:[#allocation14 + $0x24] ss:$16 sps:$4 sm:$0xff]  }
 0x39f   :  { %v845_v24 = vadd.f32 %v5003_v0, %v844_v17  ;;  %v5893_v17 = vld [vmem:[#allocation14 + $0x40] ss:$16 sps:$4 sm:$0xff]  }
 0x3a0   :  { %v891_v25 = vpack.c.bf16 %v853_v16, %v850_v13  ;;  %5499 = vmatpush3.bf16.msra.mxu1 %v889_v8  ;;  %v5880_v8 = vld [vmem:[#allocation11 + $0xf8] sm:$0xff]   ;;  %v5887_v13 = vld [vmem:[#allocation14 + $0x20] ss:$16 sps:$4 sm:$0xff]  }
 0x3a1   :  { %v890_v26 = vpack.c.bf16 %v845_v24, %v842_v23  ;;  %v5895_v16 = vld [vmem:[#allocation14 + $0x44] ss:$16 sps:$4 sm:$0xff]   ;;  %v5899_v24 = vld [vmem:[#allocation14 + $0x60] ss:$16 sps:$4 sm:$0xff]  }
 0x3a2   :  { %v5901_v23 = vld [vmem:[#allocation14 + $0x64] ss:$16 sps:$4 sm:$0xff]  }
 0x3a3   :  { %v5490_v27 = vpop.f32.mrb[24].mxu0  ;;  %5500 = vmatprep.subr.bf16.mxu1 %v890_v26 }
 0x3a4   :  { %v857_v28 = vpop.f32.mrb[25].mxu0  ;;  %5501 = vmatpush3.bf16.msra.mxu1 %v890_v26  ;;  %v866_v30 = vadd.f32 %v5490_v27, %v5003_v0  ;;  %v5905_v26 = vld [vmem:[#allocation14 + $0x80] ss:$16 sps:$4 sm:$0xff]   ;;  %v5913_v27 = vld [vmem:[#allocation14 + $0xa4] ss:$16 sps:$4 sm:$0xff]  }
 0x3a5   :  { %v5491_v29 = vpop.f32.mrb[26].mxu0  ;;  %5502 = vmatprep.subr.bf16.mxu1 %v891_v25  ;;  %v858_v33 = vadd.f32 %v5003_v0, %v857_v28  ;;  %v5911_v28 = vld [vmem:[#allocation14 + $0xa0] ss:$16 sps:$4 sm:$0xff]  }
 0x3a6   :  { %v869_v31 = vadd.f32 %v5491_v29, %v5003_v0  ;;  %v860_v32 = vpop.f32.mrb[27].mxu0  ;;  %v7027_v29 = vld [vmem:[#allocation13 + $0x2] ss:$0 sm:$0xff] }
 0x3a7   :  { %v861_v34 = vadd.f32 %v5003_v0, %v860_v32 }
 0x3a8   :  { %v893_v35 = vpack.c.bf16 %v869_v31, %v866_v30  ;;  %5503 = vmatpush3.bf16.msra.mxu1 %v891_v25  ;;  %v5907_v25 = vld [vmem:[#allocation14 + $0x84] ss:$16 sps:$4 sm:$0xff]  }
 0x3a9   :  { %v892_v36 = vpack.c.bf16 %v861_v34, %v858_v33 }
 0x3ab   :  { %v5494_v37 = vpop.f32.mrb[28].mxu0  ;;  %5504 = vmatprep.subr.bf16.mxu1 %v892_v36 }
 0x3ac   :  { %v873_v38 = vpop.f32.mrb[29].mxu0  ;;  %5505 = vmatpush3.bf16.msra.mxu1 %v892_v36  ;;  %v882_v40 = vadd.f32 %v5494_v37, %v5003_v0 }
 0x3ad   :  { %v5495_v39 = vpop.f32.mrb[30].mxu0  ;;  %5506 = vmatprep.subr.bf16.mxu1 %v893_v35  ;;  %v874_v43 = vadd.f32 %v5003_v0, %v873_v38 }
 0x3ae   :  { %v885_v41 = vadd.f32 %v5495_v39, %v5003_v0  ;;  %v876_v42 = vpop.f32.mrb[31].mxu0 }
 0x3af   :  { %v877_v44 = vadd.f32 %v5003_v0, %v876_v42 }
 0x3b0   :  { %v895_v45 = vpack.c.bf16 %v885_v41, %v882_v40  ;;  %5507 = vmatpush3.bf16.msra.mxu1 %v893_v35 }
 0x3b1   :  { %v894_v46 = vpack.c.bf16 %v877_v44, %v874_v43 }
 0x3b3   :  { %5508 = vmatprep.subr.bf16.mxu1 %v894_v46 }
 0x3b4   :  { %5509 = vmatpush3.bf16.msra.mxu1 %v894_v46 }
 0x3b5   :  { %5510 = vmatprep.subr.bf16.mxu1 %v895_v45 }
 0x3b8   :  { %5511 = vmatpush3.bf16.msra.mxu1 %v895_v45  ;;  %v5884_v45 = vld [vmem:[#allocation14 + $0x8] ss:$16 sps:$4 sm:$0xff]  }
 0x3b9   :  { %5560 = vmatprep.subr.bf16.mxu1 %v5873_v48 }
 0x3bb   :  { %5513 = vmatmul.mubr.bf16.vlgmr.msra.gmra.mrb[16].mxu1 %v6998_v14  ;;  %v5875_v14 = vld [vmem:[#allocation11 + $0xd0] sm:$0xff]  }
 0x3bc   :  { %5516 = vmatprep.mubr.bf16.mxu1 %v7000_v15  ;;  %5561 = vmatpush3.bf16.msra.mxu1 %v5873_v48  ;;  %v5876_v15 = vld [vmem:[#allocation11 + $0xd8] sm:$0xff]   ;;  %v5892_v48 = vld [vmem:[#allocation14 + $0x2c] ss:$16 sps:$4 sm:$0xff]  }
 0x3bd   :  { %5562 = vmatprep.subr.bf16.mxu1 %v5874_v49 }
 0x3c0   :  { %5563 = vmatpush3.bf16.msra.mxu1 %v5874_v49 }
 0x3c1   :  { %5564 = vmatprep.subr.bf16.mxu1 %v5875_v14 }
 0x3c3   :  { %5517 = vmatmul.mubr.bf16.gmra.mrb[20].mxu1 %v7004_v18  ;;  %v5877_v18 = vld [vmem:[#allocation11 + $0xe0] sm:$0xff]  }
 0x3c4   :  { %5520 = vmatprep.mubr.bf16.mxu1 %v7006_v19  ;;  %5565 = vmatpush3.bf16.msra.mxu1 %v5875_v14  ;;  %v5878_v19 = vld [vmem:[#allocation11 + $0xe8] sm:$0xff]  }
 0x3c5   :  { %5566 = vmatprep.subr.bf16.mxu1 %v5876_v15 }
 0x3c8   :  { %5567 = vmatpush3.bf16.msra.mxu1 %v5876_v15 }
 0x3c9   :  { %5568 = vmatprep.subr.bf16.mxu1 %v5877_v18 }
 0x3cb   :  { %5521 = vmatmul.mubr.bf16.gmra.mrb[24].mxu1 %v7010_v20 }
 0x3cc   :  { %5524 = vmatprep.mubr.bf16.mxu1 %v7012_v21  ;;  %5569 = vmatpush3.bf16.msra.mxu1 %v5877_v18 }
 0x3cd   :  { %5570 = vmatprep.subr.bf16.mxu1 %v5878_v19 }
 0x3d0   :  { %5571 = vmatpush3.bf16.msra.mxu1 %v5878_v19 }
 0x3d1   :  { %5572 = vmatprep.subr.bf16.mxu1 %v5879_v7 }
 0x3d3   :  { %5525 = vmatmul.mubr.bf16.gmra.mrb[28].mxu1 %v7016_v22 }
 0x3d4   :  { %5573 = vmatpush3.bf16.msra.mxu1 %v5879_v7 }
 0x3d5   :  { %5574 = vmatprep.subr.bf16.mxu1 %v5880_v8 }
 0x3d8   :  { %5575 = vmatpush3.bf16.msra.mxu1 %v5880_v8 }
 0x3d9   :  { %1711 = vmatprep.subr.bf16.mxu1 %v5886_v11 }
 0x48e   :  { %v5514_v20 = vpop.f32.mrb[16].mxu1 }
 0x48f   :  { %v966_v21 = vpop.f32.mrb[17].mxu1 }
 0x490   :  { %v5515_v22 = vpop.f32.mrb[18].mxu1 }
 0x491   :  { %v1030_v50 = vpack.c.bf16 %v5515_v22, %v5514_v20  ;;  %v969_v51 = vpop.f32.mrb[19].mxu1  ;;  %v5890_v22 = vld [vmem:[#allocation14 + $0x28] ss:$16 sps:$4 sm:$0xff]  }
 0x492   :  { %v1029_v52 = vpack.c.bf16 %v969_v51, %v966_v21  ;;  %v5898_v51 = vld [vmem:[#allocation14 + $0x4c] ss:$16 sps:$4 sm:$0xff]  }
 0x494   :  { %5544 = vmatprep.mubr.bf16.mxu0 %v1029_v52 }
 0x495   :  { %5545 = vmatmul.mubr.bf16.vlgmr.msra.gmra.mrb[32].mxu0 %v1030_v50 }
 0x496   :  { %v5518_v53 = vpop.f32.mrb[20].mxu1  ;;  %1599 = vmatpush1.bf16.msra.mxu0 %v5881_v9 }
 0x497   :  { %v982_v54 = vpop.f32.mrb[21].mxu1  ;;  %1600 = vmatprep.subr.bf16.mxu0 %v5889_v12 }
 0x498   :  { %v5519_v55 = vpop.f32.mrb[22].mxu1 }
 0x499   :  { %v1032_v57 = vpack.c.bf16 %v5519_v55, %v5518_v53  ;;  %v985_v58 = vpop.f32.mrb[23].mxu1 }
 0x49a   :  { %v1031_v59 = vpack.c.bf16 %v985_v58, %v982_v54  ;;  %1601 = vmatpush1.bf16.msra.mxu0 %v5887_v13  ;;  %v5916_v13 = vld [vmem:[#allocation14 + $0xac] ss:$16 sps:$4 sm:$0xff]  }
 0x49b   :  { %1602 = vmatprep.subr.bf16.mxu0 %v5895_v16 }
 0x49c   :  { %5548 = vmatprep.mubr.bf16.mxu0 %v1031_v59 }
 0x49d   :  { %5549 = vmatmul.mubr.bf16.gmra.mrb[36].mxu0 %v1032_v57  ;;  %v5896_v57 = vld [vmem:[#allocation14 + $0x48] ss:$16 sps:$4 sm:$0xff]  }
 0x49e   :  { %v5522_v60 = vpop.f32.mrb[24].mxu1  ;;  %1603 = vmatpush1.bf16.msra.mxu0 %v5893_v17 }
 0x49f   :  { %v998_v56 = vpop.f32.mrb[25].mxu1  ;;  %1604 = vmatprep.subr.bf16.mxu0 %v5901_v23 }
 0x4a0   :  { %v5523_v61 = vpop.f32.mrb[26].mxu1 }
 0x4a1   :  { %v1034_v62 = vpack.c.bf16 %v5523_v61, %v5522_v60  ;;  %v1001_v63 = vpop.f32.mrb[27].mxu1  ;;  %v5904_v60 = vld [vmem:[#allocation14 + $0x6c] ss:$16 sps:$4 sm:$0xff]  }
 0x4a2   :  { %v1033_v0 = vpack.c.bf16 %v1001_v63, %v998_v56  ;;  %1605 = vmatpush1.bf16.msra.mxu0 %v5899_v24 }
 0x4a3   :  { %1606 = vmatprep.subr.bf16.mxu0 %v5907_v25 }
 0x4a4   :  { %5552 = vmatprep.mubr.bf16.mxu0 %v1033_v0 }
 0x4a5   :  { %5553 = vmatmul.mubr.bf16.gmra.mrb[40].mxu0 %v1034_v62 }
 0x4a6   :  { %v5526_v1 = vpop.f32.mrb[28].mxu1  ;;  %1607 = vmatpush1.bf16.msra.mxu0 %v5905_v26 }
 0x4a7   :  { %v1014_v2 = vpop.f32.mrb[29].mxu1  ;;  %1608 = vmatprep.subr.bf16.mxu0 %v5913_v27 }
 0x4a8   :  { %v5527_v3 = vpop.f32.mrb[30].mxu1 }
 0x4a9   :  { %v1036_v5 = vpack.c.bf16 %v5527_v3, %v5526_v1  ;;  %v1017_v4 = vpop.f32.mrb[31].mxu1  ;;  %v5902_v3 = vld [vmem:[#allocation14 + $0x68] ss:$16 sps:$4 sm:$0xff]  }
 0x4aa   :  { %v1035_v6 = vpack.c.bf16 %v1017_v4, %v1014_v2  ;;  %1609 = vmatpush1.bf16.msra.mxu0 %v5911_v28  ;;  %v5910_v4 = vld [vmem:[#allocation14 + $0x8c] ss:$16 sps:$4 sm:$0xff]   ;;  %v5914_v28 = vld [vmem:[#allocation14 + $0xa8] ss:$16 sps:$4 sm:$0xff]  }
 0x4ac   :  { %5556 = vmatprep.mubr.bf16.mxu0 %v1035_v6 }
 0x4ad   :  { %5557 = vmatmul.mubr.bf16.gmra.mrb[44].mxu0 %v1036_v5 }
 0x568   :  { %v5546_v30 = vpop.f32.mrb[32].mxu0 }
 0x569   :  { %v1132_v31 = vadd.f32 %v5546_v30, %v7027_v29  ;;  %v1123_v32 = vpop.f32.mrb[33].mxu0 }
 0x56a   :  { %v1124_v33 = vadd.f32 %v7027_v29, %v1123_v32  ;;  %v5547_v34 = vpop.f32.mrb[34].mxu0 }
 0x56b   :  { %v1135_v35 = vadd.f32 %v5547_v34, %v7027_v29  ;;  %v1126_v36 = vpop.f32.mrb[35].mxu0  ;;  %v1188_v38 = vmax.f32 %v1132_v31, 0.0  ;;  %v5919_v34 = vld [vmem:[#allocation14 + $0xc4] ss:$16 sps:$4 sm:$0xff]  }
 0x56c   :  { %v1127_v37 = vadd.f32 %v7027_v29, %v1126_v36  ;;  %v1186_v40 = vmax.f32 %v1124_v33, 0.0  ;;  %v5917_v36 = vld [vmem:[#allocation14 + $0xc0] ss:$16 sps:$4 sm:$0xff]   ;;  %1610 = vmatprep.subr.bf16.mxu0 %v5919_v34 }
 0x56d   :  { %v1189_v39 = vmax.f32 %v1135_v35, 0.0  ;;  %v5922_v35 = vld [vmem:[#allocation14 + $0xcc] ss:$16 sps:$4 sm:$0xff]   ;;  %1611 = vmatpush1.bf16.msra.mxu0 %v5917_v36  ;;  %v5945_v36 = vld [vmem:[#allocation2 + $0x80] sm:$0xff]  }
 0x56e   :  { %v1187_v41 = vmax.f32 %v1127_v37, 0.0  ;;  %v5920_v37 = vld [vmem:[#allocation14 + $0xc8] ss:$16 sps:$4 sm:$0xff]   ;;  %v5943_v34 = vld [vmem:[#allocation10 + $0x30] sm:$0xff]  }
 0x56f   :  { %v1203_v42 = vpack.c.bf16 %v1189_v39, %v1188_v38  ;;  %v5925_v38 = vld [vmem:[#allocation14 + $0xe4] ss:$16 sps:$4 sm:$0xff]   ;;  %v5923_v39 = vld [vmem:[#allocation14 + $0xe0] ss:$16 sps:$4 sm:$0xff]  }
 0x570   :  { %v1202_v43 = vpack.c.bf16 %v1187_v41, %v1186_v40  ;;  %v5550_v44 = vpop.f32.mrb[36].mxu0  ;;  %v5926_v40 = vld [vmem:[#allocation14 + $0xe8] ss:$16 sps:$4 sm:$0xff]   ;;  %1612 = vmatprep.subr.bf16.mxu0 %v5925_v38  ;;  %v7998_v41 = vmov 0  }
 0x571   :  { %v1148_v46 = vadd.f32 %v5550_v44, %v7027_v29  ;;  %v1139_v47 = vpop.f32.mrb[37].mxu0  ;;  %1613 = vmatpush1.bf16.msra.mxu0 %v5923_v39  ;;  %1630 = vmatprep.mubr.bf16.mxu0 %v7998_v41  ;;  %v7047_v44 = vld [vmem:[#allocation13 + $0x3] ss:$0 sm:$0xff] }
 0x572   :  { %v1140_v49 = vadd.f32 %v7027_v29, %v1139_v47  ;;  %v5551_v14 = vpop.f32.mrb[38].mxu0  ;;  %5576 = vmatprep.mubr.bf16.mxu1 %v1202_v43 }
 0x573   :  { %v1192_v15 = vmax.f32 %v1148_v46, 0.0  ;;  %v1151_v18 = vadd.f32 %v5551_v14, %v7027_v29  ;;  %v1142_v19 = vpop.f32.mrb[39].mxu0  ;;  %5577 = vmatmul.mubr.bf16.vlgmr.msra.gmra.mrb[32].mxu1 %v1203_v42  ;;  %v5929_v42 = vld [vmem:[#allocation17] sm:$0xff]  }
 0x574   :  { %v1190_v20 = vmax.f32 %v1140_v49, 0.0  ;;  %v1143_v21 = vadd.f32 %v7027_v29, %v1142_v19  ;;  %1712 = vmatpush1.bf16.msra.mxu1 %v5884_v45  ;;  %5592 = vmatprep.subr.bf16.mxu0 %v5929_v42 }
 0x575   :  { %v1193_v50 = vmax.f32 %v1151_v18, 0.0  ;;  %1713 = vmatprep.subr.bf16.mxu1 %v5892_v48 }
 0x576   :  { %v1191_v52 = vmax.f32 %v1143_v21, 0.0 }
 0x577   :  { %v1205_v53 = vpack.c.bf16 %v1193_v50, %v1192_v15 }
 0x578   :  { %v1204_v54 = vpack.c.bf16 %v1191_v52, %v1190_v20  ;;  %v5554_v55 = vpop.f32.mrb[40].mxu0  ;;  %1714 = vmatpush1.bf16.msra.mxu1 %v5890_v22  ;;  %v5930_v20 = vld [vmem:[#allocation17 + $0x8] sm:$0xff]  }
 0x579   :  { %v1164_v58 = vadd.f32 %v5554_v55, %v7027_v29  ;;  %v1155_v59 = vpop.f32.mrb[41].mxu0  ;;  %1715 = vmatprep.subr.bf16.mxu1 %v5898_v51 }
 0x57a   :  { %5580 = vmatprep.mubr.bf16.mxu1 %v1204_v54  ;;  %v1156_v56 = vadd.f32 %v7027_v29, %v1155_v59  ;;  %v5555_v61 = vpop.f32.mrb[42].mxu0  ;;  %v5931_v54 = vld [vmem:[#allocation17 + $0x10] sm:$0xff]  }
 0x57b   :  { %5581 = vmatmul.mubr.bf16.gmra.mrb[36].mxu1 %v1205_v53  ;;  %v1196_v62 = vmax.f32 %v1164_v58, 0.0  ;;  %v1167_v63 = vadd.f32 %v5555_v61, %v7027_v29  ;;  %v1158_v0 = vpop.f32.mrb[43].mxu0 }
 0x57c   :  { %v1194_v1 = vmax.f32 %v1156_v56, 0.0  ;;  %v1159_v2 = vadd.f32 %v7027_v29, %v1158_v0  ;;  %1716 = vmatpush1.bf16.msra.mxu1 %v5896_v57 }
 0x57d   :  { %v1197_v5 = vmax.f32 %v1167_v63, 0.0  ;;  %1717 = vmatprep.subr.bf16.mxu1 %v5904_v60  ;;  %v5932_v60 = vld [vmem:[#allocation17 + $0x18] sm:$0xff]  }
 0x57e   :  { %v1195_v6 = vmax.f32 %v1159_v2, 0.0 }
 0x57f   :  { %v1207_v7 = vpack.c.bf16 %v1197_v5, %v1196_v62 }
 0x580   :  { %v1206_v8 = vpack.c.bf16 %v1195_v6, %v1194_v1  ;;  %v5558_v9 = vpop.f32.mrb[44].mxu0  ;;  %1718 = vmatpush1.bf16.msra.mxu1 %v5902_v3  ;;  %v5933_v3 = vld [vmem:[#allocation17 + $0x20] sm:$0xff]  }
 0x581   :  { %v1180_v11 = vadd.f32 %v5558_v9, %v7027_v29  ;;  %v1171_v12 = vpop.f32.mrb[45].mxu0  ;;  %1719 = vmatprep.subr.bf16.mxu1 %v5910_v4 }
 0x582   :  { %5584 = vmatprep.mubr.bf16.mxu1 %v1206_v8  ;;  %v1172_v16 = vadd.f32 %v7027_v29, %v1171_v12  ;;  %v5559_v17 = vpop.f32.mrb[46].mxu0 }
 0x583   :  { %5585 = vmatmul.mubr.bf16.gmra.mrb[40].mxu1 %v1207_v7  ;;  %v1200_v23 = vmax.f32 %v1180_v11, 0.0  ;;  %v1183_v24 = vadd.f32 %v5559_v17, %v7027_v29  ;;  %v1174_v25 = vpop.f32.mrb[47].mxu0  ;;  %v5934_v7 = vld [vmem:[#allocation17 + $0x28] sm:$0xff]   ;;  %v5935_v17 = vld [vmem:[#allocation17 + $0x30] sm:$0xff]  }
 0x584   :  { %v1198_v26 = vmax.f32 %v1172_v16, 0.0  ;;  %v1175_v27 = vadd.f32 %v7027_v29, %v1174_v25  ;;  %1720 = vmatpush1.bf16.msra.mxu1 %v5908_v10  ;;  %v5928_v29 = vld [vmem:[#allocation14 + $0xec] ss:$16 sps:$4 sm:$0xff]  }
 0x585   :  { %v1201_v30 = vmax.f32 %v1183_v24, 0.0  ;;  %1721 = vmatprep.subr.bf16.mxu1 %v5916_v13 }
 0x586   :  { %v1199_v31 = vmax.f32 %v1175_v27, 0.0  ;;  %v5937_v27 = vld [vmem:[#allocation10] sm:$0xff]  }
 0x587   :  { %v1209_v32 = vpack.c.bf16 %v1201_v30, %v1200_v23  ;;  %v5939_v30 = vld [vmem:[#allocation10 + $0x10] sm:$0xff]  }
 0x588   :  { %v1208_v33 = vpack.c.bf16 %v1199_v31, %v1198_v26  ;;  %1722 = vmatpush1.bf16.msra.mxu1 %v5914_v28  ;;  %v5936_v26 = vld [vmem:[#allocation17 + $0x38] sm:$0xff]   ;;  %v5940_v31 = vld [vmem:[#allocation10 + $0x18] sm:$0xff]  }
 0x589   :  { %1723 = vmatprep.subr.bf16.mxu1 %v5922_v35  ;;  %v5938_v28 = vld [vmem:[#allocation10 + $0x8] sm:$0xff]   ;;  %v5944_v35 = vld [vmem:[#allocation10 + $0x38] sm:$0xff]  }
 0x58a   :  { %5588 = vmatprep.mubr.bf16.mxu1 %v1208_v33  ;;  %v5942_v33 = vld [vmem:[#allocation10 + $0x28] sm:$0xff]  }
 0x58b   :  { %5589 = vmatmul.mubr.bf16.gmra.mrb[44].mxu1 %v1209_v32  ;;  %v5941_v32 = vld [vmem:[#allocation10 + $0x20] sm:$0xff]  }
 0x58c   :  { %1724 = vmatpush1.bf16.msra.mxu1 %v5920_v37  ;;  %1743 = vmatprep.mubr.bf16.mxu1 %v7998_v41  ;;  %v1418_v37 = vlaneseq }
 0x58d   :  { %1725 = vmatprep.subr.bf16.mxu1 %v5928_v29 }
 0x58e   :  { %v7112_v38 = vshrl.u32 %v1418_v37, 7 }
 0x590   :  { %1726 = vmatpush1.bf16.msra.mxu1 %v5926_v40  ;;  %v7115_v29 = vsub.s32 0, %v7112_v38  ;;  %v7997_v39 = vsub.s32 2, %v7112_v38  ;;  %v1399_v40 = vld [vmem:[#allocation16] ss:$2 sm:$0xf] }
 0x646   :  { %v5578_v43 = vpop.f32.mrb[32].mxu1 }
 0x647   :  { %v1296_v45 = vpop.f32.mrb[33].mxu1  ;;  %v1305_v47 = vadd.f32 %v5578_v43, %v7047_v44  ;;  %v7122_v43 = vrot.slane %v1399_v40, %v7115_v29 }
 0x648   :  { %v5579_v46 = vpop.f32.mrb[34].mxu1  ;;  %v1297_v14 = vadd.f32 %v7047_v44, %v1296_v45 }
 0x649   :  { %v1308_v48 = vadd.f32 %v5579_v46, %v7047_v44  ;;  %v1299_v49 = vpop.f32.mrb[35].mxu1 }
 0x64a   :  { %v1300_v15 = vadd.f32 %v7047_v44, %v1299_v49 }
 0x64b   :  { %v7053_v18 = vpack.c.bf16 %v1308_v48, %v1305_v47 }
 0x64c   :  { %v7055_v19 = vpack.c.bf16 %v1300_v15, %v1297_v14 }
 0x64d   :  { %8009 = vst [vmem:[#allocation32_spill] sm:$0xff] %v7053_v18 }
 0x64e   :  { %8010 = vst [vmem:[#allocation33_spill] sm:$0xff] %v7055_v19  ;;  %v5582_v21 = vpop.f32.mrb[36].mxu1  ;;  %1631 = vmatmul.mubr.bf16.vlgmr.msra.gmra.mrb[48].mxu0 %v7055_v19  ;;  %1744 = vmatmul.mubr.bf16.vlgmr.msra.gmra.mrb[48].mxu1 %v7055_v19 }
 0x64f   :  { %v1312_v22 = vpop.f32.mrb[37].mxu1  ;;  %1640 = vmatprep.mubr.bf16.mxu0 %v7998_v41  ;;  %1753 = vmatprep.mubr.bf16.mxu1 %v7998_v41  ;;  %v1321_v51 = vadd.f32 %v5582_v21, %v7047_v44 }
 0x650   :  { %v5583_v50 = vpop.f32.mrb[38].mxu1  ;;  %5593 = vmatpush3.bf16.msra.mxu0 %v5929_v42  ;;  %v1313_v55 = vadd.f32 %v7047_v44, %v1312_v22  ;;  %v7119_v42 = vsub.s32 1, %v7112_v38 }
 0x651   :  { %v1324_v52 = vadd.f32 %v5583_v50, %v7047_v44  ;;  %v1315_v53 = vpop.f32.mrb[39].mxu1  ;;  %5594 = vmatprep.subr.bf16.mxu0 %v5930_v20 }
 0x652   :  { %v1316_v57 = vadd.f32 %v7047_v44, %v1315_v53  ;;  %v7129_v47 = vrot.slane %v1399_v40, %v7119_v42 }
 0x653   :  { %v7065_v58 = vpack.c.bf16 %v1324_v52, %v1321_v51 }
 0x654   :  { %v7067_v59 = vpack.c.bf16 %v1316_v57, %v1313_v55  ;;  %5595 = vmatpush3.bf16.msra.mxu0 %v5930_v20 }
 0x655   :  { %8011 = vst [vmem:[#allocation34_spill] sm:$0xff] %v7065_v58  ;;  %5596 = vmatprep.subr.bf16.mxu0 %v5931_v54 }
 0x656   :  { %8012 = vst [vmem:[#allocation35_spill] sm:$0xff] %v7067_v59  ;;  %1641 = vmatmul.mubr.bf16.gmra.mrb[52].mxu0 %v7053_v18  ;;  %1754 = vmatmul.mubr.bf16.gmra.mrb[52].mxu1 %v7053_v18  ;;  %v5586_v56 = vpop.f32.mrb[40].mxu1 }
 0x657   :  { %v1337_v61 = vadd.f32 %v5586_v56, %v7047_v44  ;;  %v1328_v62 = vpop.f32.mrb[41].mxu1  ;;  %1650 = vmatprep.mubr.bf16.mxu0 %v7998_v41  ;;  %1763 = vmatprep.mubr.bf16.mxu1 %v7998_v41 }
 0x658   :  { %v1329_v63 = vadd.f32 %v7047_v44, %v1328_v62  ;;  %v5587_v0 = vpop.f32.mrb[42].mxu1  ;;  %5597 = vmatpush3.bf16.msra.mxu0 %v5931_v54 }
 0x659   :  { %v1340_v1 = vadd.f32 %v5587_v0, %v7047_v44  ;;  %v1331_v2 = vpop.f32.mrb[43].mxu1  ;;  %5598 = vmatprep.subr.bf16.mxu0 %v5932_v60 }
 0x65a   :  { %v1332_v5 = vadd.f32 %v7047_v44, %v1331_v2 }
 0x65b   :  { %v7077_v4 = vpack.c.bf16 %v1340_v1, %v1337_v61 }
 0x65c   :  { %v7079_v6 = vpack.c.bf16 %v1332_v5, %v1329_v63  ;;  %5599 = vmatpush3.bf16.msra.mxu0 %v5932_v60 }
 0x65d   :  { %8013 = vst [vmem:[#allocation36_spill] sm:$0xff] %v7077_v4  ;;  %5600 = vmatprep.subr.bf16.mxu0 %v5933_v3 }
 0x65e   :  { %8014 = vst [vmem:[#allocation37_spill] sm:$0xff] %v7079_v6  ;;  %1651 = vmatmul.mubr.bf16.gmra.mrb[56].mxu0 %v7067_v59  ;;  %1764 = vmatmul.mubr.bf16.gmra.mrb[56].mxu1 %v7067_v59  ;;  %v5590_v8 = vpop.f32.mrb[44].mxu1 }
 0x65f   :  { %1660 = vmatprep.mubr.bf16.mxu0 %v7998_v41  ;;  %1773 = vmatprep.mubr.bf16.mxu1 %v7998_v41  ;;  %v1353_v9 = vadd.f32 %v5590_v8, %v7047_v44  ;;  %v1344_v10 = vpop.f32.mrb[45].mxu1 }
 0x660   :  { %v1345_v11 = vadd.f32 %v7047_v44, %v1344_v10  ;;  %v5591_v12 = vpop.f32.mrb[46].mxu1  ;;  %5601 = vmatpush3.bf16.msra.mxu0 %v5933_v3 }
 0x661   :  { %v1356_v13 = vadd.f32 %v5591_v12, %v7047_v44  ;;  %v1347_v16 = vpop.f32.mrb[47].mxu1  ;;  %5602 = vmatprep.subr.bf16.mxu0 %v5934_v7 }
 0x662   :  { %v1348_v23 = vadd.f32 %v7047_v44, %v1347_v16  ;;  %v7126_v44 = vrot.slane %v1399_v40, %v7997_v39 }
 0x663   :  { %v7089_v24 = vpack.c.bf16 %v1356_v13, %v1353_v9 }
 0x664   :  { %v7091_v25 = vpack.c.bf16 %v1348_v23, %v1345_v11  ;;  %5603 = vmatpush3.bf16.msra.mxu0 %v5934_v7 }
 0x665   :  { %8015 = vst [vmem:[#allocation38_spill] sm:$0xff] %v7089_v24  ;;  %5604 = vmatprep.subr.bf16.mxu0 %v5935_v17 }
 0x666   :  { %8016 = vst [vmem:[#allocation39_spill] sm:$0xff] %v7091_v25  ;;  %1661 = vmatmul.mubr.bf16.gmra.mrb[60].mxu0 %v7065_v58  ;;  %1774 = vmatmul.mubr.bf16.gmra.mrb[60].mxu1 %v7065_v58 }
 0x667   :  { %1670 = vmatprep.mubr.bf16.mxu0 %v7998_v41  ;;  %1783 = vmatprep.mubr.bf16.mxu1 %v7998_v41 }
 0x668   :  { %5605 = vmatpush3.bf16.msra.mxu0 %v5935_v17 }
 0x669   :  { %5606 = vmatprep.subr.bf16.mxu0 %v5936_v26 }
 0x66c   :  { %5607 = vmatpush3.bf16.msra.mxu0 %v5936_v26 }
 0x66e   :  { %1671 = vmatmul.mubr.bf16.gmra.mrb[64].mxu0 %v7079_v6  ;;  %1784 = vmatmul.mubr.bf16.gmra.mrb[64].mxu1 %v7079_v6 }
 0x66f   :  { %1680 = vmatprep.mubr.bf16.mxu0 %v7998_v41  ;;  %1793 = vmatprep.mubr.bf16.mxu1 %v7998_v41 }
 0x676   :  { %1681 = vmatmul.mubr.bf16.gmra.mrb[68].mxu0 %v7077_v4  ;;  %1794 = vmatmul.mubr.bf16.gmra.mrb[68].mxu1 %v7077_v4 }
 0x677   :  { %1690 = vmatprep.mubr.bf16.mxu0 %v7998_v41  ;;  %1803 = vmatprep.mubr.bf16.mxu1 %v7998_v41 }
 0x67e   :  { %1691 = vmatmul.mubr.bf16.gmra.mrb[72].mxu0 %v7091_v25  ;;  %1804 = vmatmul.mubr.bf16.gmra.mrb[72].mxu1 %v7091_v25 }
 0x67f   :  { %1700 = vmatprep.mubr.bf16.mxu0 %v7998_v41  ;;  %1813 = vmatprep.mubr.bf16.mxu1 %v7998_v41 }
 0x686   :  { %1701 = vmatmul.mubr.bf16.gmra.mrb[76].mxu0 %v7089_v24  ;;  %1814 = vmatmul.mubr.bf16.gmra.mrb[76].mxu1 %v7089_v24 }
 0x687   :  { %5608 = vmatprep.mubr.bf16.mxu0 %v5937_v27  ;;  %5640 = vmatprep.mubr.bf16.mxu1 %v5945_v36 }
 0x68e   :  { %5609 = vmatmul.mubr.bf16.vlgmr.msra.gmra.mrb[80].mxu0 %v5938_v28 }
 0x68f   :  { %5612 = vmatprep.mubr.bf16.mxu0 %v5939_v30 }
 0x696   :  { %5613 = vmatmul.mubr.bf16.gmra.mrb[84].mxu0 %v5940_v31 }
 0x697   :  { %5616 = vmatprep.mubr.bf16.mxu0 %v5941_v32 }
 0x69e   :  { %5617 = vmatmul.mubr.bf16.gmra.mrb[88].mxu0 %v5942_v33 }
 0x69f   :  { %5620 = vmatprep.mubr.bf16.mxu0 %v5943_v34 }
 0x6a6   :  { %5621 = vmatmul.mubr.bf16.gmra.mrb[92].mxu0 %v5944_v35 }
 0x6a7   :  { %2266 = vmatprep.mubr.bf16.mxu0 %v7998_v41 }
 0x721   :  { %v1632_v45 = vpop.f32.mrb[48].mxu0  ;;  %v1745_v46 = vpop.f32.mrb[48].mxu1 }
 0x722   :  { %v1634_v48 = vpop.f32.mrb[49].mxu0  ;;  %v7131_v49 = vpop.f32.mrb[49].mxu1  ;;  %v1633_v20 = vadd.f32 %v1632_v45, %v7122_v43  ;;  %v1746_v21 = vadd.f32 %v1745_v46, %v7126_v44 }
 0x723   :  { %v1636_v14 = vpop.f32.mrb[50].mxu0  ;;  %v1749_v15 = vpop.f32.mrb[50].mxu1  ;;  %v1635_v53 = vadd.f32 %v1634_v48, %v7129_v47 }
 0x724   :  { %v1637_v22 = vadd.f32 %v1636_v14, %v7122_v43  ;;  %v1750_v50 = vadd.f32 %v1749_v15, %v7126_v44  ;;  %v1638_v51 = vpop.f32.mrb[51].mxu0  ;;  %v7137_v52 = vpop.f32.mrb[51].mxu1 }
 0x725   :  { %v1639_v54 = vadd.f32 %v1638_v51, %v7129_v47 }
 0x726   :  { %v2017_v55 = vpack.c.bf16 %v1637_v22, %v1633_v20  ;;  %v2171_v57 = vpack.c.bf16 %v1750_v50, %v1746_v21 }
 0x727   :  { %v2170_v60 = vpack.c.bf16 %v1639_v54, %v1635_v53 }
 0x728   :  { %5624 = vmatprep.subr.bf16.mxu1 %v2017_v55  ;;  %2234 = vmatprep.subr.bf16.mxu0 %v2171_v57 }
 0x729   :  { %v1642_v56 = vpop.f32.mrb[52].mxu0  ;;  %v1755_v61 = vpop.f32.mrb[52].mxu1  ;;  %5625 = vmatpush3.bf16.msra.mxu1 %v2017_v55  ;;  %2235 = vmatpush1.bf16.msra.mxu0 %v2170_v60 }
 0x72a   :  { %v1644_v62 = vpop.f32.mrb[53].mxu0  ;;  %v7141_v63 = vpop.f32.mrb[53].mxu1  ;;  %v1643_v2 = vadd.f32 %v1642_v56, %v7122_v43  ;;  %v1756_v3 = vadd.f32 %v1755_v61, %v7126_v44 }
 0x72b   :  { %v1646_v0 = vpop.f32.mrb[54].mxu0  ;;  %v1759_v1 = vpop.f32.mrb[54].mxu1  ;;  %v1645_v10 = vadd.f32 %v1644_v62, %v7129_v47 }
 0x72c   :  { %v1647_v5 = vadd.f32 %v1646_v0, %v7122_v43  ;;  %v1760_v7 = vadd.f32 %v1759_v1, %v7126_v44  ;;  %v1648_v8 = vpop.f32.mrb[55].mxu0  ;;  %v7147_v9 = vpop.f32.mrb[55].mxu1 }
 0x72d   :  { %v1649_v11 = vadd.f32 %v1648_v8, %v7129_v47 }
 0x72e   :  { %v2018_v12 = vpack.c.bf16 %v1647_v5, %v1643_v2  ;;  %v2173_v13 = vpack.c.bf16 %v1760_v7, %v1756_v3 }
 0x72f   :  { %v2172_v16 = vpack.c.bf16 %v1649_v11, %v1645_v10 }
 0x730   :  { %5626 = vmatprep.subr.bf16.mxu1 %v2018_v12  ;;  %2236 = vmatprep.subr.bf16.mxu0 %v2173_v13 }
 0x731   :  { %v1652_v17 = vpop.f32.mrb[56].mxu0  ;;  %v1765_v23 = vpop.f32.mrb[56].mxu1  ;;  %5627 = vmatpush3.bf16.msra.mxu1 %v2018_v12  ;;  %2237 = vmatpush1.bf16.msra.mxu0 %v2172_v16 }
 0x732   :  { %v1654_v26 = vpop.f32.mrb[57].mxu0  ;;  %v7151_v27 = vpop.f32.mrb[57].mxu1  ;;  %v1653_v31 = vadd.f32 %v1652_v17, %v7122_v43  ;;  %v1766_v32 = vadd.f32 %v1765_v23, %v7126_v44 }
 0x733   :  { %v1656_v28 = vpop.f32.mrb[58].mxu0  ;;  %v1769_v30 = vpop.f32.mrb[58].mxu1  ;;  %v1655_v37 = vadd.f32 %v1654_v26, %v7129_v47 }
 0x734   :  { %v1657_v33 = vadd.f32 %v1656_v28, %v7122_v43  ;;  %v1770_v34 = vadd.f32 %v1769_v30, %v7126_v44  ;;  %v1658_v35 = vpop.f32.mrb[59].mxu0  ;;  %v7157_v36 = vpop.f32.mrb[59].mxu1 }
 0x735   :  { %v1659_v40 = vadd.f32 %v1658_v35, %v7129_v47 }
 0x736   :  { %v2019_v45 = vpack.c.bf16 %v1657_v33, %v1653_v31  ;;  %v2175_v46 = vpack.c.bf16 %v1770_v34, %v1766_v32 }
 0x737   :  { %v2174_v48 = vpack.c.bf16 %v1659_v40, %v1655_v37 }
 0x738   :  { %5628 = vmatprep.subr.bf16.mxu1 %v2019_v45  ;;  %2238 = vmatprep.subr.bf16.mxu0 %v2175_v46 }
 0x739   :  { %v1662_v14 = vpop.f32.mrb[60].mxu0  ;;  %v1775_v15 = vpop.f32.mrb[60].mxu1  ;;  %5629 = vmatpush3.bf16.msra.mxu1 %v2019_v45  ;;  %2239 = vmatpush1.bf16.msra.mxu0 %v2174_v48 }
 0x73a   :  { %v1664_v20 = vpop.f32.mrb[61].mxu0  ;;  %v7161_v21 = vpop.f32.mrb[61].mxu1  ;;  %v1663_v51 = vadd.f32 %v1662_v14, %v7122_v43  ;;  %v1776_v53 = vadd.f32 %v1775_v15, %v7126_v44 }
 0x73b   :  { %v1666_v22 = vpop.f32.mrb[62].mxu0  ;;  %v1779_v50 = vpop.f32.mrb[62].mxu1  ;;  %v1665_v56 = vadd.f32 %v1664_v20, %v7129_v47 }
 0x73c   :  { %v1667_v54 = vadd.f32 %v1666_v22, %v7122_v43  ;;  %v1780_v55 = vadd.f32 %v1779_v50, %v7126_v44  ;;  %v1668_v57 = vpop.f32.mrb[63].mxu0  ;;  %v7167_v60 = vpop.f32.mrb[63].mxu1 }
 0x73d   :  { %8017 = vst [vmem:[#allocation40_spill] sm:$0xff] %v7167_v60  ;;  %v1669_v61 = vadd.f32 %v1668_v57, %v7129_v47 }
 0x73e   :  { %v2020_v62 = vpack.c.bf16 %v1667_v54, %v1663_v51  ;;  %v2177_v0 = vpack.c.bf16 %v1780_v55, %v1776_v53 }
 0x73f   :  { %v2176_v1 = vpack.c.bf16 %v1669_v61, %v1665_v56 }
 0x740   :  { %5630 = vmatprep.subr.bf16.mxu1 %v2020_v62  ;;  %2240 = vmatprep.subr.bf16.mxu0 %v2177_v0 }
 0x741   :  { %v1672_v2 = vpop.f32.mrb[64].mxu0  ;;  %v1785_v3 = vpop.f32.mrb[64].mxu1  ;;  %5631 = vmatpush3.bf16.msra.mxu1 %v2020_v62  ;;  %2241 = vmatpush1.bf16.msra.mxu0 %v2176_v1 }
 0x742   :  { %v1674_v5 = vpop.f32.mrb[65].mxu0  ;;  %v7171_v7 = vpop.f32.mrb[65].mxu1  ;;  %v1673_v11 = vadd.f32 %v1672_v2, %v7122_v43  ;;  %v1786_v12 = vadd.f32 %v1785_v3, %v7126_v44 }
 0x743   :  { %8018 = vst [vmem:[#allocation41_spill] sm:$0xff] %v7171_v7  ;;  %v1676_v8 = vpop.f32.mrb[66].mxu0  ;;  %v1789_v10 = vpop.f32.mrb[66].mxu1  ;;  %v1675_v26 = vadd.f32 %v1674_v5, %v7129_v47 }
 0x744   :  { %v1677_v13 = vadd.f32 %v1676_v8, %v7122_v43  ;;  %v1790_v16 = vadd.f32 %v1789_v10, %v7126_v44  ;;  %v1678_v17 = vpop.f32.mrb[67].mxu0  ;;  %v7177_v23 = vpop.f32.mrb[67].mxu1 }
 0x745   :  { %8019 = vst [vmem:[#allocation42_spill] sm:$0xff] %v7177_v23  ;;  %v1679_v28 = vadd.f32 %v1678_v17, %v7129_v47 }
 0x746   :  { %v2021_v30 = vpack.c.bf16 %v1677_v13, %v1673_v11  ;;  %v2179_v31 = vpack.c.bf16 %v1790_v16, %v1786_v12 }
 0x747   :  { %v2178_v32 = vpack.c.bf16 %v1679_v28, %v1675_v26 }
 0x748   :  { %5632 = vmatprep.subr.bf16.mxu1 %v2021_v30  ;;  %2242 = vmatprep.subr.bf16.mxu0 %v2179_v31 }
 0x749   :  { %v1682_v33 = vpop.f32.mrb[68].mxu0  ;;  %v1795_v34 = vpop.f32.mrb[68].mxu1  ;;  %5633 = vmatpush3.bf16.msra.mxu1 %v2021_v30  ;;  %2243 = vmatpush1.bf16.msra.mxu0 %v2178_v32 }
 0x74a   :  { %v1684_v35 = vpop.f32.mrb[69].mxu0  ;;  %v7181_v37 = vpop.f32.mrb[69].mxu1  ;;  %v1683_v46 = vadd.f32 %v1682_v33, %v7122_v43  ;;  %v1796_v48 = vadd.f32 %v1795_v34, %v7126_v44 }
 0x74b   :  { %8020 = vst [vmem:[#allocation43_spill] sm:$0xff] %v7181_v37  ;;  %v1686_v40 = vpop.f32.mrb[70].mxu0  ;;  %v1799_v45 = vpop.f32.mrb[70].mxu1  ;;  %v1685_v50 = vadd.f32 %v1684_v35, %v7129_v47 }
 0x74c   :  { %v1687_v14 = vadd.f32 %v1686_v40, %v7122_v43  ;;  %v1800_v15 = vadd.f32 %v1799_v45, %v7126_v44  ;;  %v1688_v20 = vpop.f32.mrb[71].mxu0  ;;  %v7187_v22 = vpop.f32.mrb[71].mxu1 }
 0x74d   :  { %8021 = vst [vmem:[#allocation44_spill] sm:$0xff] %v7187_v22  ;;  %v1689_v51 = vadd.f32 %v1688_v20, %v7129_v47 }
 0x74e   :  { %v2022_v53 = vpack.c.bf16 %v1687_v14, %v1683_v46  ;;  %v2181_v54 = vpack.c.bf16 %v1800_v15, %v1796_v48 }
 0x74f   :  { %v2180_v55 = vpack.c.bf16 %v1689_v51, %v1685_v50 }
 0x750   :  { %5634 = vmatprep.subr.bf16.mxu1 %v2022_v53  ;;  %2244 = vmatprep.subr.bf16.mxu0 %v2181_v54 }
 0x751   :  { %v1692_v57 = vpop.f32.mrb[72].mxu0  ;;  %v1805_v56 = vpop.f32.mrb[72].mxu1  ;;  %5635 = vmatpush3.bf16.msra.mxu1 %v2022_v53  ;;  %2245 = vmatpush1.bf16.msra.mxu0 %v2180_v55  ;;  %v5961_v53 = vld [vmem:[#allocation7] sm:$0xff]   ;;  %v5946_v55 = vld [vmem:[#allocation2 + $0x40] sm:$0xff]  }
 0x752   :  { %v1694_v61 = vpop.f32.mrb[73].mxu0  ;;  %v7191_v62 = vpop.f32.mrb[73].mxu1  ;;  %v1693_v2 = vadd.f32 %v1692_v57, %v7122_v43  ;;  %v1806_v3 = vadd.f32 %v1805_v56, %v7126_v44  ;;  %v5947_v57 = vld [vmem:[#allocation2 + $0x88] sm:$0xff]  }
 0x753   :  { %8022 = vst [vmem:[#allocation45_spill] sm:$0xff] %v7191_v62  ;;  %v1696_v0 = vpop.f32.mrb[74].mxu0  ;;  %v1809_v1 = vpop.f32.mrb[74].mxu1  ;;  %v1695_v12 = vadd.f32 %v1694_v61, %v7129_v47  ;;  %v5948_v56 = vld [vmem:[#allocation2 + $0x48] sm:$0xff]   ;;  %v5951_v61 = vld [vmem:[#allocation2 + $0x98] sm:$0xff]  }
 0x754   :  { %v1697_v5 = vadd.f32 %v1696_v0, %v7122_v43  ;;  %v1810_v8 = vadd.f32 %v1809_v1, %v7126_v44  ;;  %v1698_v10 = vpop.f32.mrb[75].mxu0  ;;  %v7197_v11 = vpop.f32.mrb[75].mxu1  ;;  %v5953_v0 = vld [vmem:[#allocation2 + $0xa0] sm:$0xff]  }
 0x755   :  { %8023 = vst [vmem:[#allocation46_spill] sm:$0xff] %v7197_v11  ;;  %v1699_v13 = vadd.f32 %v1698_v10, %v7129_v47  ;;  %v5964_v1 = vld [vmem:[#allocation7 + $0x18] sm:$0xff]   ;;  %v5959_v10 = vld [vmem:[#allocation2 + $0xb8] sm:$0xff]  }
 0x756   :  { %v2023_v16 = vpack.c.bf16 %v1697_v5, %v1693_v2  ;;  %v2183_v17 = vpack.c.bf16 %v1810_v8, %v1806_v3  ;;  %v5950_v2 = vld [vmem:[#allocation2 + $0x50] sm:$0xff]   ;;  %v5955_v3 = vld [vmem:[#allocation2 + $0xa8] sm:$0xff]   ;;  %v5952_v8 = vld [vmem:[#allocation2 + $0x58] sm:$0xff]  }
 0x757   :  { %v2182_v26 = vpack.c.bf16 %v1699_v13, %v1695_v12  ;;  %v5957_v5 = vld [vmem:[#allocation2 + $0xb0] sm:$0xff]  }
 0x758   :  { %5636 = vmatprep.subr.bf16.mxu1 %v2023_v16  ;;  %2246 = vmatprep.subr.bf16.mxu0 %v2183_v17 }
 0x759   :  { %v1702_v28 = vpop.f32.mrb[76].mxu0  ;;  %v1815_v30 = vpop.f32.mrb[76].mxu1  ;;  %5637 = vmatpush3.bf16.msra.mxu1 %v2023_v16  ;;  %2247 = vmatpush1.bf16.msra.mxu0 %v2182_v26  ;;  %v5954_v26 = vld [vmem:[#allocation2 + $0x60] sm:$0xff]  }
 0x75a   :  { %v1704_v31 = vpop.f32.mrb[77].mxu0  ;;  %v7201_v32 = vpop.f32.mrb[77].mxu1  ;;  %v1703_v35 = vadd.f32 %v1702_v28, %v7122_v43  ;;  %v1816_v40 = vadd.f32 %v1815_v30, %v7126_v44  ;;  %v5956_v28 = vld [vmem:[#allocation2 + $0x68] sm:$0xff]   ;;  %v5958_v30 = vld [vmem:[#allocation2 + $0x70] sm:$0xff]  }
 0x75b   :  { %8024 = vst [vmem:[#allocation47_spill] sm:$0xff] %v7201_v32  ;;  %v1706_v33 = vpop.f32.mrb[78].mxu0  ;;  %v1819_v34 = vpop.f32.mrb[78].mxu1  ;;  %v1705_v15 = vadd.f32 %v1704_v31, %v7129_v47  ;;  %v5960_v31 = vld [vmem:[#allocation2 + $0x78] sm:$0xff]  }
 0x75c   :  { %v1707_v45 = vadd.f32 %v1706_v33, %v7122_v43  ;;  %v1820_v46 = vadd.f32 %v1819_v34, %v7126_v44  ;;  %v1708_v48 = vpop.f32.mrb[79].mxu0  ;;  %v7207_v14 = vpop.f32.mrb[79].mxu1  ;;  %v5949_v43 = vld [vmem:[#allocation2 + $0x90] sm:$0xff]  }
 0x75d   :  { %8025 = vst [vmem:[#allocation48_spill] sm:$0xff] %v7207_v14  ;;  %v1709_v20 = vadd.f32 %v1708_v48, %v7129_v47  ;;  %v5962_v44 = vld [vmem:[#allocation7 + $0x8] sm:$0xff]   ;;  %v5963_v47 = vld [vmem:[#allocation7 + $0x10] sm:$0xff]  }
 0x75e   :  { %v2024_v50 = vpack.c.bf16 %v1707_v45, %v1703_v35  ;;  %v2185_v51 = vpack.c.bf16 %v1820_v46, %v1816_v40 }
 0x75f   :  { %v2184_v54 = vpack.c.bf16 %v1709_v20, %v1705_v15 }
 0x760   :  { %5638 = vmatprep.subr.bf16.mxu1 %v2024_v50  ;;  %2248 = vmatprep.subr.bf16.mxu0 %v2185_v51 }
 0x761   :  { %5639 = vmatpush3.bf16.msra.mxu1 %v2024_v50  ;;  %2249 = vmatpush1.bf16.msra.mxu0 %v2184_v54  ;;  %v5610_v12 = vpop.f32.mrb[80].mxu0  ;;  %v5965_v54 = vld [vmem:[#allocation7 + $0x20] sm:$0xff]  }
 0x762   :  { %5656 = vmatprep.subr.bf16.mxu1 %v5961_v53  ;;  %v1954_v13 = vpop.f32.mrb[81].mxu0 }
 0x763   :  { %v7215_v16 = vpop.f32.mrb[82].mxu0 }
 0x764   :  { %2267 = vmatmul.mubr.bf16.vlgmr.msra.gmra.mrb[96].mxu0 %v5946_v55  ;;  %5641 = vmatmul.mubr.bf16.vlgmr.msra.gmra.mrb[80].mxu1 %v5947_v57  ;;  %v1957_v17 = vpop.f32.mrb[83].mxu0  ;;  %v5966_v55 = vld [vmem:[#allocation7 + $0x28] sm:$0xff]   ;;  %v5967_v57 = vld [vmem:[#allocation7 + $0x30] sm:$0xff]  }
 0x765   :  { %2276 = vmatprep.mubr.bf16.mxu0 %v7998_v41  ;;  %5644 = vmatprep.mubr.bf16.mxu1 %v5949_v43  ;;  %v5968_v43 = vld [vmem:[#allocation7 + $0x38] sm:$0xff]  }
 0x766   :  { %5657 = vmatpush3.bf16.msra.mxu1 %v5961_v53 }
 0x767   :  { %5658 = vmatprep.subr.bf16.mxu1 %v5962_v44 }
 0x769   :  { %v7220_v33 = vpop.f32.mrb[84].mxu0 }
 0x76a   :  { %5659 = vmatpush3.bf16.msra.mxu1 %v5962_v44  ;;  %v1970_v34 = vpop.f32.mrb[85].mxu0 }
 0x76b   :  { %5660 = vmatprep.subr.bf16.mxu1 %v5963_v47  ;;  %v7223_v35 = vpop.f32.mrb[86].mxu0 }
 0x76c   :  { %2277 = vmatmul.mubr.bf16.gmra.mrb[100].mxu0 %v5948_v56  ;;  %5645 = vmatmul.mubr.bf16.gmra.mrb[84].mxu1 %v5951_v61  ;;  %v7225_v40 = vpop.f32.mrb[87].mxu0 }
 0x76d   :  { %2286 = vmatprep.mubr.bf16.mxu0 %v7998_v41  ;;  %5648 = vmatprep.mubr.bf16.mxu1 %v5953_v0 }
 0x76e   :  { %5661 = vmatpush3.bf16.msra.mxu1 %v5963_v47 }
 0x76f   :  { %5662 = vmatprep.subr.bf16.mxu1 %v5964_v1 }
 0x771   :  { %v7227_v45 = vpop.f32.mrb[88].mxu0 }
 0x772   :  { %5663 = vmatpush3.bf16.msra.mxu1 %v5964_v1  ;;  %v7229_v46 = vpop.f32.mrb[89].mxu0 }
 0x773   :  { %v7231_v48 = vpop.f32.mrb[90].mxu0  ;;  %5664 = vmatprep.subr.bf16.mxu1 %v5965_v54 }
 0x774   :  { %2287 = vmatmul.mubr.bf16.gmra.mrb[104].mxu0 %v5950_v2  ;;  %5649 = vmatmul.mubr.bf16.gmra.mrb[88].mxu1 %v5955_v3  ;;  %v7233_v15 = vpop.f32.mrb[91].mxu0 }
 0x775   :  { %2296 = vmatprep.mubr.bf16.mxu0 %v7998_v41  ;;  %5652 = vmatprep.mubr.bf16.mxu1 %v5957_v5 }
 0x776   :  { %5665 = vmatpush3.bf16.msra.mxu1 %v5965_v54 }
 0x777   :  { %5666 = vmatprep.subr.bf16.mxu1 %v5966_v55 }
 0x779   :  { %v7235_v20 = vpop.f32.mrb[92].mxu0 }
 0x77a   :  { %v7237_v50 = vpop.f32.mrb[93].mxu0  ;;  %5667 = vmatpush3.bf16.msra.mxu1 %v5966_v55 }
 0x77b   :  { %v7239_v51 = vpop.f32.mrb[94].mxu0  ;;  %5668 = vmatprep.subr.bf16.mxu1 %v5967_v57 }
 0x77c   :  { %2297 = vmatmul.mubr.bf16.gmra.mrb[108].mxu0 %v5952_v8  ;;  %5653 = vmatmul.mubr.bf16.gmra.mrb[92].mxu1 %v5959_v10  ;;  %v7241_v53 = vpop.f32.mrb[95].mxu0 }
 0x77d   :  { %2306 = vmatprep.mubr.bf16.mxu0 %v7998_v41 }
 0x77e   :  { %5669 = vmatpush3.bf16.msra.mxu1 %v5967_v57 }
 0x77f   :  { %5670 = vmatprep.subr.bf16.mxu1 %v5968_v43 }
 0x782   :  { %5671 = vmatpush3.bf16.msra.mxu1 %v5968_v43 }
 0x784   :  { %2307 = vmatmul.mubr.bf16.gmra.mrb[112].mxu0 %v5954_v26 }
 0x785   :  { %2316 = vmatprep.mubr.bf16.mxu0 %v7998_v41 }
 0x78c   :  { %2317 = vmatmul.mubr.bf16.gmra.mrb[116].mxu0 %v5956_v28 }
 0x78d   :  { %2326 = vmatprep.mubr.bf16.mxu0 %v7998_v41 }
 0x794   :  { %2327 = vmatmul.mubr.bf16.gmra.mrb[120].mxu0 %v5958_v30 }
 0x795   :  { %2336 = vmatprep.mubr.bf16.mxu0 %v7998_v41 }
 0x79c   :  { %2337 = vmatmul.mubr.bf16.gmra.mrb[124].mxu0 %v5960_v31 }
 0x79d   :  { %3369 = vmatprep.mubr.bf16.mxu0 %v7998_v41 }
 0x837   :  { %v2268_v44 = vpop.f32.mrb[96].mxu0  ;;  %v5642_v47 = vpop.f32.mrb[80].mxu1 }
 0x838   :  { %v2347_v56 = vadd.f32 %v2268_v44, %v1954_v13  ;;  %v2270_v61 = vpop.f32.mrb[97].mxu0  ;;  %v2107_v0 = vpop.f32.mrb[81].mxu1 }
 0x839   :  { %v7243_v1 = vadd.f32 %v2270_v61, %v1954_v13  ;;  %v2272_v2 = vpop.f32.mrb[98].mxu0  ;;  %v5643_v3 = vpop.f32.mrb[82].mxu1 }
 0x83a   :  { %v2379_v5 = vmul.f32 %v2347_v56, %v2107_v0  ;;  %v2348_v8 = vadd.f32 %v2272_v2, %v1957_v17  ;;  %v2274_v10 = vpop.f32.mrb[99].mxu0  ;;  %v2110_v26 = vpop.f32.mrb[83].mxu1 }
 0x83b   :  { %v7245_v28 = vadd.f32 %v2274_v10, %v1957_v17 }
 0x83c   :  { %v2380_v30 = vmul.f32 %v2348_v8, %v2110_v26 }
 0x83e   :  { %v2395_v31 = vpack.c.bf16 %v2380_v30, %v2379_v5 }
 0x83f   :  { %v2278_v54 = vpop.f32.mrb[100].mxu0  ;;  %v5646_v55 = vpop.f32.mrb[84].mxu1 }
 0x840   :  { %v2349_v57 = vadd.f32 %v5610_v12, %v2278_v54  ;;  %v2280_v43 = vpop.f32.mrb[101].mxu0  ;;  %5672 = vmatprep.mubr.bf16.mxu1 %v2395_v31  ;;  %v2123_v44 = vpop.f32.mrb[85].mxu1 }
 0x841   :  { %v7247_v39 = vadd.f32 %v5610_v12, %v2280_v43  ;;  %v2282_v13 = vpop.f32.mrb[102].mxu0  ;;  %v5647_v61 = vpop.f32.mrb[86].mxu1 }
 0x842   :  { %v2381_v41 = vmul.f32 %v5642_v47, %v2349_v57  ;;  %v2350_v56 = vadd.f32 %v7215_v16, %v2282_v13  ;;  %v2284_v0 = vpop.f32.mrb[103].mxu0  ;;  %v2126_v2 = vpop.f32.mrb[87].mxu1 }
 0x843   :  { %v7251_v17 = vadd.f32 %v7215_v16, %v2284_v0 }
 0x844   :  { %v2382_v8 = vmul.f32 %v5643_v3, %v2350_v56 }
 0x846   :  { %v2396_v5 = vpack.c.bf16 %v2382_v8, %v2381_v41 }
 0x847   :  { %v2288_v10 = vpop.f32.mrb[104].mxu0  ;;  %v5650_v26 = vpop.f32.mrb[88].mxu1 }
 0x848   :  { %v2351_v30 = vadd.f32 %v2288_v10, %v1970_v34  ;;  %v2290_v54 = vpop.f32.mrb[105].mxu0  ;;  %5673 = vmatmul.mubr.bf16.vlgmr.msra.gmra.mrb[96].mxu1 %v2396_v5  ;;  %v2139_v31 = vpop.f32.mrb[89].mxu1 }
 0x849   :  { %v7253_v12 = vadd.f32 %v2290_v54, %v1970_v34  ;;  %v2292_v43 = vpop.f32.mrb[106].mxu0  ;;  %v5651_v24 = vpop.f32.mrb[90].mxu1 }
 0x84a   :  { %v2383_v47 = vmul.f32 %v2351_v30, %v2123_v44  ;;  %v2352_v57 = vadd.f32 %v2292_v43, %v7225_v40  ;;  %v2294_v13 = vpop.f32.mrb[107].mxu0  ;;  %v2142_v25 = vpop.f32.mrb[91].mxu1 }
 0x84b   :  { %v7257_v16 = vadd.f32 %v2294_v13, %v7225_v40 }
 0x84c   :  { %v2384_v3 = vmul.f32 %v2352_v57, %v2126_v2 }
 0x84e   :  { %v2397_v41 = vpack.c.bf16 %v2384_v3, %v2383_v47 }
 0x84f   :  { %v2298_v56 = vpop.f32.mrb[108].mxu0  ;;  %v5654_v0 = vpop.f32.mrb[92].mxu1 }
 0x850   :  { %v2353_v8 = vadd.f32 %v7220_v33, %v2298_v56  ;;  %v2300_v5 = vpop.f32.mrb[109].mxu0  ;;  %5676 = vmatprep.mubr.bf16.mxu1 %v2397_v41  ;;  %v2155_v34 = vpop.f32.mrb[93].mxu1 }
 0x851   :  { %v7261_v10 = vadd.f32 %v7220_v33, %v2300_v5  ;;  %v2302_v44 = vpop.f32.mrb[110].mxu0  ;;  %v5655_v30 = vpop.f32.mrb[94].mxu1 }
 0x852   :  { %v2385_v54 = vmul.f32 %v5646_v55, %v2353_v8  ;;  %v2354_v43 = vadd.f32 %v7223_v35, %v2302_v44  ;;  %v2304_v4 = vpop.f32.mrb[111].mxu0  ;;  %v2158_v40 = vpop.f32.mrb[95].mxu1 }
 0x853   :  { %v7265_v2 = vadd.f32 %v7223_v35, %v2304_v4 }
 0x854   :  { %v2386_v47 = vmul.f32 %v5647_v61, %v2354_v43 }
 0x856   :  { %v2398_v57 = vpack.c.bf16 %v2386_v47, %v2385_v54 }
 0x857   :  { %v2308_v13 = vpop.f32.mrb[112].mxu0 }
 0x858   :  { %v2355_v3 = vadd.f32 %v2308_v13, %v7229_v46  ;;  %v2310_v41 = vpop.f32.mrb[113].mxu0  ;;  %5677 = vmatmul.mubr.bf16.gmra.mrb[100].mxu1 %v2398_v57 }
 0x859   :  { %v7269_v33 = vadd.f32 %v2310_v41, %v7229_v46  ;;  %v2312_v56 = vpop.f32.mrb[114].mxu0 }
 0x85a   :  { %v2387_v5 = vmul.f32 %v2355_v3, %v2139_v31  ;;  %v2356_v55 = vadd.f32 %v2312_v56, %v7233_v15  ;;  %v2314_v8 = vpop.f32.mrb[115].mxu0 }
 0x85b   :  { %v7273_v44 = vadd.f32 %v2314_v8, %v7233_v15 }
 0x85c   :  { %v2388_v4 = vmul.f32 %v2356_v55, %v2142_v25 }
 0x85e   :  { %v2399_v35 = vpack.c.bf16 %v2388_v4, %v2387_v5 }
 0x85f   :  { %v2318_v61 = vpop.f32.mrb[116].mxu0 }
 0x860   :  { %v2357_v54 = vadd.f32 %v7227_v45, %v2318_v61  ;;  %v2320_v43 = vpop.f32.mrb[117].mxu0  ;;  %5680 = vmatprep.mubr.bf16.mxu1 %v2399_v35 }
 0x861   :  { %v7277_v47 = vadd.f32 %v7227_v45, %v2320_v43  ;;  %v2322_v46 = vpop.f32.mrb[118].mxu0 }
 0x862   :  { %v2389_v57 = vmul.f32 %v5650_v26, %v2357_v54  ;;  %v2358_v31 = vadd.f32 %v7231_v48, %v2322_v46  ;;  %v2324_v13 = vpop.f32.mrb[119].mxu0 }
 0x863   :  { %v7281_v3 = vadd.f32 %v7231_v48, %v2324_v13 }
 0x864   :  { %v2390_v15 = vmul.f32 %v5651_v24, %v2358_v31 }
 0x866   :  { %v2400_v41 = vpack.c.bf16 %v2390_v15, %v2389_v57 }
 0x867   :  { %v2328_v25 = vpop.f32.mrb[120].mxu0 }
 0x868   :  { %v2359_v56 = vadd.f32 %v2328_v25, %v7237_v50  ;;  %v2330_v5 = vpop.f32.mrb[121].mxu0  ;;  %5681 = vmatmul.mubr.bf16.gmra.mrb[104].mxu1 %v2400_v41 }
 0x869   :  { %v7285_v55 = vadd.f32 %v2330_v5, %v7237_v50  ;;  %v2332_v45 = vpop.f32.mrb[122].mxu0 }
 0x86a   :  { %v2391_v8 = vmul.f32 %v2359_v56, %v2155_v34  ;;  %v2360_v26 = vadd.f32 %v2332_v45, %v7241_v53  ;;  %v2334_v4 = vpop.f32.mrb[123].mxu0 }
 0x86b   :  { %v7289_v35 = vadd.f32 %v2334_v4, %v7241_v53 }
 0x86c   :  { %v2392_v48 = vmul.f32 %v2360_v26, %v2158_v40  ;;  %v8026_v40 = vmov 0  }
 0x86e   :  { %v2401_v61 = vpack.c.bf16 %v2392_v48, %v2391_v8 }
 0x86f   :  { %v2338_v24 = vpop.f32.mrb[124].mxu0 }
 0x870   :  { %v2361_v54 = vadd.f32 %v7235_v20, %v2338_v24  ;;  %v2340_v43 = vpop.f32.mrb[125].mxu0  ;;  %5684 = vmatprep.mubr.bf16.mxu1 %v2401_v61 }
 0x871   :  { %v7293_v46 = vadd.f32 %v7235_v20, %v2340_v43  ;;  %v2342_v50 = vpop.f32.mrb[126].mxu0 }
 0x872   :  { %v2393_v57 = vmul.f32 %v5654_v0, %v2361_v54  ;;  %v2362_v34 = vadd.f32 %v7239_v51, %v2342_v50  ;;  %v2344_v31 = vpop.f32.mrb[127].mxu0 }
 0x873   :  { %v7297_v13 = vadd.f32 %v7239_v51, %v2344_v31 }
 0x874   :  { %v2394_v53 = vmul.f32 %v5655_v30, %v2362_v34 }
 0x876   :  { %v2402_v15 = vpack.c.bf16 %v2394_v53, %v2393_v57 }
 0x878   :  { %5685 = vmatmul.mubr.bf16.gmra.mrb[108].mxu1 %v2402_v15 }
 0x879   :  { %2733 = vmatprep.mubr.bf16.mxu1 %v8026_v40 }
 0x91b   :  { %v5674_v41 = vpop.f32.mrb[96].mxu1 }
 0x91c   :  { %v2485_v25 = vpop.f32.mrb[97].mxu1 }
 0x91d   :  { %v5675_v56 = vpop.f32.mrb[98].mxu1 }
 0x91e   :  { %v2488_v5 = vpop.f32.mrb[99].mxu1 }
 0x92b   :  { %v5678_v45 = vpop.f32.mrb[100].mxu1 }
 0x92c   :  { %v2550_v20 = vmax.f32 %v5674_v41, %v5678_v45  ;;  %v2501_v8 = vpop.f32.mrb[101].mxu1 }
 0x92d   :  { %v2548_v26 = vmax.f32 %v2485_v25, %v2501_v8  ;;  %v5679_v0 = vpop.f32.mrb[102].mxu1 }
 0x92e   :  { %v2551_v4 = vmax.f32 %v5675_v56, %v5679_v0  ;;  %v2504_v48 = vpop.f32.mrb[103].mxu1 }
 0x92f   :  { %v2549_v61 = vmax.f32 %v2488_v5, %v2504_v48 }
 0x93b   :  { %v5682_v24 = vpop.f32.mrb[104].mxu1 }
 0x93c   :  { %v2554_v51 = vmax.f32 %v2550_v20, %v5682_v24  ;;  %v2517_v54 = vpop.f32.mrb[105].mxu1 }
 0x93d   :  { %v2552_v30 = vmax.f32 %v2548_v26, %v2517_v54  ;;  %v5683_v43 = vpop.f32.mrb[106].mxu1 }
 0x93e   :  { %v2555_v50 = vmax.f32 %v2551_v4, %v5683_v43  ;;  %v2520_v57 = vpop.f32.mrb[107].mxu1 }
 0x93f   :  { %v2553_v34 = vmax.f32 %v2549_v61, %v2520_v57 }
 0x94b   :  { %v7300_v31 = vpop.f32.mrb[108].mxu1 }
 0x94c   :  { %v2558_v53 = vmax.f32 %v2554_v51, %v7300_v31  ;;  %v2533_v15 = vpop.f32.mrb[109].mxu1 }
 0x94d   :  { %v2556_v6 = vmax.f32 %v2552_v30, %v2533_v15  ;;  %v7303_v58 = vpop.f32.mrb[110].mxu1 }
 0x94e   :  { %v2559_v59 = vmax.f32 %v2555_v50, %v7303_v58  ;;  %v2536_v18 = vpop.f32.mrb[111].mxu1 }
 0x94f   :  { %v2557_v19 = vmax.f32 %v2553_v34, %v2536_v18 }
 0x950   :  { %v2561_v14 = vmax.f32 %v2558_v53, %v2559_v59 }
 0x951   :  { %v2560_v20 = vmax.f32 %v2556_v6, %v2557_v19 }
 0x953   :  { %v2562_v32 = vmax.f32 %v2560_v20, %v2561_v14 }
 0x955   :  { %2563 = vmax.xlane.f32.xlu0 %v2562_v32 }
 0x9e2   :  { %v2564_v26 = vpop.xlane.xlu0 %2563 }
 0x9e3   :  { %v2565_v4 = vrot.slane %v2564_v26, 4 }
 0x9e5   :  { %v2566_v11 = vmax.f32 %v2564_v26, %v2565_v4 }
 0x9e7   :  { %v2567_v61 = vrot.slane %v2566_v11, 2 }
 0x9e9   :  { %v2568_v62 = vmax.f32 %v2566_v11, %v2567_v61 }
 0x9eb   :  { %v2569_v22 = vrot.slane %v2568_v62, 1 }
 0x9ed   :  { %v2570_v37 = vmax.f32 %v2568_v62, %v2569_v22 }
 0x9ef   :  { %5804 = vpush %v2570_v37 }
 0xa20   :  { %s5805_s12 = spop %5804 }
 0xa21   :  { %v2572_v51 = vstv %s5805_s12 }
 0xa22   :  { %v2573_v30 = vsub.f32 %v2485_v25, %v2572_v51  ;;  %v2574_v23 = vsub.f32 %v2488_v5, %v2572_v51  ;;  %v2575_v7 = vsub.f32 %v5674_v41, %v2572_v51  ;;  %v2576_v50 = vsub.f32 %v5675_v56, %v2572_v51 }
 0xa23   :  { %v2577_v60 = vsub.f32 %v2501_v8, %v2572_v51  ;;  %v2578_v34 = vsub.f32 %v2504_v48, %v2572_v51  ;;  %v2579_v32 = vsub.f32 %v5678_v45, %v2572_v51  ;;  %v2580_v53 = vsub.f32 %v5679_v0, %v2572_v51 }
 0xa24   :  { %v2589_v59 = vmul.f32 1.442695, %v2573_v30  ;;  %v2591_v19 = vmul.f32 1.442695, %v2574_v23  ;;  %v2593_v6 = vmul.f32 1.442695, %v2575_v7  ;;  %v2581_v11 = vsub.f32 %v2517_v54, %v2572_v51 }
 0xa25   :  { %v2595_v14 = vmul.f32 1.442695, %v2576_v50  ;;  %v2597_v20 = vmul.f32 1.442695, %v2577_v60  ;;  %v2599_v22 = vmul.f32 1.442695, %v2578_v34  ;;  %v2582_v37 = vsub.f32 %v2520_v57, %v2572_v51 }
 0xa26   :  { %6059 = vpow2.f32 %v2589_v59  ;;  %v2601_v62 = vmul.f32 1.442695, %v2579_v32  ;;  %v2583_v25 = vsub.f32 %v5682_v24, %v2572_v51  ;;  %v2603_v41 = vmul.f32 1.442695, %v2580_v53 }
 0xa27   :  { %6061 = vpow2.f32 %v2591_v19  ;;  %v2584_v56 = vsub.f32 %v5683_v43, %v2572_v51  ;;  %v2605_v5 = vmul.f32 1.442695, %v2581_v11  ;;  %v2585_v8 = vsub.f32 %v2533_v15, %v2572_v51 }
 0xa28   :  { %6063 = vpow2.f32 %v2593_v6  ;;  %v2607_v7 = vmul.f32 1.442695, %v2582_v37  ;;  %v2586_v23 = vsub.f32 %v2536_v18, %v2572_v51  ;;  %v2609_v45 = vmul.f32 1.442695, %v2583_v25 }
 0xa29   :  { %6065 = vpow2.f32 %v2595_v14  ;;  %v2587_v60 = vsub.f32 %v7300_v31, %v2572_v51  ;;  %v2611_v0 = vmul.f32 1.442695, %v2584_v56  ;;  %v2588_v48 = vsub.f32 %v7303_v58, %v2572_v51 }
 0xa2a   :  { %6067 = vpow2.f32 %v2597_v20  ;;  %v2613_v54 = vmul.f32 1.442695, %v2585_v8  ;;  %v2615_v24 = vmul.f32 1.442695, %v2586_v23 }
 0xa2b   :  { %6069 = vpow2.f32 %v2599_v22  ;;  %v2617_v43 = vmul.f32 1.442695, %v2587_v60  ;;  %v2619_v18 = vmul.f32 1.442695, %v2588_v48 }
 0xa2c   :  { %6071 = vpow2.f32 %v2601_v62 }
 0xa2d   :  { %6073 = vpow2.f32 %v2603_v41 }
 0xa2e   :  { %6075 = vpow2.f32 %v2605_v5 }
 0xa2f   :  { %6077 = vpow2.f32 %v2607_v7 }
 0xa30   :  { %v6060_v57 = vpop.eup %6059  ;;  %6079 = vpow2.f32 %v2609_v45 }
 0xa31   :  { %v6062_v26 = vpop.eup %6061  ;;  %v2621_v15 = vmul.f32 %v6060_v57, %v7243_v1  ;;  %6081 = vpow2.f32 %v2611_v0 }
 0xa32   :  { %v6064_v4 = vpop.eup %6063  ;;  %v2638_v61 = vpack.c.bf16 %v6062_v26, %v6060_v57  ;;  %v2622_v31 = vmul.f32 %v6062_v26, %v7245_v28  ;;  %6083 = vpow2.f32 %v2613_v54  ;;  %v5974_v26 = vld [vmem:[#allocation5 + $0x28] sm:$0xff]  }
 0xa33   :  { %v6066_v30 = vpop.eup %6065  ;;  %v2623_v58 = vmul.f32 %v6064_v4, %v7247_v39  ;;  %6085 = vpow2.f32 %v2615_v24 }
 0xa34   :  { %v6068_v51 = vpop.eup %6067  ;;  %2701 = vmatprep.subr.bf16.mxu1 %v2638_v61  ;;  %v2637_v50 = vpack.c.bf16 %v2622_v31, %v2621_v15  ;;  %v2640_v34 = vpack.c.bf16 %v6066_v30, %v6064_v4  ;;  %v2624_v59 = vmul.f32 %v6066_v30, %v7251_v17  ;;  %6087 = vpow2.f32 %v2617_v43  ;;  %v5975_v15 = vld [vmem:[#allocation5 + $0x30] sm:$0xff]   ;;  %v5979_v61 = vld [vmem:[#allocation14 + $0x104] ss:$16 sps:$4 sm:$0xff]   ;;  %v5980_v31 = vld [vmem:[#allocation14 + $0x108] ss:$16 sps:$4 sm:$0xff]  }
 0xa35   :  { %v6070_v19 = vpop.eup %6069  ;;  %v2625_v1 = vmul.f32 %v6068_v51, %v7253_v12  ;;  %6089 = vpow2.f32 %v2619_v18  ;;  %v5976_v18 = vld [vmem:[#allocation5 + $0x38] sm:$0xff]   ;;  %v5977_v4 = vld [vmem:[#allocation14 + $0x100] ss:$16 sps:$4 sm:$0xff]   ;;  %v5982_v30 = vld [vmem:[#allocation14 + $0x10c] ss:$16 sps:$4 sm:$0xff]   ;;  %3337 = vmatprep.subr.bf16.mxu0 %v5979_v61 }
 0xa36   :  { %v6072_v6 = vpop.eup %6071  ;;  %2702 = vmatpush1.bf16.msra.mxu1 %v2637_v50  ;;  %v2639_v32 = vpack.c.bf16 %v2624_v59, %v2623_v58  ;;  %v2642_v28 = vpack.c.bf16 %v6070_v19, %v6068_v51  ;;  %v2626_v14 = vmul.f32 %v6070_v19, %v7257_v16  ;;  %v5985_v58 = vld [vmem:[#allocation14 + $0x124] ss:$16 sps:$4 sm:$0xff]   ;;  %v5988_v51 = vld [vmem:[#allocation14 + $0x12c] ss:$16 sps:$4 sm:$0xff]   ;;  %3338 = vmatpush1.bf16.msra.mxu0 %v5977_v4  ;;  %v5983_v50 = vld [vmem:[#allocation14 + $0x120] ss:$16 sps:$4 sm:$0xff]  }
 0xa37   :  { %v6074_v53 = vpop.eup %6073  ;;  %2703 = vmatprep.subr.bf16.mxu1 %v2640_v34  ;;  %v2627_v39 = vmul.f32 %v6072_v6, %v7261_v10  ;;  %3339 = vmatprep.subr.bf16.mxu0 %v5985_v58  ;;  %v5986_v34 = vld [vmem:[#allocation14 + $0x128] ss:$16 sps:$4 sm:$0xff]   ;;  %v5991_v59 = vld [vmem:[#allocation14 + $0x144] ss:$16 sps:$4 sm:$0xff]   ;;  %v5994_v19 = vld [vmem:[#allocation14 + $0x14c] ss:$16 sps:$4 sm:$0xff]  }
 0xa38   :  { %v6076_v20 = vpop.eup %6075  ;;  %v2641_v11 = vpack.c.bf16 %v2626_v14, %v2625_v1  ;;  %v2644_v22 = vpack.c.bf16 %v6074_v53, %v6072_v6  ;;  %v2628_v17 = vmul.f32 %v6074_v53, %v7265_v2  ;;  %v5989_v1 = vld [vmem:[#allocation14 + $0x140] ss:$16 sps:$4 sm:$0xff]   ;;  %v5992_v6 = vld [vmem:[#allocation14 + $0x148] ss:$16 sps:$4 sm:$0xff]  }
 0xa39   :  { %v6078_v37 = vpop.eup %6077  ;;  %v2629_v62 = vmul.f32 %v6076_v20, %v7269_v33 }
 0xa3a   :  { %v6080_v12 = vpop.eup %6079  ;;  %2704 = vmatpush1.bf16.msra.mxu1 %v2639_v32  ;;  %v2643_v25 = vpack.c.bf16 %v2628_v17, %v2627_v39  ;;  %v2646_v41 = vpack.c.bf16 %v6078_v37, %v6076_v20  ;;  %v2630_v56 = vmul.f32 %v6078_v37, %v7273_v44  ;;  %3340 = vmatpush1.bf16.msra.mxu0 %v5983_v50  ;;  %v6319_v17 = vld [vmem:[#allocation16] ss:$2 sm:$0xf] }
 0xa3b   :  { %v6082_v5 = vpop.eup %6081  ;;  %2705 = vmatprep.subr.bf16.mxu1 %v2642_v28  ;;  %v2631_v16 = vmul.f32 %v6080_v12, %v7277_v47  ;;  %3341 = vmatprep.subr.bf16.mxu0 %v5991_v59 }
 0xa3c   :  { %v6084_v8 = vpop.eup %6083  ;;  %v2645_v10 = vpack.c.bf16 %v2630_v56, %v2629_v62  ;;  %v2648_v7 = vpack.c.bf16 %v6082_v5, %v6080_v12  ;;  %v2632_v23 = vmul.f32 %v6082_v5, %v7281_v3  ;;  %v5969_v3 = vld [vmem:[#allocation5] sm:$0xff]   ;;  %v1416_v12 = vld [vmem:[#allocation19] sm:$0x3] }
 0xa3d   :  { %v6086_v45 = vpop.eup %6085  ;;  %v2633_v2 = vmul.f32 %v6084_v8, %v7285_v55  ;;  %v5970_v55 = vld [vmem:[#allocation5 + $0x8] sm:$0xff]  }
 0xa3e   :  { %v6088_v60 = vpop.eup %6087  ;;  %2706 = vmatpush1.bf16.msra.mxu1 %v2641_v11  ;;  %v2647_v33 = vpack.c.bf16 %v2632_v23, %v2631_v16  ;;  %v2650_v0 = vpack.c.bf16 %v6086_v45, %v6084_v8  ;;  %v2634_v48 = vmul.f32 %v6086_v45, %v7289_v35  ;;  %v5971_v35 = vld [vmem:[#allocation5 + $0x10] sm:$0xff]   ;;  %3342 = vmatpush1.bf16.msra.mxu0 %v5989_v1  ;;  %v8008_v11 = vsub.s32 3, %v7112_v38 }
 0xa3f   :  { %v6090_v54 = vpop.eup %6089  ;;  %2707 = vmatprep.subr.bf16.mxu1 %v2644_v22  ;;  %v2635_v44 = vmul.f32 %v6088_v60, %v7293_v46  ;;  %v5972_v46 = vld [vmem:[#allocation5 + $0x18] sm:$0xff]   ;;  %v7342_v8 = vrot.slane %v1416_v12, %v7115_v29 }
 0xa40   :  { %v2649_v24 = vpack.c.bf16 %v2634_v48, %v2633_v2  ;;  %v2652_v47 = vpack.c.bf16 %v6090_v54, %v6088_v60  ;;  %v2636_v57 = vmul.f32 %v6090_v54, %v7297_v13  ;;  %v5973_v13 = vld [vmem:[#allocation5 + $0x20] sm:$0xff]   ;;  %v7335_v37 = vrot.slane %v6319_v17, %v8008_v11 }
 0xa42   :  { %2708 = vmatpush1.bf16.msra.mxu1 %v2643_v25  ;;  %v2651_v43 = vpack.c.bf16 %v2636_v57, %v2635_v44  ;;  %v7339_v16 = vadd.f32 %v7131_v49, %v7335_v37  ;;  %v7349_v23 = vadd.f32 %v7137_v52, %v7335_v37  ;;  %v7385_v59 = vadd.f32 %v7151_v27, %v7335_v37 }
 0xa43   :  { %2709 = vmatprep.subr.bf16.mxu1 %v2646_v41 }
 0xa44   :  { %v2866_v49 = vmul.f32 %v7342_v8, %v7339_v16  ;;  %v2867_v52 = vmul.f32 %v7342_v8, %v7349_v23 }
 0xa46   :  { %2710 = vmatpush1.bf16.msra.mxu1 %v2645_v10  ;;  %v7345_v10 = vrot.slane %v1416_v12, %v7119_v42 }
 0xa47   :  { %2711 = vmatprep.subr.bf16.mxu1 %v2648_v7 }
 0xa4a   :  { %2712 = vmatpush1.bf16.msra.mxu1 %v2647_v33 }
 0xa4b   :  { %2713 = vmatprep.subr.bf16.mxu1 %v2650_v0 }
 0xa4e   :  { %2714 = vmatpush1.bf16.msra.mxu1 %v2649_v24 }
 0xa4f   :  { %2715 = vmatprep.subr.bf16.mxu1 %v2652_v47 }
 0xa52   :  { %2716 = vmatpush1.bf16.msra.mxu1 %v2651_v43 }
 0xa53   :  { %3450 = vmatprep.subr.bf16.mxu1 %v5982_v30 }
 0xa55   :  { %2734 = vmatmul.mubr.bf16.vlgmr.msra.gmra.mrb[112].mxu1 %v5969_v3  ;;  %v7365_v3 = vadd.f32 %v7141_v63, %v7335_v37 }
 0xa56   :  { %2743 = vmatprep.mubr.bf16.mxu1 %v8026_v40  ;;  %3451 = vmatpush1.bf16.msra.mxu1 %v5980_v31 }
 0xa57   :  { %3452 = vmatprep.subr.bf16.mxu1 %v5988_v51 }
 0xa5a   :  { %3453 = vmatpush1.bf16.msra.mxu1 %v5986_v34 }
 0xa5b   :  { %3454 = vmatprep.subr.bf16.mxu1 %v5994_v19 }
 0xa5d   :  { %2744 = vmatmul.mubr.bf16.gmra.mrb[116].mxu1 %v5970_v55 }
 0xa5e   :  { %2753 = vmatprep.mubr.bf16.mxu1 %v8026_v40  ;;  %3455 = vmatpush1.bf16.msra.mxu1 %v5992_v6  ;;  %v7389_v6 = vadd.f32 %v7157_v36, %v7335_v37 }
 0xa60   :  { %v2871_v36 = vmul.f32 %v7342_v8, %v7389_v6 }
 0xa65   :  { %2754 = vmatmul.mubr.bf16.gmra.mrb[120].mxu1 %v5971_v35 }
 0xa66   :  { %2763 = vmatprep.mubr.bf16.mxu1 %v8026_v40 }
 0xa6d   :  { %2764 = vmatmul.mubr.bf16.gmra.mrb[124].mxu1 %v5972_v46  ;;  %v7369_v46 = vadd.f32 %v7147_v9, %v7335_v37 }
 0xa6e   :  { %2773 = vmatprep.mubr.bf16.mxu1 %v8026_v40 }
 0xa6f   :  { %v2869_v9 = vmul.f32 %v7342_v8, %v7369_v46 }
 0xa75   :  { %2774 = vmatmul.mubr.bf16.gmra.mrb[128].mxu1 %v5973_v13 }
 0xa76   :  { %2783 = vmatprep.mubr.bf16.mxu1 %v8026_v40 }
 0xa7d   :  { %2784 = vmatmul.mubr.bf16.gmra.mrb[132].mxu1 %v5974_v26 }
 0xa7e   :  { %2793 = vmatprep.mubr.bf16.mxu1 %v8026_v40 }
 0xa85   :  { %2794 = vmatmul.mubr.bf16.gmra.mrb[136].mxu1 %v5975_v15 }
 0xa86   :  { %2803 = vmatprep.mubr.bf16.mxu1 %v8026_v40 }
 0xa8d   :  { %2804 = vmatmul.mubr.bf16.gmra.mrb[140].mxu1 %v5976_v18  ;;  %v2868_v18 = vmul.f32 %v7342_v8, %v7365_v3 }
 0xa8e   :  { %3482 = vmatprep.mubr.bf16.mxu1 %v8026_v40 }
 0xb28   :  { %v2735_v32 = vpop.f32.mrb[112].mxu1 }
 0xb29   :  { %v2737_v28 = vpop.f32.mrb[113].mxu1 }
 0xb2a   :  { %v2814_v14 = vmax.f32 %v2737_v28, 1e-20  ;;  %v2739_v53 = vpop.f32.mrb[114].mxu1 }
 0xb2b   :  { %v2741_v39 = vpop.f32.mrb[115].mxu1 }
 0xb2c   :  { %6091 = vrcp.f32 %v2814_v14  ;;  %v2815_v20 = vmax.f32 %v2741_v39, 1e-20 }
 0xb2e   :  { %6093 = vrcp.f32 %v2815_v20 }
 0xb30   :  { %v2745_v22 = vpop.f32.mrb[116].mxu1 }
 0xb31   :  { %v2747_v62 = vpop.f32.mrb[117].mxu1 }
 0xb32   :  { %v2816_v25 = vmax.f32 %v2747_v62, 1e-20  ;;  %v2749_v41 = vpop.f32.mrb[118].mxu1 }
 0xb33   :  { %v2751_v56 = vpop.f32.mrb[119].mxu1 }
 0xb34   :  { %6095 = vrcp.f32 %v2816_v25  ;;  %v2817_v5 = vmax.f32 %v2751_v56, 1e-20  ;;  %v7405_v56 = vadd.f32 %v7161_v21, %v7335_v37 }
 0xb36   :  { %v6092_v7 = vpop.eup %6091  ;;  %6097 = vrcp.f32 %v2817_v5 }
 0xb37   :  { %v7351_v45 = vmul.f32 %v6092_v7, %v2735_v32 }
 0xb38   :  { %v6094_v2 = vpop.eup %6093  ;;  %v2755_v60 = vpop.f32.mrb[120].mxu1 }
 0xb39   :  { %v2757_v33 = vpop.f32.mrb[121].mxu1  ;;  %v2886_v0 = vmul.f32 %v7345_v10, %v7351_v45  ;;  %v7357_v48 = vmul.f32 %v6094_v2, %v2739_v53  ;;  %v2870_v53 = vmul.f32 %v7342_v8, %v7385_v59  ;;  %v8027_v2 = vld [vmem:[#allocation40_spill] sm:$0xff] }
 0xb3a   :  { %v2818_v54 = vmax.f32 %v2757_v33, 1e-20  ;;  %v2759_v44 = vpop.f32.mrb[122].mxu1 }
 0xb3b   :  { %v2761_v24 = vpop.f32.mrb[123].mxu1  ;;  %v2902_v47 = vadd.f32 %v2886_v0, %v2866_v49  ;;  %v2887_v57 = vmul.f32 %v7345_v10, %v7357_v48 }
 0xb3c   :  { %6099 = vrcp.f32 %v2818_v54  ;;  %v2819_v43 = vmax.f32 %v2761_v24, 1e-20  ;;  %v2872_v54 = vmul.f32 %v7342_v8, %v7405_v56 }
 0xb3d   :  { %2918 = vadd.xlane.f32.xlu0 %v2902_v47  ;;  %v2903_v55 = vadd.f32 %v2887_v57, %v2867_v52 }
 0xb3e   :  { %v6096_v35 = vpop.eup %6095  ;;  %6101 = vrcp.f32 %v2819_v43 }
 0xb3f   :  { %2920 = vadd.xlane.f32.xlu1 %v2903_v55  ;;  %v7371_v13 = vmul.f32 %v6096_v35, %v2745_v22 }
 0xb40   :  { %v6098_v26 = vpop.eup %6097  ;;  %v2765_v15 = vpop.f32.mrb[124].mxu1 }
 0xb41   :  { %v2767_v4 = vpop.f32.mrb[125].mxu1  ;;  %v2888_v63 = vmul.f32 %v7345_v10, %v7371_v13  ;;  %v7377_v61 = vmul.f32 %v6098_v26, %v2749_v41 }
 0xb42   :  { %v2820_v31 = vmax.f32 %v2767_v4, 1e-20  ;;  %v2769_v30 = vpop.f32.mrb[126].mxu1 }
 0xb43   :  { %v2771_v58 = vpop.f32.mrb[127].mxu1  ;;  %v2904_v51 = vadd.f32 %v2888_v63, %v2868_v18  ;;  %v2889_v50 = vmul.f32 %v7345_v10, %v7377_v61 }
 0xb44   :  { %6103 = vrcp.f32 %v2820_v31  ;;  %v2821_v34 = vmax.f32 %v2771_v58, 1e-20  ;;  %v8029_v31 = vld [vmem:[#allocation42_spill] sm:$0xff] }
 0xb45   :  { %2922 = vadd.xlane.f32.xlu1 %v2904_v51  ;;  %v2905_v19 = vadd.f32 %v2889_v50, %v2869_v9 }
 0xb46   :  { %v6100_v1 = vpop.eup %6099  ;;  %6105 = vrcp.f32 %v2821_v34 }
 0xb47   :  { %2924 = vadd.xlane.f32.xlu0 %v2905_v19  ;;  %v7391_v32 = vmul.f32 %v6100_v1, %v2755_v60  ;;  %v7409_v60 = vadd.f32 %v8027_v2, %v7335_v37 }
 0xb48   :  { %v6102_v28 = vpop.eup %6101  ;;  %v2775_v14 = vpop.f32.mrb[128].mxu1 }
 0xb49   :  { %v2777_v39 = vpop.f32.mrb[129].mxu1  ;;  %v2890_v27 = vmul.f32 %v7345_v10, %v7391_v32  ;;  %v7397_v20 = vmul.f32 %v6102_v28, %v2759_v44  ;;  %v2873_v57 = vmul.f32 %v7342_v8, %v7409_v60 }
 0xb4a   :  { %v2822_v22 = vmax.f32 %v2777_v39, 1e-20  ;;  %v2779_v17 = vpop.f32.mrb[130].mxu1 }
 0xb4b   :  { %v2781_v62 = vpop.f32.mrb[131].mxu1  ;;  %v2906_v12 = vadd.f32 %v2890_v27, %v2870_v53  ;;  %v2891_v25 = vmul.f32 %v7345_v10, %v7397_v20 }
 0xb4c   :  { %6107 = vrcp.f32 %v2822_v22  ;;  %v2823_v41 = vmax.f32 %v2781_v62, 1e-20  ;;  %v8030_v62 = vld [vmem:[#allocation43_spill] sm:$0xff] }
 0xb4d   :  { %2926 = vadd.xlane.f32.xlu1 %v2906_v12  ;;  %v2907_v5 = vadd.f32 %v2891_v25, %v2871_v36  ;;  %v7445_v12 = vadd.f32 %v8030_v62, %v7335_v37  ;;  %v6000_v62 = vld [vmem:[#allocation14 + $0x16c] ss:$16 sps:$4 sm:$0xff]  }
 0xb4e   :  { %v6104_v7 = vpop.eup %6103  ;;  %6109 = vrcp.f32 %v2823_v41  ;;  %v8031_v41 = vld [vmem:[#allocation44_spill] sm:$0xff]  ;;  %3456 = vmatprep.subr.bf16.mxu1 %v6000_v62 }
 0xb4f   :  { %2928 = vadd.xlane.f32.xlu0 %v2907_v5  ;;  %v7411_v49 = vmul.f32 %v6104_v7, %v2765_v15  ;;  %v8028_v15 = vld [vmem:[#allocation41_spill] sm:$0xff]  ;;  %v7449_v5 = vadd.f32 %v8031_v41, %v7335_v37 }
 0xb50   :  { %v6106_v33 = vpop.eup %6105  ;;  %v2785_v0 = vpop.f32.mrb[132].mxu1  ;;  %v7425_v18 = vadd.f32 %v8028_v15, %v7335_v37  ;;  %v6018_v62 = vld [vmem:[#allocation14 + $0x1cc] ss:$16 sps:$4 sm:$0xff]  }
 0xb51   :  { %v2787_v44 = vpop.f32.mrb[133].mxu1  ;;  %v2892_v21 = vmul.f32 %v7345_v10, %v7411_v49  ;;  %v7417_v24 = vmul.f32 %v6106_v33, %v2769_v30  ;;  %v7429_v30 = vadd.f32 %v8029_v31, %v7335_v37 }
 0xb52   :  { %v2824_v47 = vmax.f32 %v2787_v44, 1e-20  ;;  %v2789_v52 = vpop.f32.mrb[134].mxu1  ;;  %v2874_v50 = vmul.f32 %v7342_v8, %v7425_v18 }
 0xb53   :  { %v2791_v43 = vpop.f32.mrb[135].mxu1  ;;  %v2908_v55 = vadd.f32 %v2892_v21, %v2872_v54  ;;  %v2893_v35 = vmul.f32 %v7345_v10, %v7417_v24  ;;  %v2875_v39 = vmul.f32 %v7342_v8, %v7429_v30  ;;  %v2876_v54 = vmul.f32 %v7342_v8, %v7445_v12 }
 0xb54   :  { %6111 = vrcp.f32 %v2824_v47  ;;  %v2825_v26 = vmax.f32 %v2791_v43, 1e-20 }
 0xb55   :  { %2930 = vadd.xlane.f32.xlu1 %v2908_v55  ;;  %v2909_v4 = vadd.f32 %v2893_v35, %v2873_v57  ;;  %v2877_v55 = vmul.f32 %v7342_v8, %v7449_v5 }
 0xb56   :  { %v6108_v63 = vpop.eup %6107  ;;  %6113 = vrcp.f32 %v2825_v26 }
 0xb57   :  { %2932 = vadd.xlane.f32.xlu0 %v2909_v4  ;;  %v7431_v9 = vmul.f32 %v6108_v63, %v2775_v14  ;;  %v8032_v4 = vld [vmem:[#allocation45_spill] sm:$0xff] }
 0xb58   :  { %v6110_v58 = vpop.eup %6109  ;;  %v2795_v51 = vpop.f32.mrb[136].mxu1  ;;  %v7465_v63 = vadd.f32 %v8032_v4, %v7335_v37  ;;  %v6012_v4 = vld [vmem:[#allocation14 + $0x1ac] ss:$16 sps:$4 sm:$0xff]  }
 0xb59   :  { %v2797_v34 = vpop.f32.mrb[137].mxu1  ;;  %v2894_v19 = vmul.f32 %v7345_v10, %v7431_v9  ;;  %v7437_v1 = vmul.f32 %v6110_v58, %v2779_v17  ;;  %v8033_v58 = vld [vmem:[#allocation46_spill] sm:$0xff] }
 0xb5a   :  { %v2826_v28 = vmax.f32 %v2797_v34, 1e-20  ;;  %v2799_v53 = vpop.f32.mrb[138].mxu1 }
 0xb5b   :  { %v2801_v27 = vpop.f32.mrb[139].mxu1  ;;  %v2910_v22 = vadd.f32 %v2894_v19, %v2874_v50  ;;  %v2895_v14 = vmul.f32 %v7345_v10, %v7437_v1  ;;  %v7469_v50 = vadd.f32 %v8033_v58, %v7335_v37 }
 0xb5c   :  { %6115 = vrcp.f32 %v2826_v28  ;;  %v2827_v36 = vmax.f32 %v2801_v27, 1e-20  ;;  %v2878_v28 = vmul.f32 %v7342_v8, %v7465_v63 }
 0xb5d   :  { %2934 = vadd.xlane.f32.xlu1 %v2910_v22  ;;  %v2911_v25 = vadd.f32 %v2895_v14, %v2875_v39  ;;  %v5995_v22 = vld [vmem:[#allocation14 + $0x160] ss:$16 sps:$4 sm:$0xff]   ;;  %v5997_v14 = vld [vmem:[#allocation14 + $0x164] ss:$16 sps:$4 sm:$0xff]  }
 0xb5e   :  { %v6112_v17 = vpop.eup %6111  ;;  %6117 = vrcp.f32 %v2827_v36  ;;  %v5998_v36 = vld [vmem:[#allocation14 + $0x168] ss:$16 sps:$4 sm:$0xff]   ;;  %3343 = vmatprep.subr.bf16.mxu0 %v5997_v14 }
 0xb5f   :  { %2936 = vadd.xlane.f32.xlu0 %v2911_v25  ;;  %v7451_v7 = vmul.f32 %v6112_v17, %v2785_v0  ;;  %v6003_v25 = vld [vmem:[#allocation14 + $0x184] ss:$16 sps:$4 sm:$0xff]   ;;  %v2879_v17 = vmul.f32 %v7342_v8, %v7469_v50  ;;  %3344 = vmatpush1.bf16.msra.mxu0 %v5995_v22 }
 0xb60   :  { %v6114_v2 = vpop.eup %6113  ;;  %v2805_v33 = vpop.f32.mrb[140].mxu1  ;;  %3457 = vmatpush1.bf16.msra.mxu1 %v5998_v36  ;;  %3345 = vmatprep.subr.bf16.mxu0 %v6003_v25  ;;  %v6015_v36 = vld [vmem:[#allocation14 + $0x1c4] ss:$16 sps:$4 sm:$0xff]   ;;  %v6013_v25 = vld [vmem:[#allocation14 + $0x1c0] ss:$16 sps:$4 sm:$0xff]  }
 0xb61   :  { %v2807_v44 = vpop.f32.mrb[141].mxu1  ;;  %v2896_v21 = vmul.f32 %v7345_v10, %v7451_v7  ;;  %v7457_v47 = vmul.f32 %v6114_v2, %v2789_v52  ;;  %v6006_v2 = vld [vmem:[#allocation14 + $0x18c] ss:$16 sps:$4 sm:$0xff]  }
 0xb62   :  { %v2828_v57 = vmax.f32 %v2807_v44, 1e-20  ;;  %v2809_v43 = vpop.f32.mrb[142].mxu1  ;;  %3458 = vmatprep.subr.bf16.mxu1 %v6006_v2 }
 0xb63   :  { %v2811_v35 = vpop.f32.mrb[143].mxu1  ;;  %v2912_v26 = vadd.f32 %v2896_v21, %v2876_v54  ;;  %v2897_v0 = vmul.f32 %v7345_v10, %v7457_v47  ;;  %v6001_v54 = vld [vmem:[#allocation14 + $0x180] ss:$16 sps:$4 sm:$0xff]  }
 0xb64   :  { %6119 = vrcp.f32 %v2828_v57  ;;  %v2829_v15 = vmax.f32 %v2811_v35, 1e-20  ;;  %v6004_v57 = vld [vmem:[#allocation14 + $0x188] ss:$16 sps:$4 sm:$0xff]   ;;  %v6009_v35 = vld [vmem:[#allocation14 + $0x1a4] ss:$16 sps:$4 sm:$0xff]   ;;  %3346 = vmatpush1.bf16.msra.mxu0 %v6001_v54 }
 0xb65   :  { %2938 = vadd.xlane.f32.xlu1 %v2912_v26  ;;  %v2913_v31 = vadd.f32 %v2897_v0, %v2877_v55  ;;  %v8035_v26 = vld [vmem:[#allocation48_spill] sm:$0xff]  ;;  %3459 = vmatpush1.bf16.msra.mxu1 %v6004_v57 }
 0xb66   :  { %v6116_v52 = vpop.eup %6115  ;;  %6121 = vrcp.f32 %v2829_v15  ;;  %v7489_v0 = vadd.f32 %v8035_v26, %v7335_v37  ;;  %3347 = vmatprep.subr.bf16.mxu0 %v6009_v35  ;;  %3460 = vmatprep.subr.bf16.mxu1 %v6012_v4 }
 0xb67   :  { %2940 = vadd.xlane.f32.xlu0 %v2913_v31  ;;  %v7471_v34 = vmul.f32 %v6116_v52, %v2795_v51  ;;  %v6007_v52 = vld [vmem:[#allocation14 + $0x1a0] ss:$16 sps:$4 sm:$0xff]  }
 0xb68   :  { %v6118_v19 = vpop.eup %6117  ;;  %3348 = vmatpush1.bf16.msra.mxu0 %v6007_v52 }
 0xb69   :  { %v2898_v39 = vmul.f32 %v7345_v10, %v7471_v34  ;;  %v7477_v27 = vmul.f32 %v6118_v19, %v2799_v53  ;;  %v8034_v53 = vld [vmem:[#allocation47_spill] sm:$0xff]  ;;  %3349 = vmatprep.subr.bf16.mxu0 %v6015_v36 }
 0xb6a   :  { %v7485_v44 = vadd.f32 %v8034_v53, %v7335_v37  ;;  %v2881_v37 = vmul.f32 %v7342_v8, %v7489_v0 }
 0xb6b   :  { %v2914_v41 = vadd.f32 %v2898_v39, %v2878_v28  ;;  %v2899_v51 = vmul.f32 %v7345_v10, %v7477_v27  ;;  %v6010_v39 = vld [vmem:[#allocation14 + $0x1a8] ss:$16 sps:$4 sm:$0xff]  }
 0xb6c   :  { %v2880_v58 = vmul.f32 %v7342_v8, %v7485_v44  ;;  %3461 = vmatpush1.bf16.msra.mxu1 %v6010_v39  ;;  %3350 = vmatpush1.bf16.msra.mxu0 %v6013_v25  ;;  %v6019_v8 = vld [vmem:[#allocation14 + $0x1e0] ss:$16 sps:$4 sm:$0xff]  }
 0xb6d   :  { %2942 = vadd.xlane.f32.xlu1 %v2914_v41  ;;  %v2915_v21 = vadd.f32 %v2899_v51, %v2879_v17  ;;  %3462 = vmatprep.subr.bf16.mxu1 %v6018_v62  ;;  %v6021_v17 = vld [vmem:[#allocation14 + $0x1e4] ss:$16 sps:$4 sm:$0xff]   ;;  %v6024_v41 = vld [vmem:[#allocation14 + $0x1ec] ss:$16 sps:$4 sm:$0xff]   ;;  %v6022_v51 = vld [vmem:[#allocation14 + $0x1e8] ss:$16 sps:$4 sm:$0xff]  }
 0xb6e   :  { %v6120_v55 = vpop.eup %6119  ;;  %3351 = vmatprep.subr.bf16.mxu0 %v6021_v17 }
 0xb6f   :  { %2944 = vadd.xlane.f32.xlu0 %v2915_v21  ;;  %v7491_v15 = vmul.f32 %v6120_v55, %v2805_v33 }
 0xb70   :  { %v6122_v31 = vpop.eup %6121  ;;  %3352 = vmatpush1.bf16.msra.mxu0 %v6019_v8 }
 0xb71   :  { %v2900_v19 = vmul.f32 %v7345_v10, %v7491_v15  ;;  %v7497_v28 = vmul.f32 %v6122_v31, %v2809_v43  ;;  %v6016_v43 = vld [vmem:[#allocation14 + $0x1c8] ss:$16 sps:$4 sm:$0xff]  }
 0xb72   :  { %3463 = vmatpush1.bf16.msra.mxu1 %v6016_v43 }
 0xb73   :  { %v2916_v33 = vadd.f32 %v2900_v19, %v2880_v58  ;;  %v2901_v22 = vmul.f32 %v7345_v10, %v7497_v28  ;;  %3464 = vmatprep.subr.bf16.mxu1 %v6024_v41  ;;  %v7503_v10 = vld [vmem:[#allocation17 + $0x40] sm:$0xff]  }
 0xb74   :  { %5688 = vmatprep.subr.bf16.mxu0 %v7503_v10 }
 0xb75   :  { %2946 = vadd.xlane.f32.xlu1 %v2916_v33  ;;  %v2917_v14 = vadd.f32 %v2901_v22, %v2881_v37 }
 0xb76   :  { %3465 = vmatpush1.bf16.msra.mxu1 %v6022_v51 }
 0xb77   :  { %2948 = vadd.xlane.f32.xlu0 %v2917_v14 }
 0xbca   :  { %v2919_v2 = vpop.xlane.xlu0 %2918 }
 0xbcb   :  { %v2950_v54 = vsub.f32 0.0, %v2919_v2 }
 0xbcc   :  { %v2921_v53 = vpop.xlane.xlu1 %2920 }
 0xbcd   :  { %v2966_v21 = vmul.f32 1.442695, %v2950_v54  ;;  %v2951_v57 = vsub.f32 0.0, %v2921_v53 }
 0xbcf   :  { %6123 = vpow2.f32 %v2966_v21  ;;  %v2968_v55 = vmul.f32 1.442695, %v2951_v57 }
 0xbd1   :  { %6125 = vpow2.f32 %v2968_v55 }
 0xbd2   :  { %v2923_v35 = vpop.xlane.xlu1 %2922 }
 0xbd3   :  { %v2952_v26 = vsub.f32 0.0, %v2923_v35 }
 0xbd4   :  { %v2925_v4 = vpop.xlane.xlu0 %2924 }
 0xbd5   :  { %v2970_v31 = vmul.f32 1.442695, %v2952_v26  ;;  %v2953_v52 = vsub.f32 0.0, %v2925_v4 }
 0xbd7   :  { %6127 = vpow2.f32 %v2970_v31  ;;  %v2972_v58 = vmul.f32 1.442695, %v2953_v52 }
 0xbd9   :  { %v6124_v19 = vpop.eup %6123  ;;  %6129 = vpow2.f32 %v2972_v58 }
 0xbda   :  { %v2998_v39 = vadd.f32 1.0, %v6124_v19  ;;  %v2927_v37 = vpop.xlane.xlu1 %2926 }
 0xbdb   :  { %v6126_v33 = vpop.eup %6125  ;;  %v2954_v22 = vsub.f32 0.0, %v2927_v37 }
 0xbdc   :  { %6131 = vrcp.f32 %v2998_v39  ;;  %v2999_v14 = vadd.f32 1.0, %v6126_v33  ;;  %v2929_v36 = vpop.xlane.xlu0 %2928 }
 0xbdd   :  { %v2974_v62 = vmul.f32 1.442695, %v2954_v22  ;;  %v2955_v25 = vsub.f32 0.0, %v2929_v36 }
 0xbde   :  { %6133 = vrcp.f32 %v2999_v14 }
 0xbdf   :  { %6135 = vpow2.f32 %v2974_v62  ;;  %v2976_v43 = vmul.f32 1.442695, %v2955_v25 }
 0xbe1   :  { %v6128_v17 = vpop.eup %6127  ;;  %6137 = vpow2.f32 %v2976_v43 }
 0xbe2   :  { %v3000_v41 = vadd.f32 1.0, %v6128_v17  ;;  %v2931_v8 = vpop.xlane.xlu1 %2930 }
 0xbe3   :  { %v6130_v51 = vpop.eup %6129  ;;  %v2956_v2 = vsub.f32 0.0, %v2931_v8 }
 0xbe4   :  { %6139 = vrcp.f32 %v3000_v41  ;;  %v3001_v54 = vadd.f32 1.0, %v6130_v51  ;;  %v2933_v53 = vpop.xlane.xlu0 %2932 }
 0xbe5   :  { %v2978_v21 = vmul.f32 1.442695, %v2956_v2  ;;  %v2957_v57 = vsub.f32 0.0, %v2933_v53 }
 0xbe6   :  { %v6132_v55 = vpop.eup %6131  ;;  %6141 = vrcp.f32 %v3001_v54 }
 0xbe7   :  { %v3046_v35 = vsub.f32 1.0, %v6132_v55  ;;  %6143 = vpow2.f32 %v2978_v21  ;;  %v2980_v26 = vmul.f32 1.442695, %v2957_v57  ;;  %v3030_v33 = vmul.f32 %v6132_v55, %v7339_v16  ;;  %v6026_v16 = vld [vmem:[#allocation17 + $0x48] sm:$0xff]  }
 0xbe8   :  { %v6134_v4 = vpop.eup %6133 }
 0xbe9   :  { %v6136_v31 = vpop.eup %6135  ;;  %v3047_v52 = vsub.f32 1.0, %v6134_v4  ;;  %6145 = vpow2.f32 %v2980_v26  ;;  %v3062_v58 = vmul.f32 %v3046_v35, %v7351_v45  ;;  %v3031_v22 = vmul.f32 %v6134_v4, %v7349_v23 }
 0xbea   :  { %v3002_v19 = vadd.f32 1.0, %v6136_v31  ;;  %v2935_v39 = vpop.xlane.xlu1 %2934 }
 0xbeb   :  { %v6138_v37 = vpop.eup %6137  ;;  %v2958_v14 = vsub.f32 0.0, %v2935_v39  ;;  %v3063_v36 = vmul.f32 %v3047_v52, %v7357_v48  ;;  %v3078_v41 = vadd.f32 %v3062_v58, %v3030_v33  ;;  %v6027_v39 = vld [vmem:[#allocation17 + $0x50] sm:$0xff]  }
 0xbec   :  { %6147 = vrcp.f32 %v3002_v19  ;;  %v3003_v62 = vadd.f32 1.0, %v6138_v37  ;;  %v2937_v25 = vpop.xlane.xlu0 %2936 }
 0xbed   :  { %v2982_v43 = vmul.f32 1.442695, %v2958_v14  ;;  %v2959_v17 = vsub.f32 0.0, %v2937_v25  ;;  %v3079_v8 = vadd.f32 %v3063_v36, %v3031_v22 }
 0xbee   :  { %v6140_v51 = vpop.eup %6139  ;;  %6149 = vrcp.f32 %v3003_v62 }
 0xbef   :  { %6151 = vpow2.f32 %v2982_v43  ;;  %v2984_v45 = vmul.f32 1.442695, %v2959_v17  ;;  %v3094_v2 = vpack.c.bf16 %v3079_v8, %v3078_v41  ;;  %v3048_v53 = vsub.f32 1.0, %v6140_v51 }
 0xbf0   :  { %v6142_v54 = vpop.eup %6141  ;;  %v3032_v4 = vmul.f32 %v6140_v51, %v7365_v3 }
 0xbf1   :  { %v6144_v21 = vpop.eup %6143  ;;  %6153 = vpow2.f32 %v2984_v45  ;;  %3370 = vmatmul.mubr.bf16.vlgmr.msra.gmra.mrb[128].mxu0 %v3094_v2  ;;  %3483 = vmatmul.mubr.bf16.vlgmr.msra.gmra.mrb[144].mxu1 %v3094_v2  ;;  %v3049_v23 = vsub.f32 1.0, %v6142_v54  ;;  %v3064_v55 = vmul.f32 %v3048_v53, %v7371_v13  ;;  %v3033_v31 = vmul.f32 %v6142_v54, %v7369_v46 }
 0xbf2   :  { %v3004_v48 = vadd.f32 1.0, %v6144_v21  ;;  %v2939_v57 = vpop.xlane.xlu1 %2938  ;;  %3379 = vmatprep.mubr.bf16.mxu0 %v8026_v40  ;;  %3492 = vmatprep.mubr.bf16.mxu1 %v8026_v40  ;;  %v6029_v21 = vld [vmem:[#allocation17 + $0x60] sm:$0xff]  }
 0xbf3   :  { %v6146_v35 = vpop.eup %6145  ;;  %v2960_v26 = vsub.f32 0.0, %v2939_v57  ;;  %v3065_v52 = vmul.f32 %v3049_v23, %v7377_v61  ;;  %5689 = vmatpush3.bf16.msra.mxu0 %v7503_v10  ;;  %v3080_v22 = vadd.f32 %v3064_v55, %v3032_v4  ;;  %v6028_v61 = vld [vmem:[#allocation17 + $0x58] sm:$0xff]  }
 0xbf4   :  { %6155 = vrcp.f32 %v3004_v48  ;;  %v3005_v58 = vadd.f32 1.0, %v6146_v35  ;;  %v2941_v19 = vpop.xlane.xlu0 %2940  ;;  %5690 = vmatprep.subr.bf16.mxu0 %v6026_v16 }
 0xbf5   :  { %v2986_v37 = vmul.f32 1.442695, %v2960_v26  ;;  %v2961_v33 = vsub.f32 0.0, %v2941_v19  ;;  %v3081_v14 = vadd.f32 %v3065_v52, %v3033_v31 }
 0xbf6   :  { %v6148_v13 = vpop.eup %6147  ;;  %6157 = vrcp.f32 %v3005_v58 }
 0xbf7   :  { %6159 = vpow2.f32 %v2986_v37  ;;  %v2988_v36 = vmul.f32 1.442695, %v2961_v33  ;;  %v3095_v3 = vpack.c.bf16 %v3081_v14, %v3080_v22  ;;  %5691 = vmatpush3.bf16.msra.mxu0 %v6026_v16  ;;  %v3050_v62 = vsub.f32 1.0, %v6148_v13 }
 0xbf8   :  { %v6150_v46 = vpop.eup %6149  ;;  %5692 = vmatprep.subr.bf16.mxu0 %v6027_v39  ;;  %v3034_v45 = vmul.f32 %v6148_v13, %v7385_v59 }
 0xbf9   :  { %v6152_v10 = vpop.eup %6151  ;;  %6161 = vpow2.f32 %v2988_v36  ;;  %3380 = vmatmul.mubr.bf16.gmra.mrb[132].mxu0 %v3095_v3  ;;  %3493 = vmatmul.mubr.bf16.gmra.mrb[148].mxu1 %v3095_v3  ;;  %v3051_v25 = vsub.f32 1.0, %v6150_v46  ;;  %v3066_v41 = vmul.f32 %v3050_v62, %v7391_v32  ;;  %v3035_v2 = vmul.f32 %v6150_v46, %v7389_v6  ;;  %v6031_v3 = vld [vmem:[#allocation17 + $0x70] sm:$0xff]  }
 0xbfa   :  { %v3006_v43 = vadd.f32 1.0, %v6152_v10  ;;  %v2943_v17 = vpop.xlane.xlu1 %2942  ;;  %3389 = vmatprep.mubr.bf16.mxu0 %v8026_v40  ;;  %3502 = vmatprep.mubr.bf16.mxu1 %v8026_v40 }
 0xbfb   :  { %v6154_v8 = vpop.eup %6153  ;;  %v2962_v51 = vsub.f32 0.0, %v2943_v17  ;;  %v3067_v54 = vmul.f32 %v3051_v25, %v7397_v20  ;;  %5693 = vmatpush3.bf16.msra.mxu0 %v6027_v39  ;;  %v3082_v57 = vadd.f32 %v3066_v41, %v3034_v45  ;;  %v6030_v20 = vld [vmem:[#allocation17 + $0x68] sm:$0xff]  }
 0xbfc   :  { %6163 = vrcp.f32 %v3006_v43  ;;  %v3007_v53 = vadd.f32 1.0, %v6154_v8  ;;  %v2945_v16 = vpop.xlane.xlu0 %2944  ;;  %5694 = vmatprep.subr.bf16.mxu0 %v6028_v61 }
 0xbfd   :  { %v2990_v23 = vmul.f32 1.442695, %v2962_v51  ;;  %v2963_v48 = vsub.f32 0.0, %v2945_v16  ;;  %v3083_v55 = vadd.f32 %v3067_v54, %v3035_v2 }
 0xbfe   :  { %v6156_v35 = vpop.eup %6155  ;;  %6165 = vrcp.f32 %v3007_v53 }
 0xbff   :  { %6167 = vpow2.f32 %v2990_v23  ;;  %v2992_v32 = vmul.f32 1.442695, %v2963_v48  ;;  %v3096_v26 = vpack.c.bf16 %v3083_v55, %v3082_v57  ;;  %5695 = vmatpush3.bf16.msra.mxu0 %v6028_v61  ;;  %v3052_v6 = vsub.f32 1.0, %v6156_v35 }
 0xc00   :  { %v6158_v59 = vpop.eup %6157  ;;  %5696 = vmatprep.subr.bf16.mxu0 %v6029_v21  ;;  %v3036_v33 = vmul.f32 %v6156_v35, %v7405_v56 }
 0xc01   :  { %v6160_v4 = vpop.eup %6159  ;;  %6169 = vpow2.f32 %v2992_v32  ;;  %3390 = vmatmul.mubr.bf16.gmra.mrb[136].mxu0 %v3096_v26  ;;  %3503 = vmatmul.mubr.bf16.gmra.mrb[152].mxu1 %v3096_v26  ;;  %v3053_v31 = vsub.f32 1.0, %v6158_v59  ;;  %v3068_v19 = vmul.f32 %v3052_v6, %v7411_v49  ;;  %v3037_v22 = vmul.f32 %v6158_v59, %v7409_v60 }
 0xc02   :  { %v3008_v52 = vadd.f32 1.0, %v6160_v4  ;;  %v2947_v58 = vpop.xlane.xlu1 %2946  ;;  %3399 = vmatprep.mubr.bf16.mxu0 %v8026_v40  ;;  %3512 = vmatprep.mubr.bf16.mxu1 %v8026_v40 }
 0xc03   :  { %v6162_v39 = vpop.eup %6161  ;;  %v2964_v37 = vsub.f32 0.0, %v2947_v58  ;;  %v3069_v14 = vmul.f32 %v3053_v31, %v7417_v24  ;;  %5697 = vmatpush3.bf16.msra.mxu0 %v6029_v21  ;;  %v3084_v61 = vadd.f32 %v3068_v19, %v3036_v33 }
 0xc04   :  { %6171 = vrcp.f32 %v3008_v52  ;;  %v3009_v13 = vadd.f32 1.0, %v6162_v39  ;;  %v2949_v36 = vpop.xlane.xlu0 %2948  ;;  %5698 = vmatprep.subr.bf16.mxu0 %v6030_v20 }
 0xc05   :  { %v2994_v46 = vmul.f32 1.442695, %v2964_v37  ;;  %v2965_v62 = vsub.f32 0.0, %v2949_v36  ;;  %v3085_v10 = vadd.f32 %v3069_v14, %v3037_v22 }
 0xc06   :  { %v6164_v25 = vpop.eup %6163  ;;  %6173 = vrcp.f32 %v3009_v13 }
 0xc07   :  { %6175 = vpow2.f32 %v2994_v46  ;;  %v2996_v49 = vmul.f32 1.442695, %v2965_v62  ;;  %v3097_v43 = vpack.c.bf16 %v3085_v10, %v3084_v61  ;;  %5699 = vmatpush3.bf16.msra.mxu0 %v6030_v20  ;;  %v3054_v60 = vsub.f32 1.0, %v6164_v25  ;;  %v6320_v10 = vld [vmem:[#allocation10] sm:$0xff]  }
 0xc08   :  { %v6166_v56 = vpop.eup %6165  ;;  %5700 = vmatprep.subr.bf16.mxu0 %v6031_v3  ;;  %v3038_v45 = vmul.f32 %v6164_v25, %v7425_v18  ;;  %v6321_v25 = vld [vmem:[#allocation10 + $0x8] sm:$0xff]  }
 0xc09   :  { %v6168_v24 = vpop.eup %6167  ;;  %6177 = vpow2.f32 %v2996_v49  ;;  %3400 = vmatmul.mubr.bf16.gmra.mrb[140].mxu0 %v3097_v43  ;;  %3513 = vmatmul.mubr.bf16.gmra.mrb[156].mxu1 %v3097_v43  ;;  %v3055_v17 = vsub.f32 1.0, %v6166_v56  ;;  %v3070_v8 = vmul.f32 %v3054_v60, %v7431_v9  ;;  %v3039_v2 = vmul.f32 %v6166_v56, %v7429_v30  ;;  %v6322_v49 = vld [vmem:[#allocation10 + $0x10] sm:$0xff]   ;;  %v6327_v56 = vld [vmem:[#allocation10 + $0x38] sm:$0xff]  }
 0xc0a   :  { %v3010_v41 = vadd.f32 1.0, %v6168_v24  ;;  %3409 = vmatprep.mubr.bf16.mxu0 %v8026_v40  ;;  %3522 = vmatprep.mubr.bf16.mxu1 %v8026_v40  ;;  %v6326_v43 = vld [vmem:[#allocation10 + $0x30] sm:$0xff]   ;;  %v6328_v60 = vld [vmem:[#allocation2 + $0x80] sm:$0xff]   ;;  %v3136_v24 = vld [vmem:[#allocation16 + $0x1] ss:$2 sm:$0xf] }
 0xc0b   :  { %v6170_v51 = vpop.eup %6169  ;;  %v3071_v54 = vmul.f32 %v3055_v17, %v7437_v1  ;;  %5701 = vmatpush3.bf16.msra.mxu0 %v6031_v3  ;;  %v3086_v16 = vadd.f32 %v3070_v8, %v3038_v45  ;;  %v7555_v17 = vrot.slane %v3136_v24, %v7115_v29 }
 0xc0c   :  { %6179 = vrcp.f32 %v3010_v41  ;;  %v3011_v53 = vadd.f32 1.0, %v6170_v51  ;;  %v8036_v41 = vsub.s32 2, %v7112_v38 }
 0xc0d   :  { %v3087_v21 = vadd.f32 %v3071_v54, %v3039_v2  ;;  %v7562_v2 = vrot.slane %v3136_v24, %v7119_v42 }
 0xc0e   :  { %v6172_v23 = vpop.eup %6171  ;;  %6181 = vrcp.f32 %v3011_v53  ;;  %v7559_v8 = vrot.slane %v3136_v24, %v8036_v41 }
 0xc0f   :  { %v3098_v48 = vpack.c.bf16 %v3087_v21, %v3086_v16  ;;  %v3056_v57 = vsub.f32 1.0, %v6172_v23  ;;  %v3040_v1 = vmul.f32 %v6172_v23, %v7445_v12 }
 0xc10   :  { %v6174_v55 = vpop.eup %6173 }
 0xc11   :  { %v6176_v35 = vpop.eup %6175  ;;  %3410 = vmatmul.mubr.bf16.gmra.mrb[144].mxu0 %v3098_v48  ;;  %3523 = vmatmul.mubr.bf16.gmra.mrb[160].mxu1 %v3098_v48  ;;  %v3057_v9 = vsub.f32 1.0, %v6174_v55  ;;  %v3072_v18 = vmul.f32 %v3056_v57, %v7451_v7  ;;  %v3041_v26 = vmul.f32 %v6174_v55, %v7449_v5 }
 0xc12   :  { %v3012_v32 = vadd.f32 1.0, %v6176_v35  ;;  %3419 = vmatprep.mubr.bf16.mxu0 %v8026_v40  ;;  %3532 = vmatprep.mubr.bf16.mxu1 %v8026_v40 }
 0xc13   :  { %v6178_v30 = vpop.eup %6177  ;;  %v3073_v59 = vmul.f32 %v3057_v9, %v7457_v47  ;;  %v3088_v20 = vadd.f32 %v3072_v18, %v3040_v1 }
 0xc14   :  { %6183 = vrcp.f32 %v3012_v32  ;;  %v3013_v6 = vadd.f32 1.0, %v6178_v30 }
 0xc15   :  { %v3089_v4 = vadd.f32 %v3073_v59, %v3041_v26 }
 0xc16   :  { %v6180_v31 = vpop.eup %6179  ;;  %6185 = vrcp.f32 %v3013_v6 }
 0xc17   :  { %v3099_v52 = vpack.c.bf16 %v3089_v4, %v3088_v20  ;;  %v3058_v7 = vsub.f32 1.0, %v6180_v31  ;;  %v3042_v12 = vmul.f32 %v6180_v31, %v7465_v63 }
 0xc18   :  { %v6182_v58 = vpop.eup %6181 }
 0xc19   :  { %3420 = vmatmul.mubr.bf16.gmra.mrb[148].mxu0 %v3099_v52  ;;  %3533 = vmatmul.mubr.bf16.gmra.mrb[164].mxu1 %v3099_v52  ;;  %v3059_v19 = vsub.f32 1.0, %v6182_v58  ;;  %v3074_v39 = vmul.f32 %v3058_v7, %v7471_v34  ;;  %v3043_v5 = vmul.f32 %v6182_v58, %v7469_v50 }
 0xc1a   :  { %3429 = vmatprep.mubr.bf16.mxu0 %v8026_v40  ;;  %3542 = vmatprep.mubr.bf16.mxu1 %v8026_v40 }
 0xc1b   :  { %v3075_v47 = vmul.f32 %v3059_v19, %v7477_v27  ;;  %v3090_v37 = vadd.f32 %v3074_v39, %v3042_v12 }
 0xc1d   :  { %v3091_v33 = vadd.f32 %v3075_v47, %v3043_v5 }
 0xc1e   :  { %v6184_v22 = vpop.eup %6183 }
 0xc1f   :  { %v3100_v14 = vpack.c.bf16 %v3091_v33, %v3090_v37  ;;  %v3060_v13 = vsub.f32 1.0, %v6184_v22  ;;  %v3044_v63 = vmul.f32 %v6184_v22, %v7485_v44  ;;  %v6323_v44 = vld [vmem:[#allocation10 + $0x18] sm:$0xff]  }
 0xc20   :  { %v6186_v36 = vpop.eup %6185 }
 0xc21   :  { %3430 = vmatmul.mubr.bf16.gmra.mrb[152].mxu0 %v3100_v14  ;;  %3543 = vmatmul.mubr.bf16.gmra.mrb[168].mxu1 %v3100_v14  ;;  %v3061_v3 = vsub.f32 1.0, %v6186_v36  ;;  %v3076_v34 = vmul.f32 %v3060_v13, %v7491_v15  ;;  %v3045_v50 = vmul.f32 %v6186_v36, %v7489_v0  ;;  %v6032_v15 = vld [vmem:[#allocation17 + $0x78] sm:$0xff]  }
 0xc22   :  { %3439 = vmatprep.mubr.bf16.mxu0 %v8026_v40  ;;  %3552 = vmatprep.mubr.bf16.mxu1 %v8026_v40  ;;  %v6324_v0 = vld [vmem:[#allocation10 + $0x20] sm:$0xff]  }
 0xc23   :  { %v3077_v27 = vmul.f32 %v3061_v3, %v7497_v28  ;;  %v3092_v46 = vadd.f32 %v3076_v34, %v3044_v63  ;;  %5702 = vmatprep.subr.bf16.mxu0 %v6032_v15  ;;  %v6325_v28 = vld [vmem:[#allocation10 + $0x28] sm:$0xff]  }
 0xc24   :  { %5703 = vmatpush3.bf16.msra.mxu0 %v6032_v15 }
 0xc25   :  { %v3093_v62 = vadd.f32 %v3077_v27, %v3045_v50 }
 0xc27   :  { %v3101_v61 = vpack.c.bf16 %v3093_v62, %v3092_v46 }
 0xc29   :  { %3440 = vmatmul.mubr.bf16.gmra.mrb[156].mxu0 %v3101_v61  ;;  %3553 = vmatmul.mubr.bf16.gmra.mrb[172].mxu1 %v3101_v61 }
 0xc2a   :  { %5704 = vmatprep.mubr.bf16.mxu0 %v6320_v10  ;;  %3861 = vmatprep.mubr.bf16.mxu1 %v8026_v40 }
 0xc31   :  { %5705 = vmatmul.mubr.bf16.vlgmr.msra.gmra.mrb[160].mxu0 %v6321_v25 }
 0xc32   :  { %5708 = vmatprep.mubr.bf16.mxu0 %v6322_v49 }
 0xc39   :  { %5709 = vmatmul.mubr.bf16.gmra.mrb[164].mxu0 %v6323_v44 }
 0xc3a   :  { %5712 = vmatprep.mubr.bf16.mxu0 %v6324_v0 }
 0xc41   :  { %5713 = vmatmul.mubr.bf16.gmra.mrb[168].mxu0 %v6325_v28 }
 0xc42   :  { %5716 = vmatprep.mubr.bf16.mxu0 %v6326_v43 }
 0xc49   :  { %5717 = vmatmul.mubr.bf16.gmra.mrb[172].mxu0 %v6327_v56 }
 0xc4a   :  { %5736 = vmatprep.mubr.bf16.mxu0 %v6328_v60 }
 0xcc4   :  { %v3371_v51 = vpop.f32.mrb[128].mxu0  ;;  %v3484_v45 = vpop.f32.mrb[144].mxu1 }
 0xcc5   :  { %v3373_v54 = vpop.f32.mrb[129].mxu0  ;;  %v7564_v53 = vpop.f32.mrb[145].mxu1  ;;  %v3372_v23 = vadd.f32 %v3371_v51, %v7555_v17  ;;  %v3485_v48 = vadd.f32 %v3484_v45, %v7559_v8 }
 0xcc6   :  { %v3375_v16 = vpop.f32.mrb[130].mxu0  ;;  %v3488_v21 = vpop.f32.mrb[146].mxu1  ;;  %v3374_v18 = vadd.f32 %v3373_v54, %v7562_v2 }
 0xcc7   :  { %v3376_v57 = vadd.f32 %v3375_v16, %v7555_v17  ;;  %v3489_v55 = vadd.f32 %v3488_v21, %v7559_v8  ;;  %v3377_v35 = vpop.f32.mrb[131].mxu0  ;;  %v7570_v9 = vpop.f32.mrb[147].mxu1 }
 0xcc8   :  { %v3378_v32 = vadd.f32 %v3377_v35, %v7562_v2 }
 0xcc9   :  { %v3708_v30 = vpack.c.bf16 %v3376_v57, %v3372_v23  ;;  %v3814_v1 = vpack.c.bf16 %v3489_v55, %v3485_v48 }
 0xcca   :  { %v3813_v26 = vpack.c.bf16 %v3378_v32, %v3374_v18 }
 0xccb   :  { %5720 = vmatprep.subr.bf16.mxu0 %v3708_v30  ;;  %3829 = vmatprep.subr.bf16.mxu1 %v3814_v1 }
 0xccc   :  { %v3381_v59 = vpop.f32.mrb[132].mxu0  ;;  %v3494_v6 = vpop.f32.mrb[148].mxu1  ;;  %5721 = vmatpush3.bf16.msra.mxu0 %v3708_v30  ;;  %3830 = vmatpush1.bf16.msra.mxu1 %v3813_v26 }
 0xccd   :  { %v3383_v20 = vpop.f32.mrb[133].mxu0  ;;  %v7574_v4 = vpop.f32.mrb[149].mxu1  ;;  %v3382_v7 = vadd.f32 %v3381_v59, %v7555_v17  ;;  %v3495_v58 = vadd.f32 %v3494_v6, %v7559_v8 }
 0xcce   :  { %v3385_v31 = vpop.f32.mrb[134].mxu0  ;;  %v3498_v52 = vpop.f32.mrb[150].mxu1  ;;  %v3384_v47 = vadd.f32 %v3383_v20, %v7562_v2 }
 0xccf   :  { %v3386_v19 = vadd.f32 %v3385_v31, %v7555_v17  ;;  %v3499_v39 = vadd.f32 %v3498_v52, %v7559_v8  ;;  %v3387_v12 = vpop.f32.mrb[135].mxu0  ;;  %v7580_v5 = vpop.f32.mrb[151].mxu1 }
 0xcd0   :  { %v3388_v37 = vadd.f32 %v3387_v12, %v7562_v2 }
 0xcd1   :  { %v3709_v33 = vpack.c.bf16 %v3386_v19, %v3382_v7  ;;  %v3816_v22 = vpack.c.bf16 %v3499_v39, %v3495_v58 }
 0xcd2   :  { %v3815_v14 = vpack.c.bf16 %v3388_v37, %v3384_v47 }
 0xcd3   :  { %5722 = vmatprep.subr.bf16.mxu0 %v3709_v33  ;;  %3831 = vmatprep.subr.bf16.mxu1 %v3816_v22 }
 0xcd4   :  { %v3391_v13 = vpop.f32.mrb[136].mxu0  ;;  %v3504_v36 = vpop.f32.mrb[152].mxu1  ;;  %5723 = vmatpush3.bf16.msra.mxu0 %v3709_v33  ;;  %3832 = vmatpush1.bf16.msra.mxu1 %v3815_v14 }
 0xcd5   :  { %v3393_v3 = vpop.f32.mrb[137].mxu0  ;;  %v7584_v34 = vpop.f32.mrb[153].mxu1  ;;  %v3392_v27 = vadd.f32 %v3391_v13, %v7555_v17  ;;  %v3505_v46 = vadd.f32 %v3504_v36, %v7559_v8 }
 0xcd6   :  { %v3395_v63 = vpop.f32.mrb[138].mxu0  ;;  %v3508_v50 = vpop.f32.mrb[154].mxu1  ;;  %v3394_v25 = vadd.f32 %v3393_v3, %v7562_v2 }
 0xcd7   :  { %v3396_v62 = vadd.f32 %v3395_v63, %v7555_v17  ;;  %v3509_v61 = vadd.f32 %v3508_v50, %v7559_v8  ;;  %v3397_v10 = vpop.f32.mrb[139].mxu0  ;;  %v7590_v15 = vpop.f32.mrb[155].mxu1 }
 0xcd8   :  { %v3398_v49 = vadd.f32 %v3397_v10, %v7562_v2 }
 0xcd9   :  { %v3710_v44 = vpack.c.bf16 %v3396_v62, %v3392_v27  ;;  %v3818_v0 = vpack.c.bf16 %v3509_v61, %v3505_v46 }
 0xcda   :  { %v3817_v28 = vpack.c.bf16 %v3398_v49, %v3394_v25 }
 0xcdb   :  { %5724 = vmatprep.subr.bf16.mxu0 %v3710_v44  ;;  %3833 = vmatprep.subr.bf16.mxu1 %v3818_v0 }
 0xcdc   :  { %v3401_v43 = vpop.f32.mrb[140].mxu0  ;;  %v3514_v56 = vpop.f32.mrb[156].mxu1  ;;  %5725 = vmatpush3.bf16.msra.mxu0 %v3710_v44  ;;  %3834 = vmatpush1.bf16.msra.mxu1 %v3817_v28 }
 0xcdd   :  { %v3403_v60 = vpop.f32.mrb[141].mxu0  ;;  %v7594_v24 = vpop.f32.mrb[157].mxu1  ;;  %v3402_v45 = vadd.f32 %v3401_v43, %v7555_v17  ;;  %v3515_v54 = vadd.f32 %v3514_v56, %v7559_v8 }
 0xcde   :  { %v3405_v41 = vpop.f32.mrb[142].mxu0  ;;  %v3518_v51 = vpop.f32.mrb[158].mxu1  ;;  %v3404_v57 = vadd.f32 %v3403_v60, %v7562_v2 }
 0xcdf   :  { %v3406_v16 = vadd.f32 %v3405_v41, %v7555_v17  ;;  %v3519_v21 = vadd.f32 %v3518_v51, %v7559_v8  ;;  %v3407_v23 = vpop.f32.mrb[143].mxu0  ;;  %v7600_v48 = vpop.f32.mrb[159].mxu1 }
 0xce0   :  { %8037 = vst [vmem:[#allocation40_spill] sm:$0xff] %v7600_v48  ;;  %v3408_v55 = vadd.f32 %v3407_v23, %v7562_v2 }
 0xce1   :  { %v3711_v35 = vpack.c.bf16 %v3406_v16, %v3402_v45  ;;  %v3820_v18 = vpack.c.bf16 %v3519_v21, %v3515_v54 }
 0xce2   :  { %v3819_v32 = vpack.c.bf16 %v3408_v55, %v3404_v57 }
 0xce3   :  { %5726 = vmatprep.subr.bf16.mxu0 %v3711_v35  ;;  %3835 = vmatprep.subr.bf16.mxu1 %v3820_v18 }
 0xce4   :  { %v3411_v30 = vpop.f32.mrb[144].mxu0  ;;  %v3524_v1 = vpop.f32.mrb[160].mxu1  ;;  %5727 = vmatpush3.bf16.msra.mxu0 %v3711_v35  ;;  %3836 = vmatpush1.bf16.msra.mxu1 %v3819_v32 }
 0xce5   :  { %v3413_v26 = vpop.f32.mrb[145].mxu0  ;;  %v7604_v59 = vpop.f32.mrb[161].mxu1  ;;  %v3412_v31 = vadd.f32 %v3411_v30, %v7555_v17  ;;  %v3525_v52 = vadd.f32 %v3524_v1, %v7559_v8 }
 0xce6   :  { %8038 = vst [vmem:[#allocation41_spill] sm:$0xff] %v7604_v59  ;;  %v3415_v6 = vpop.f32.mrb[146].mxu0  ;;  %v3528_v20 = vpop.f32.mrb[162].mxu1  ;;  %v3414_v12 = vadd.f32 %v3413_v26, %v7562_v2 }
 0xce7   :  { %v3416_v7 = vadd.f32 %v3415_v6, %v7555_v17  ;;  %v3529_v58 = vadd.f32 %v3528_v20, %v7559_v8  ;;  %v3417_v19 = vpop.f32.mrb[147].mxu0  ;;  %v7610_v39 = vpop.f32.mrb[163].mxu1 }
 0xce8   :  { %8039 = vst [vmem:[#allocation42_spill] sm:$0xff] %v7610_v39  ;;  %v3418_v47 = vadd.f32 %v3417_v19, %v7562_v2 }
 0xce9   :  { %v3712_v37 = vpack.c.bf16 %v3416_v7, %v3412_v31  ;;  %v3822_v33 = vpack.c.bf16 %v3529_v58, %v3525_v52 }
 0xcea   :  { %v3821_v22 = vpack.c.bf16 %v3418_v47, %v3414_v12 }
 0xceb   :  { %5728 = vmatprep.subr.bf16.mxu0 %v3712_v37  ;;  %3837 = vmatprep.subr.bf16.mxu1 %v3822_v33 }
 0xcec   :  { %v3421_v14 = vpop.f32.mrb[148].mxu0  ;;  %v3534_v13 = vpop.f32.mrb[164].mxu1  ;;  %5729 = vmatpush3.bf16.msra.mxu0 %v3712_v37  ;;  %3838 = vmatpush1.bf16.msra.mxu1 %v3821_v22 }
 0xced   :  { %v3423_v36 = vpop.f32.mrb[149].mxu0  ;;  %v7614_v3 = vpop.f32.mrb[165].mxu1  ;;  %v3422_v27 = vadd.f32 %v3421_v14, %v7555_v17  ;;  %v3535_v46 = vadd.f32 %v3534_v13, %v7559_v8 }
 0xcee   :  { %8040 = vst [vmem:[#allocation43_spill] sm:$0xff] %v7614_v3  ;;  %v3425_v63 = vpop.f32.mrb[150].mxu0  ;;  %v3538_v50 = vpop.f32.mrb[166].mxu1  ;;  %v3424_v49 = vadd.f32 %v3423_v36, %v7562_v2 }
 0xcef   :  { %v3426_v62 = vadd.f32 %v3425_v63, %v7555_v17  ;;  %v3539_v61 = vadd.f32 %v3538_v50, %v7559_v8  ;;  %v3427_v10 = vpop.f32.mrb[151].mxu0  ;;  %v7620_v25 = vpop.f32.mrb[167].mxu1 }
 0xcf0   :  { %8041 = vst [vmem:[#allocation44_spill] sm:$0xff] %v7620_v25  ;;  %v3428_v44 = vadd.f32 %v3427_v10, %v7562_v2  ;;  %v6336_v10 = vld [vmem:[#allocation2 + $0x98] sm:$0xff]  }
 0xcf1   :  { %v3713_v0 = vpack.c.bf16 %v3426_v62, %v3422_v27  ;;  %v3824_v28 = vpack.c.bf16 %v3539_v61, %v3535_v46  ;;  %v6329_v27 = vld [vmem:[#allocation7] sm:$0xff]   ;;  %v6330_v46 = vld [vmem:[#allocation2 + $0x40] sm:$0xff]   ;;  %v6333_v62 = vld [vmem:[#allocation7 + $0x8] sm:$0xff]  }
 0xcf2   :  { %v3823_v43 = vpack.c.bf16 %v3428_v44, %v3424_v49  ;;  %v6335_v61 = vld [vmem:[#allocation2 + $0x48] sm:$0xff]   ;;  %v6337_v49 = vld [vmem:[#allocation2 + $0xa0] sm:$0xff]  }
 0xcf3   :  { %5730 = vmatprep.subr.bf16.mxu0 %v3713_v0  ;;  %3839 = vmatprep.subr.bf16.mxu1 %v3824_v28  ;;  %v6338_v44 = vld [vmem:[#allocation7 + $0x18] sm:$0xff]   ;;  %v6340_v28 = vld [vmem:[#allocation2 + $0x50] sm:$0xff]  }
 0xcf4   :  { %v3431_v56 = vpop.f32.mrb[152].mxu0  ;;  %v3544_v60 = vpop.f32.mrb[168].mxu1  ;;  %5731 = vmatpush3.bf16.msra.mxu0 %v3713_v0  ;;  %3840 = vmatpush1.bf16.msra.mxu1 %v3823_v43  ;;  %v6339_v0 = vld [vmem:[#allocation7 + $0x20] sm:$0xff]  }
 0xcf5   :  { %v3433_v41 = vpop.f32.mrb[153].mxu0  ;;  %v7624_v51 = vpop.f32.mrb[169].mxu1  ;;  %v3432_v16 = vadd.f32 %v3431_v56, %v7555_v17  ;;  %v3545_v21 = vadd.f32 %v3544_v60, %v7559_v8  ;;  %v6341_v43 = vld [vmem:[#allocation2 + $0xa8] sm:$0xff]   ;;  %v6342_v56 = vld [vmem:[#allocation2 + $0xb0] sm:$0xff]  }
 0xcf6   :  { %8042 = vst [vmem:[#allocation45_spill] sm:$0xff] %v7624_v51  ;;  %v3435_v45 = vpop.f32.mrb[154].mxu0  ;;  %v3548_v54 = vpop.f32.mrb[170].mxu1  ;;  %v3434_v18 = vadd.f32 %v3433_v41, %v7562_v2  ;;  %v6343_v60 = vld [vmem:[#allocation7 + $0x28] sm:$0xff]   ;;  %v6344_v41 = vld [vmem:[#allocation7 + $0x30] sm:$0xff]  }
 0xcf7   :  { %v3436_v23 = vadd.f32 %v3435_v45, %v7555_v17  ;;  %v3549_v57 = vadd.f32 %v3548_v54, %v7559_v8  ;;  %v3437_v55 = vpop.f32.mrb[155].mxu0  ;;  %v7630_v35 = vpop.f32.mrb[171].mxu1  ;;  %v6345_v45 = vld [vmem:[#allocation2 + $0x58] sm:$0xff]  }
 0xcf8   :  { %8043 = vst [vmem:[#allocation46_spill] sm:$0xff] %v7630_v35  ;;  %v3438_v32 = vadd.f32 %v3437_v55, %v7562_v2  ;;  %v6346_v54 = vld [vmem:[#allocation2 + $0xb8] sm:$0xff]  }
 0xcf9   :  { %v3714_v30 = vpack.c.bf16 %v3436_v23, %v3432_v16  ;;  %v3826_v1 = vpack.c.bf16 %v3549_v57, %v3545_v21  ;;  %v6347_v16 = vld [vmem:[#allocation7 + $0x38] sm:$0xff]  }
 0xcfa   :  { %v3825_v26 = vpack.c.bf16 %v3438_v32, %v3434_v18  ;;  %v6348_v18 = vld [vmem:[#allocation2 + $0x60] sm:$0xff]  }
 0xcfb   :  { %5732 = vmatprep.subr.bf16.mxu0 %v3714_v30  ;;  %3841 = vmatprep.subr.bf16.mxu1 %v3826_v1 }
 0xcfc   :  { %v3441_v6 = vpop.f32.mrb[156].mxu0  ;;  %v3554_v20 = vpop.f32.mrb[172].mxu1  ;;  %5733 = vmatpush3.bf16.msra.mxu0 %v3714_v30  ;;  %3842 = vmatpush1.bf16.msra.mxu1 %v3825_v26 }
 0xcfd   :  { %v3443_v31 = vpop.f32.mrb[157].mxu0  ;;  %v7634_v52 = vpop.f32.mrb[173].mxu1  ;;  %v3442_v19 = vadd.f32 %v3441_v6, %v7555_v17  ;;  %v3555_v12 = vadd.f32 %v3554_v20, %v7559_v8  ;;  %v6349_v6 = vld [vmem:[#allocation2 + $0x68] sm:$0xff]  }
 0xcfe   :  { %8044 = vst [vmem:[#allocation47_spill] sm:$0xff] %v7634_v52  ;;  %v3445_v7 = vpop.f32.mrb[158].mxu0  ;;  %v3558_v58 = vpop.f32.mrb[174].mxu1  ;;  %v3444_v14 = vadd.f32 %v3443_v31, %v7562_v2 }
 0xcff   :  { %v3446_v47 = vadd.f32 %v3445_v7, %v7555_v17  ;;  %v3559_v37 = vadd.f32 %v3558_v58, %v7559_v8  ;;  %v3447_v33 = vpop.f32.mrb[159].mxu0  ;;  %v7640_v22 = vpop.f32.mrb[175].mxu1  ;;  %v6331_v17 = vld [vmem:[#allocation2 + $0x88] sm:$0xff]   ;;  %v6332_v8 = vld [vmem:[#allocation2 + $0x90] sm:$0xff]  }
 0xd00   :  { %8045 = vst [vmem:[#allocation48_spill] sm:$0xff] %v7640_v22  ;;  %v3448_v13 = vadd.f32 %v3447_v33, %v7562_v2  ;;  %v6334_v2 = vld [vmem:[#allocation7 + $0x10] sm:$0xff]  }
 0xd01   :  { %v3715_v36 = vpack.c.bf16 %v3446_v47, %v3442_v19  ;;  %v3828_v63 = vpack.c.bf16 %v3559_v37, %v3555_v12  ;;  %v6350_v19 = vld [vmem:[#allocation2 + $0x70] sm:$0xff]  }
 0xd02   :  { %v3827_v50 = vpack.c.bf16 %v3448_v13, %v3444_v14  ;;  %v6351_v14 = vld [vmem:[#allocation2 + $0x78] sm:$0xff]  }
 0xd03   :  { %5734 = vmatprep.subr.bf16.mxu0 %v3715_v36  ;;  %3843 = vmatprep.subr.bf16.mxu1 %v3828_v63 }
 0xd04   :  { %5735 = vmatpush3.bf16.msra.mxu0 %v3715_v36  ;;  %3844 = vmatpush1.bf16.msra.mxu1 %v3827_v50  ;;  %v5706_v21 = vpop.f32.mrb[160].mxu0 }
 0xd05   :  { %5752 = vmatprep.subr.bf16.mxu0 %v6329_v27  ;;  %v3645_v23 = vpop.f32.mrb[161].mxu0 }
 0xd06   :  { %v5707_v57 = vpop.f32.mrb[162].mxu0 }
 0xd07   :  { %3862 = vmatmul.mubr.bf16.vlgmr.msra.gmra.mrb[176].mxu1 %v6330_v46  ;;  %5737 = vmatmul.mubr.bf16.vlgmr.msra.gmra.mrb[176].mxu0 %v6331_v17  ;;  %v3648_v55 = vpop.f32.mrb[163].mxu0 }
 0xd08   :  { %3871 = vmatprep.mubr.bf16.mxu1 %v8026_v40  ;;  %5740 = vmatprep.mubr.bf16.mxu0 %v6332_v8 }
 0xd09   :  { %5753 = vmatpush3.bf16.msra.mxu0 %v6329_v27 }
 0xd0a   :  { %5754 = vmatprep.subr.bf16.mxu0 %v6333_v62 }
 0xd0c   :  { %v7649_v32 = vpop.f32.mrb[164].mxu0 }
 0xd0d   :  { %5755 = vmatpush3.bf16.msra.mxu0 %v6333_v62  ;;  %v3661_v30 = vpop.f32.mrb[165].mxu0 }
 0xd0e   :  { %5756 = vmatprep.subr.bf16.mxu0 %v6334_v2  ;;  %v7651_v1 = vpop.f32.mrb[166].mxu0 }
 0xd0f   :  { %3872 = vmatmul.mubr.bf16.gmra.mrb[180].mxu1 %v6335_v61  ;;  %5741 = vmatmul.mubr.bf16.gmra.mrb[180].mxu0 %v6336_v10  ;;  %v3664_v26 = vpop.f32.mrb[167].mxu0 }
 0xd10   :  { %3881 = vmatprep.mubr.bf16.mxu1 %v8026_v40  ;;  %5744 = vmatprep.mubr.bf16.mxu0 %v6337_v49 }
 0xd11   :  { %5757 = vmatpush3.bf16.msra.mxu0 %v6334_v2 }
 0xd12   :  { %5758 = vmatprep.subr.bf16.mxu0 %v6338_v44 }
 0xd14   :  { %v7654_v20 = vpop.f32.mrb[168].mxu0 }
 0xd15   :  { %5759 = vmatpush3.bf16.msra.mxu0 %v6338_v44  ;;  %v7656_v31 = vpop.f32.mrb[169].mxu0 }
 0xd16   :  { %5760 = vmatprep.subr.bf16.mxu0 %v6339_v0  ;;  %v7658_v7 = vpop.f32.mrb[170].mxu0 }
 0xd17   :  { %3882 = vmatmul.mubr.bf16.gmra.mrb[184].mxu1 %v6340_v28  ;;  %5745 = vmatmul.mubr.bf16.gmra.mrb[184].mxu0 %v6341_v43  ;;  %v7660_v58 = vpop.f32.mrb[171].mxu0 }
 0xd18   :  { %3891 = vmatprep.mubr.bf16.mxu1 %v8026_v40  ;;  %5748 = vmatprep.mubr.bf16.mxu0 %v6342_v56 }
 0xd19   :  { %5761 = vmatpush3.bf16.msra.mxu0 %v6339_v0 }
 0xd1a   :  { %5762 = vmatprep.subr.bf16.mxu0 %v6343_v60 }
 0xd1c   :  { %v7663_v12 = vpop.f32.mrb[172].mxu0 }
 0xd1d   :  { %5763 = vmatpush3.bf16.msra.mxu0 %v6343_v60  ;;  %v7665_v47 = vpop.f32.mrb[173].mxu0 }
 0xd1e   :  { %5764 = vmatprep.subr.bf16.mxu0 %v6344_v41  ;;  %v7667_v37 = vpop.f32.mrb[174].mxu0 }
 0xd1f   :  { %3892 = vmatmul.mubr.bf16.gmra.mrb[188].mxu1 %v6345_v45  ;;  %5749 = vmatmul.mubr.bf16.gmra.mrb[188].mxu0 %v6346_v54  ;;  %v7669_v33 = vpop.f32.mrb[175].mxu0 }
 0xd20   :  { %3901 = vmatprep.mubr.bf16.mxu1 %v8026_v40 }
 0xd21   :  { %5765 = vmatpush3.bf16.msra.mxu0 %v6344_v41 }
 0xd22   :  { %5766 = vmatprep.subr.bf16.mxu0 %v6347_v16 }
 0xd25   :  { %5767 = vmatpush3.bf16.msra.mxu0 %v6347_v16 }
 0xd27   :  { %3902 = vmatmul.mubr.bf16.gmra.mrb[192].mxu1 %v6348_v18 }
 0xd28   :  { %3911 = vmatprep.mubr.bf16.mxu1 %v8026_v40 }
 0xd2f   :  { %3912 = vmatmul.mubr.bf16.gmra.mrb[196].mxu1 %v6349_v6 }
 0xd30   :  { %3921 = vmatprep.mubr.bf16.mxu1 %v8026_v40 }
 0xd37   :  { %3922 = vmatmul.mubr.bf16.gmra.mrb[200].mxu1 %v6350_v19 }
 0xd38   :  { %3931 = vmatprep.mubr.bf16.mxu1 %v8026_v40 }
 0xd3f   :  { %3932 = vmatmul.mubr.bf16.gmra.mrb[204].mxu1 %v6351_v14 }
 0xd40   :  { %4639 = vmatprep.mubr.bf16.mxu1 %v8026_v40 }
 0xdda   :  { %v3863_v13 = vpop.f32.mrb[176].mxu1  ;;  %v5738_v36 = vpop.f32.mrb[176].mxu0 }
 0xddb   :  { %v3942_v63 = vadd.f32 %v3863_v13, %v3645_v23  ;;  %v3865_v50 = vpop.f32.mrb[177].mxu1  ;;  %v3750_v27 = vpop.f32.mrb[177].mxu0 }
 0xddc   :  { %v7672_v46 = vadd.f32 %v3865_v50, %v3645_v23  ;;  %v3867_v17 = vpop.f32.mrb[178].mxu1  ;;  %v5739_v8 = vpop.f32.mrb[178].mxu0 }
 0xddd   :  { %v3974_v62 = vmul.f32 %v3942_v63, %v3750_v27  ;;  %v3943_v2 = vadd.f32 %v3867_v17, %v3648_v55  ;;  %v3869_v61 = vpop.f32.mrb[179].mxu1  ;;  %v3753_v10 = vpop.f32.mrb[179].mxu0 }
 0xdde   :  { %v7674_v49 = vadd.f32 %v3869_v61, %v3648_v55 }
 0xddf   :  { %v3975_v44 = vmul.f32 %v3943_v2, %v3753_v10 }
 0xde1   :  { %v3990_v0 = vpack.c.bf16 %v3975_v44, %v3974_v62 }
 0xde2   :  { %v3873_v28 = vpop.f32.mrb[180].mxu1  ;;  %v5742_v43 = vpop.f32.mrb[180].mxu0 }
 0xde3   :  { %v3944_v56 = vadd.f32 %v5706_v21, %v3873_v28  ;;  %v3875_v60 = vpop.f32.mrb[181].mxu1  ;;  %5768 = vmatprep.mubr.bf16.mxu0 %v3990_v0  ;;  %v3766_v41 = vpop.f32.mrb[181].mxu0 }
 0xde4   :  { %v7676_v45 = vadd.f32 %v5706_v21, %v3875_v60  ;;  %v3877_v54 = vpop.f32.mrb[182].mxu1  ;;  %v5743_v16 = vpop.f32.mrb[182].mxu0 }
 0xde5   :  { %v3976_v23 = vmul.f32 %v5738_v36, %v3944_v56  ;;  %v3945_v18 = vadd.f32 %v5707_v57, %v3877_v54  ;;  %v3879_v6 = vpop.f32.mrb[183].mxu1  ;;  %v3769_v19 = vpop.f32.mrb[183].mxu0 }
 0xde6   :  { %v7678_v14 = vadd.f32 %v5707_v57, %v3879_v6 }
 0xde7   :  { %v3977_v55 = vmul.f32 %v5739_v8, %v3945_v18 }
 0xde9   :  { %v3991_v13 = vpack.c.bf16 %v3977_v55, %v3976_v23 }
 0xdea   :  { %v3883_v63 = vpop.f32.mrb[184].mxu1  ;;  %v5746_v50 = vpop.f32.mrb[184].mxu0 }
 0xdeb   :  { %v3946_v27 = vadd.f32 %v3883_v63, %v3661_v30  ;;  %v3885_v17 = vpop.f32.mrb[185].mxu1  ;;  %5769 = vmatmul.mubr.bf16.vlgmr.msra.gmra.mrb[192].mxu0 %v3991_v13  ;;  %v3782_v62 = vpop.f32.mrb[185].mxu0 }
 0xdec   :  { %v7680_v2 = vadd.f32 %v3885_v17, %v3661_v30  ;;  %v3887_v21 = vpop.f32.mrb[186].mxu1  ;;  %v5747_v61 = vpop.f32.mrb[186].mxu0 }
 0xded   :  { %v3978_v10 = vmul.f32 %v3946_v27, %v3766_v41  ;;  %v3947_v44 = vadd.f32 %v3887_v21, %v3664_v26  ;;  %v3889_v36 = vpop.f32.mrb[187].mxu1  ;;  %v3785_v0 = vpop.f32.mrb[187].mxu0 }
 0xdee   :  { %v7682_v28 = vadd.f32 %v3889_v36, %v3664_v26 }
 0xdef   :  { %v3979_v57 = vmul.f32 %v3947_v44, %v3769_v19 }
 0xdf1   :  { %v3992_v56 = vpack.c.bf16 %v3979_v57, %v3978_v10 }
 0xdf2   :  { %v3893_v8 = vpop.f32.mrb[188].mxu1  ;;  %v5750_v60 = vpop.f32.mrb[188].mxu0 }
 0xdf3   :  { %v3948_v54 = vadd.f32 %v7649_v32, %v3893_v8  ;;  %v3895_v23 = vpop.f32.mrb[189].mxu1  ;;  %5772 = vmatprep.mubr.bf16.mxu0 %v3992_v56  ;;  %v3798_v18 = vpop.f32.mrb[189].mxu0 }
 0xdf4   :  { %v7686_v30 = vadd.f32 %v7649_v32, %v3895_v23  ;;  %v3897_v6 = vpop.f32.mrb[190].mxu1  ;;  %v5751_v55 = vpop.f32.mrb[190].mxu0 }
 0xdf5   :  { %v3980_v41 = vmul.f32 %v5742_v43, %v3948_v54  ;;  %v3949_v13 = vadd.f32 %v7651_v1, %v3897_v6  ;;  %v3899_v63 = vpop.f32.mrb[191].mxu1  ;;  %v3801_v26 = vpop.f32.mrb[191].mxu0 }
 0xdf6   :  { %v7690_v19 = vadd.f32 %v7651_v1, %v3899_v63 }
 0xdf7   :  { %v3981_v27 = vmul.f32 %v5743_v16, %v3949_v13 }
 0xdf9   :  { %v3993_v17 = vpack.c.bf16 %v3981_v27, %v3980_v41 }
 0xdfa   :  { %v3903_v21 = vpop.f32.mrb[192].mxu1 }
 0xdfb   :  { %v3950_v10 = vadd.f32 %v3903_v21, %v7656_v31  ;;  %v3905_v44 = vpop.f32.mrb[193].mxu1  ;;  %5773 = vmatmul.mubr.bf16.gmra.mrb[196].mxu0 %v3993_v17 }
 0xdfc   :  { %v7694_v32 = vadd.f32 %v3905_v44, %v7656_v31  ;;  %v3907_v36 = vpop.f32.mrb[194].mxu1 }
 0xdfd   :  { %v3982_v57 = vmul.f32 %v3950_v10, %v3782_v62  ;;  %v3951_v43 = vadd.f32 %v3907_v36, %v7660_v58  ;;  %v3909_v56 = vpop.f32.mrb[195].mxu1 }
 0xdfe   :  { %v7698_v8 = vadd.f32 %v3909_v56, %v7660_v58 }
 0xdff   :  { %v3983_v1 = vmul.f32 %v3951_v43, %v3785_v0 }
 0xe01   :  { %v3994_v54 = vpack.c.bf16 %v3983_v1, %v3982_v57 }
 0xe02   :  { %v3913_v16 = vpop.f32.mrb[196].mxu1 }
 0xe03   :  { %v3952_v23 = vadd.f32 %v7654_v20, %v3913_v16  ;;  %v3915_v6 = vpop.f32.mrb[197].mxu1  ;;  %5776 = vmatprep.mubr.bf16.mxu0 %v3994_v54 }
 0xe04   :  { %v7702_v41 = vadd.f32 %v7654_v20, %v3915_v6  ;;  %v3917_v31 = vpop.f32.mrb[198].mxu1 }
 0xe05   :  { %v3984_v13 = vmul.f32 %v5746_v50, %v3952_v23  ;;  %v3953_v62 = vadd.f32 %v7658_v7, %v3917_v31  ;;  %v3919_v63 = vpop.f32.mrb[199].mxu1 }
 0xe06   :  { %v7706_v27 = vadd.f32 %v7658_v7, %v3919_v63 }
 0xe07   :  { %v3985_v58 = vmul.f32 %v5747_v61, %v3953_v62 }
 0xe09   :  { %v3995_v17 = vpack.c.bf16 %v3985_v58, %v3984_v13 }
 0xe0a   :  { %v3923_v0 = vpop.f32.mrb[200].mxu1 }
 0xe0b   :  { %v3954_v21 = vadd.f32 %v3923_v0, %v7665_v47  ;;  %v3925_v10 = vpop.f32.mrb[201].mxu1  ;;  %5777 = vmatmul.mubr.bf16.gmra.mrb[200].mxu0 %v3995_v17 }
 0xe0c   :  { %v7710_v44 = vadd.f32 %v3925_v10, %v7665_v47  ;;  %v3927_v20 = vpop.f32.mrb[202].mxu1 }
 0xe0d   :  { %v3986_v36 = vmul.f32 %v3954_v21, %v3798_v18  ;;  %v3955_v50 = vadd.f32 %v3927_v20, %v7669_v33  ;;  %v3929_v57 = vpop.f32.mrb[203].mxu1 }
 0xe0e   :  { %v7714_v43 = vadd.f32 %v3929_v57, %v7669_v33 }
 0xe0f   :  { %v3987_v7 = vmul.f32 %v3955_v50, %v3801_v26 }
 0xe11   :  { %v3996_v56 = vpack.c.bf16 %v3987_v7, %v3986_v36 }
 0xe12   :  { %v3933_v61 = vpop.f32.mrb[204].mxu1 }
 0xe13   :  { %v3956_v1 = vadd.f32 %v7663_v12, %v3933_v61  ;;  %v3935_v54 = vpop.f32.mrb[205].mxu1  ;;  %5780 = vmatprep.mubr.bf16.mxu0 %v3996_v56 }
 0xe14   :  { %v7718_v16 = vadd.f32 %v7663_v12, %v3935_v54  ;;  %v3937_v47 = vpop.f32.mrb[206].mxu1 }
 0xe15   :  { %v3988_v23 = vmul.f32 %v5750_v60, %v3956_v1  ;;  %v3957_v18 = vadd.f32 %v7667_v37, %v3937_v47  ;;  %v3939_v6 = vpop.f32.mrb[207].mxu1 }
 0xe16   :  { %v7722_v31 = vadd.f32 %v7667_v37, %v3939_v6 }
 0xe17   :  { %v3989_v33 = vmul.f32 %v5751_v55, %v3957_v18 }
 0xe19   :  { %v3997_v13 = vpack.c.bf16 %v3989_v33, %v3988_v23 }
 0xe1b   :  { %5781 = vmatmul.mubr.bf16.gmra.mrb[204].mxu0 %v3997_v13 }
 0xe1c   :  { %4232 = vmatprep.mubr.bf16.mxu0 %v8026_v40 }
 0xebe   :  { %v5770_v26 = vpop.f32.mrb[192].mxu0 }
 0xebf   :  { %v4032_v62 = vpop.f32.mrb[193].mxu0 }
 0xec0   :  { %v5771_v63 = vpop.f32.mrb[194].mxu0 }
 0xec1   :  { %v4035_v58 = vpop.f32.mrb[195].mxu0 }
 0xece   :  { %v5774_v17 = vpop.f32.mrb[196].mxu0 }
 0xecf   :  { %v4097_v12 = vmax.f32 %v5770_v26, %v5774_v17  ;;  %v4048_v0 = vpop.f32.mrb[197].mxu0 }
 0xed0   :  { %v4095_v21 = vmax.f32 %v4032_v62, %v4048_v0  ;;  %v5775_v60 = vpop.f32.mrb[198].mxu0 }
 0xed1   :  { %v4098_v10 = vmax.f32 %v5771_v63, %v5775_v60  ;;  %v4051_v20 = vpop.f32.mrb[199].mxu0 }
 0xed2   :  { %v4096_v36 = vmax.f32 %v4035_v58, %v4051_v20 }
 0xede   :  { %v5778_v50 = vpop.f32.mrb[200].mxu0 }
 0xedf   :  { %v4101_v37 = vmax.f32 %v4097_v12, %v5778_v50  ;;  %v4064_v57 = vpop.f32.mrb[201].mxu0 }
 0xee0   :  { %v4099_v55 = vmax.f32 %v4095_v21, %v4064_v57  ;;  %v5779_v7 = vpop.f32.mrb[202].mxu0 }
 0xee1   :  { %v4102_v56 = vmax.f32 %v4098_v10, %v5779_v7  ;;  %v4067_v61 = vpop.f32.mrb[203].mxu0 }
 0xee2   :  { %v4100_v1 = vmax.f32 %v4096_v36, %v4067_v61 }
 0xeee   :  { %v7725_v54 = vpop.f32.mrb[204].mxu0 }
 0xeef   :  { %v4105_v47 = vmax.f32 %v4101_v37, %v7725_v54  ;;  %v4080_v23 = vpop.f32.mrb[205].mxu0 }
 0xef0   :  { %v4103_v18 = vmax.f32 %v4099_v55, %v4080_v23  ;;  %v7728_v6 = vpop.f32.mrb[206].mxu0 }
 0xef1   :  { %v4106_v33 = vmax.f32 %v4102_v56, %v7728_v6  ;;  %v4083_v13 = vpop.f32.mrb[207].mxu0 }
 0xef2   :  { %v4104_v11 = vmax.f32 %v4100_v1, %v4083_v13 }
 0xef3   :  { %v4108_v22 = vmax.f32 %v4105_v47, %v4106_v33 }
 0xef4   :  { %v4107_v12 = vmax.f32 %v4103_v18, %v4104_v11 }
 0xef6   :  { %v4109_v52 = vmax.f32 %v4107_v12, %v4108_v22 }
 0xef8   :  { %4110 = vmax.xlane.f32.xlu1 %v4109_v52 }
 0xf85   :  { %v4111_v21 = vpop.xlane.xlu1 %4110 }
 0xf86   :  { %v4112_v10 = vrot.slane %v4111_v21, 4 }
 0xf88   :  { %v4113_v35 = vmax.f32 %v4111_v21, %v4112_v10 }
 0xf8a   :  { %v4114_v36 = vrot.slane %v4113_v35, 2 }
 0xf8c   :  { %v4115_v51 = vmax.f32 %v4113_v35, %v4114_v36 }
 0xf8e   :  { %v4116_v25 = vrot.slane %v4115_v51, 1 }
 0xf90   :  { %v4117_v3 = vmax.f32 %v4115_v51, %v4116_v25 }
 0xf92   :  { %5806 = vpush %v4117_v3 }
 0xfc3   :  { %s5807_s11 = spop %5806 }
 0xfc4   :  { %v4119_v37 = vstv %s5807_s11 }
 0xfc5   :  { %v4120_v55 = vsub.f32 %v4032_v62, %v4119_v37  ;;  %v4121_v39 = vsub.f32 %v4035_v58, %v4119_v37  ;;  %v4122_v59 = vsub.f32 %v5770_v26, %v4119_v37  ;;  %v4123_v56 = vsub.f32 %v5771_v63, %v4119_v37 }
 0xfc6   :  { %v4124_v48 = vsub.f32 %v4048_v0, %v4119_v37  ;;  %v4125_v1 = vsub.f32 %v4051_v20, %v4119_v37  ;;  %v4126_v52 = vsub.f32 %v5774_v17, %v4119_v37  ;;  %v4127_v33 = vsub.f32 %v5775_v60, %v4119_v37 }
 0xfc7   :  { %v4136_v47 = vmul.f32 1.442695, %v4120_v55  ;;  %v4138_v11 = vmul.f32 1.442695, %v4121_v39  ;;  %v4140_v22 = vmul.f32 1.442695, %v4122_v59  ;;  %v4128_v35 = vsub.f32 %v4064_v57, %v4119_v37 }
 0xfc8   :  { %v4142_v18 = vmul.f32 1.442695, %v4123_v56  ;;  %v4144_v12 = vmul.f32 1.442695, %v4124_v48  ;;  %v4146_v25 = vmul.f32 1.442695, %v4125_v1  ;;  %v4129_v3 = vsub.f32 %v4067_v61, %v4119_v37 }
 0xfc9   :  { %6187 = vpow2.f32 %v4136_v47  ;;  %v4148_v51 = vmul.f32 1.442695, %v4126_v52  ;;  %v4130_v62 = vsub.f32 %v5778_v50, %v4119_v37  ;;  %v4150_v26 = vmul.f32 1.442695, %v4127_v33 }
 0xfca   :  { %6189 = vpow2.f32 %v4138_v11  ;;  %v4131_v63 = vsub.f32 %v5779_v7, %v4119_v37  ;;  %v4152_v58 = vmul.f32 1.442695, %v4128_v35  ;;  %v4132_v0 = vsub.f32 %v4080_v23, %v4119_v37 }
 0xfcb   :  { %6191 = vpow2.f32 %v4140_v22  ;;  %v4154_v59 = vmul.f32 1.442695, %v4129_v3  ;;  %v4133_v39 = vsub.f32 %v4083_v13, %v4119_v37  ;;  %v4156_v17 = vmul.f32 1.442695, %v4130_v62 }
 0xfcc   :  { %6193 = vpow2.f32 %v4142_v18  ;;  %v4134_v48 = vsub.f32 %v7725_v54, %v4119_v37  ;;  %v4158_v60 = vmul.f32 1.442695, %v4131_v63  ;;  %v4135_v20 = vsub.f32 %v7728_v6, %v4119_v37 }
 0xfcd   :  { %6195 = vpow2.f32 %v4144_v12  ;;  %v4160_v57 = vmul.f32 1.442695, %v4132_v0  ;;  %v4162_v50 = vmul.f32 1.442695, %v4133_v39 }
 0xfce   :  { %6197 = vpow2.f32 %v4146_v25  ;;  %v4164_v7 = vmul.f32 1.442695, %v4134_v48  ;;  %v4166_v13 = vmul.f32 1.442695, %v4135_v20 }
 0xfcf   :  { %6199 = vpow2.f32 %v4148_v51 }
 0xfd0   :  { %6201 = vpow2.f32 %v4150_v26 }
 0xfd1   :  { %6203 = vpow2.f32 %v4152_v58 }
 0xfd2   :  { %6205 = vpow2.f32 %v4154_v59 }
 0xfd3   :  { %v6188_v61 = vpop.eup %6187  ;;  %6207 = vpow2.f32 %v4156_v17 }
 0xfd4   :  { %v6190_v21 = vpop.eup %6189  ;;  %v4168_v23 = vmul.f32 %v6188_v61, %v7672_v46  ;;  %6209 = vpow2.f32 %v4158_v60 }
 0xfd5   :  { %v6192_v10 = vpop.eup %6191  ;;  %v4185_v36 = vpack.c.bf16 %v6190_v21, %v6188_v61  ;;  %v4169_v54 = vmul.f32 %v6190_v21, %v7674_v49  ;;  %6211 = vpow2.f32 %v4160_v57  ;;  %v6357_v21 = vld [vmem:[#allocation5 + $0x28] sm:$0xff]  }
 0xfd6   :  { %v6194_v55 = vpop.eup %6193  ;;  %v4170_v6 = vmul.f32 %v6192_v10, %v7676_v45  ;;  %6213 = vpow2.f32 %v4162_v50 }
 0xfd7   :  { %v6196_v37 = vpop.eup %6195  ;;  %4200 = vmatprep.subr.bf16.mxu0 %v4185_v36  ;;  %v4184_v56 = vpack.c.bf16 %v4169_v54, %v4168_v23  ;;  %v4187_v1 = vpack.c.bf16 %v6194_v55, %v6192_v10  ;;  %v4171_v47 = vmul.f32 %v6194_v55, %v7678_v14  ;;  %6215 = vpow2.f32 %v4164_v7  ;;  %v6358_v23 = vld [vmem:[#allocation5 + $0x30] sm:$0xff]  }
 0xfd8   :  { %v6198_v11 = vpop.eup %6197  ;;  %v4172_v46 = vmul.f32 %v6196_v37, %v7680_v2  ;;  %6217 = vpow2.f32 %v4166_v13  ;;  %v6359_v13 = vld [vmem:[#allocation5 + $0x38] sm:$0xff]  }
 0xfd9   :  { %v6200_v22 = vpop.eup %6199  ;;  %4201 = vmatpush1.bf16.msra.mxu0 %v4184_v56  ;;  %v4186_v52 = vpack.c.bf16 %v4171_v47, %v4170_v6  ;;  %v4189_v49 = vpack.c.bf16 %v6198_v11, %v6196_v37  ;;  %v4173_v18 = vmul.f32 %v6198_v11, %v7682_v28  ;;  %v8046_v47 = vsub.s32 3, %v7112_v38 }
 0xfda   :  { %v6202_v33 = vpop.eup %6201  ;;  %4202 = vmatprep.subr.bf16.mxu0 %v4187_v1  ;;  %v4174_v45 = vmul.f32 %v6200_v22, %v7686_v30  ;;  %v6360_v1 = vld [vmem:[#allocation16 + $0x1] ss:$2 sm:$0xf] }
 0xfdb   :  { %v6204_v12 = vpop.eup %6203  ;;  %v4188_v35 = vpack.c.bf16 %v4173_v18, %v4172_v46  ;;  %v4191_v25 = vpack.c.bf16 %v6202_v33, %v6200_v22  ;;  %v4175_v14 = vmul.f32 %v6202_v33, %v7690_v19  ;;  %v7758_v11 = vrot.slane %v6360_v1, %v8046_v47  ;;  %v3155_v22 = vld [vmem:[#allocation19 + $0x2] sm:$0x3] }
 0xfdc   :  { %v6206_v3 = vpop.eup %6205  ;;  %v4176_v51 = vmul.f32 %v6204_v12, %v7694_v32 }
 0xfdd   :  { %v6208_v2 = vpop.eup %6207  ;;  %4203 = vmatpush1.bf16.msra.mxu0 %v4186_v52  ;;  %v4190_v62 = vpack.c.bf16 %v4175_v14, %v4174_v45  ;;  %v4193_v26 = vpack.c.bf16 %v6206_v3, %v6204_v12  ;;  %v4177_v63 = vmul.f32 %v6206_v3, %v7698_v8  ;;  %v7762_v33 = vadd.f32 %v7564_v53, %v7758_v11 }
 0xfde   :  { %v6210_v58 = vpop.eup %6209  ;;  %4204 = vmatprep.subr.bf16.mxu0 %v4189_v49  ;;  %v4178_v28 = vmul.f32 %v6208_v2, %v7702_v41  ;;  %v7765_v45 = vrot.slane %v3155_v22, %v7115_v29  ;;  %v7768_v12 = vrot.slane %v3155_v22, %v7119_v42  ;;  %v7828_v47 = vadd.f32 %v7594_v24, %v7758_v11 }
 0xfdf   :  { %v6212_v0 = vpop.eup %6211  ;;  %v4192_v30 = vpack.c.bf16 %v4177_v63, %v4176_v51  ;;  %v4195_v59 = vpack.c.bf16 %v6210_v58, %v6208_v2  ;;  %v4179_v39 = vmul.f32 %v6210_v58, %v7706_v27  ;;  %v6352_v27 = vld [vmem:[#allocation5] sm:$0xff]  }
 0xfe0   :  { %v6214_v17 = vpop.eup %6213  ;;  %v4180_v19 = vmul.f32 %v6212_v0, %v7710_v44  ;;  %v6353_v44 = vld [vmem:[#allocation5 + $0x8] sm:$0xff]   ;;  %v4365_v53 = vmul.f32 %v7765_v45, %v7762_v33 }
 0xfe1   :  { %v6216_v48 = vpop.eup %6215  ;;  %4205 = vmatpush1.bf16.msra.mxu0 %v4188_v35  ;;  %v4194_v32 = vpack.c.bf16 %v4179_v39, %v4178_v28  ;;  %v4197_v60 = vpack.c.bf16 %v6214_v17, %v6212_v0  ;;  %v4181_v20 = vmul.f32 %v6214_v17, %v7714_v43  ;;  %v6354_v43 = vld [vmem:[#allocation5 + $0x10] sm:$0xff]   ;;  %v7772_v35 = vadd.f32 %v7570_v9, %v7758_v11 }
 0xfe2   :  { %v6218_v57 = vpop.eup %6217  ;;  %4206 = vmatprep.subr.bf16.mxu0 %v4191_v25  ;;  %v4182_v8 = vmul.f32 %v6216_v48, %v7718_v16  ;;  %v6355_v16 = vld [vmem:[#allocation5 + $0x18] sm:$0xff]   ;;  %v7788_v0 = vadd.f32 %v7574_v4, %v7758_v11  ;;  %v7792_v39 = vadd.f32 %v7580_v5, %v7758_v11 }
 0xfe3   :  { %v4196_v50 = vpack.c.bf16 %v4181_v20, %v4180_v19  ;;  %v4199_v41 = vpack.c.bf16 %v6218_v57, %v6216_v48  ;;  %v4183_v61 = vmul.f32 %v6218_v57, %v7722_v31  ;;  %v6356_v31 = vld [vmem:[#allocation5 + $0x20] sm:$0xff]  }
 0xfe4   :  { %v4368_v5 = vmul.f32 %v7765_v45, %v7792_v39 }
 0xfe5   :  { %4207 = vmatpush1.bf16.msra.mxu0 %v4190_v62  ;;  %v4198_v7 = vpack.c.bf16 %v4183_v61, %v4182_v8 }
 0xfe6   :  { %4208 = vmatprep.subr.bf16.mxu0 %v4193_v26  ;;  %v4366_v26 = vmul.f32 %v7765_v45, %v7772_v35 }
 0xfe9   :  { %4209 = vmatpush1.bf16.msra.mxu0 %v4192_v30 }
 0xfea   :  { %4210 = vmatprep.subr.bf16.mxu0 %v4195_v59 }
 0xfed   :  { %4211 = vmatpush1.bf16.msra.mxu0 %v4194_v32  ;;  %v4367_v32 = vmul.f32 %v7765_v45, %v7788_v0 }
 0xfee   :  { %4212 = vmatprep.subr.bf16.mxu0 %v4197_v60 }
 0xff1   :  { %4213 = vmatpush1.bf16.msra.mxu0 %v4196_v50 }
 0xff2   :  { %4214 = vmatprep.subr.bf16.mxu0 %v4199_v41 }
 0xff5   :  { %4215 = vmatpush1.bf16.msra.mxu0 %v4198_v7 }
 0xff8   :  { %4233 = vmatmul.mubr.bf16.vlgmr.msra.gmra.mrb[208].mxu0 %v6352_v27  ;;  %v7808_v27 = vadd.f32 %v7584_v34, %v7758_v11 }
 0xff9   :  { %4242 = vmatprep.mubr.bf16.mxu0 %v8026_v40 }
0x1000   :  { %4243 = vmatmul.mubr.bf16.gmra.mrb[212].mxu0 %v6353_v44 }
0x1001   :  { %4252 = vmatprep.mubr.bf16.mxu0 %v8026_v40 }
0x1008   :  { %4253 = vmatmul.mubr.bf16.gmra.mrb[216].mxu0 %v6354_v43 }
0x1009   :  { %4262 = vmatprep.mubr.bf16.mxu0 %v8026_v40 }
0x1010   :  { %4263 = vmatmul.mubr.bf16.gmra.mrb[220].mxu0 %v6355_v16  ;;  %v7812_v16 = vadd.f32 %v7590_v15, %v7758_v11 }
0x1011   :  { %4272 = vmatprep.mubr.bf16.mxu0 %v8026_v40 }
0x1012   :  { %v4370_v15 = vmul.f32 %v7765_v45, %v7812_v16 }
0x1018   :  { %4273 = vmatmul.mubr.bf16.gmra.mrb[224].mxu0 %v6356_v31 }
0x1019   :  { %4282 = vmatprep.mubr.bf16.mxu0 %v8026_v40 }
0x1020   :  { %4283 = vmatmul.mubr.bf16.gmra.mrb[228].mxu0 %v6357_v21 }
0x1021   :  { %4292 = vmatprep.mubr.bf16.mxu0 %v8026_v40 }
0x1028   :  { %4293 = vmatmul.mubr.bf16.gmra.mrb[232].mxu0 %v6358_v23 }
0x1029   :  { %4302 = vmatprep.mubr.bf16.mxu0 %v8026_v40 }
0x1030   :  { %4303 = vmatmul.mubr.bf16.gmra.mrb[236].mxu0 %v6359_v13  ;;  %v4369_v13 = vmul.f32 %v7765_v45, %v7808_v27 }
0x10cb   :  { %v4234_v10 = vpop.f32.mrb[208].mxu0 }
0x10cc   :  { %v4236_v36 = vpop.f32.mrb[209].mxu0 }
0x10cd   :  { %v4313_v54 = vmax.f32 %v4236_v36, 1e-20  ;;  %v4238_v55 = vpop.f32.mrb[210].mxu0 }
0x10ce   :  { %v4240_v6 = vpop.f32.mrb[211].mxu0 }
0x10cf   :  { %6219 = vrcp.f32 %v4313_v54  ;;  %v4314_v37 = vmax.f32 %v4240_v6, 1e-20 }
0x10d1   :  { %6221 = vrcp.f32 %v4314_v37 }
0x10d3   :  { %v4244_v56 = vpop.f32.mrb[212].mxu0 }
0x10d4   :  { %v4246_v46 = vpop.f32.mrb[213].mxu0 }
0x10d5   :  { %v4315_v52 = vmax.f32 %v4246_v46, 1e-20  ;;  %v4248_v40 = vpop.f32.mrb[214].mxu0 }
0x10d6   :  { %v4250_v49 = vpop.f32.mrb[215].mxu0 }
0x10d7   :  { %6223 = vrcp.f32 %v4315_v52  ;;  %v4316_v18 = vmax.f32 %v4250_v49, 1e-20  ;;  %v8047_v52 = vld [vmem:[#allocation40_spill] sm:$0xff] }
0x10d9   :  { %v6220_v38 = vpop.eup %6219  ;;  %6225 = vrcp.f32 %v4316_v18 }
0x10da   :  { %v7774_v25 = vmul.f32 %v6220_v38, %v4234_v10 }
0x10db   :  { %v6222_v14 = vpop.eup %6221  ;;  %v4254_v3 = vpop.f32.mrb[216].mxu0 }
0x10dc   :  { %v4256_v51 = vpop.f32.mrb[217].mxu0  ;;  %v4385_v29 = vmul.f32 %v7768_v12, %v7774_v25  ;;  %v7780_v2 = vmul.f32 %v6222_v14, %v4238_v55  ;;  %v4371_v14 = vmul.f32 %v7765_v45, %v7828_v47 }
0x10dd   :  { %v4317_v42 = vmax.f32 %v4256_v51, 1e-20  ;;  %v4258_v62 = vpop.f32.mrb[218].mxu0 }
0x10de   :  { %v4260_v9 = vpop.f32.mrb[219].mxu0  ;;  %v4401_v63 = vadd.f32 %v4385_v29, %v4365_v53  ;;  %v4386_v58 = vmul.f32 %v7768_v12, %v7780_v2 }
0x10df   :  { %6227 = vrcp.f32 %v4317_v42  ;;  %v4318_v28 = vmax.f32 %v4260_v9, 1e-20 }
0x10e0   :  { %4417 = vadd.xlane.f32.xlu0 %v4401_v63  ;;  %v4402_v30 = vadd.f32 %v4386_v58, %v4366_v26  ;;  %v8048_v58 = vld [vmem:[#allocation41_spill] sm:$0xff] }
0x10e1   :  { %v6224_v59 = vpop.eup %6223  ;;  %6229 = vrcp.f32 %v4318_v28  ;;  %v7848_v28 = vadd.f32 %v8048_v58, %v7758_v11 }
0x10e2   :  { %4419 = vadd.xlane.f32.xlu1 %v4402_v30  ;;  %v7794_v17 = vmul.f32 %v6224_v59, %v4244_v56 }
0x10e3   :  { %v6226_v19 = vpop.eup %6225  ;;  %v4264_v48 = vpop.f32.mrb[220].mxu0 }
0x10e4   :  { %v4266_v60 = vpop.f32.mrb[221].mxu0  ;;  %v4387_v4 = vmul.f32 %v7768_v12, %v7794_v17  ;;  %v7800_v20 = vmul.f32 %v6226_v19, %v4248_v40  ;;  %v7832_v40 = vadd.f32 %v8047_v52, %v7758_v11  ;;  %v8049_v19 = vld [vmem:[#allocation42_spill] sm:$0xff] }
0x10e5   :  { %v4319_v57 = vmax.f32 %v4266_v60, 1e-20  ;;  %v4268_v8 = vpop.f32.mrb[222].mxu0 }
0x10e6   :  { %v4270_v50 = vpop.f32.mrb[223].mxu0  ;;  %v4403_v41 = vadd.f32 %v4387_v4, %v4367_v32  ;;  %v4388_v61 = vmul.f32 %v7768_v12, %v7800_v20  ;;  %v4372_v42 = vmul.f32 %v7765_v45, %v7832_v40 }
0x10e7   :  { %6231 = vrcp.f32 %v4319_v57  ;;  %v4320_v7 = vmax.f32 %v4270_v50, 1e-20  ;;  %v4373_v57 = vmul.f32 %v7765_v45, %v7848_v28 }
0x10e8   :  { %4421 = vadd.xlane.f32.xlu0 %v4403_v41  ;;  %v4404_v44 = vadd.f32 %v4388_v61, %v4368_v5 }
0x10e9   :  { %v6228_v43 = vpop.eup %6227  ;;  %6233 = vrcp.f32 %v4320_v7 }
0x10ea   :  { %4423 = vadd.xlane.f32.xlu1 %v4404_v44  ;;  %v7814_v31 = vmul.f32 %v6228_v43, %v4254_v3 }
0x10eb   :  { %v6230_v21 = vpop.eup %6229  ;;  %v4274_v23 = vpop.f32.mrb[224].mxu0 }
0x10ec   :  { %v4276_v10 = vpop.f32.mrb[225].mxu0  ;;  %v4389_v34 = vmul.f32 %v7768_v12, %v7814_v31  ;;  %v7820_v36 = vmul.f32 %v6230_v21, %v4258_v62 }
0x10ed   :  { %v4321_v54 = vmax.f32 %v4276_v10, 1e-20  ;;  %v4278_v55 = vpop.f32.mrb[226].mxu0 }
0x10ee   :  { %v4280_v6 = vpop.f32.mrb[227].mxu0  ;;  %v4405_v37 = vadd.f32 %v4389_v34, %v4369_v13  ;;  %v4390_v56 = vmul.f32 %v7768_v12, %v7820_v36  ;;  %v8050_v13 = vld [vmem:[#allocation43_spill] sm:$0xff] }
0x10ef   :  { %6235 = vrcp.f32 %v4321_v54  ;;  %v4322_v1 = vmax.f32 %v4280_v6, 1e-20  ;;  %v7868_v10 = vadd.f32 %v8050_v13, %v7758_v11 }
0x10f0   :  { %4425 = vadd.xlane.f32.xlu0 %v4405_v37  ;;  %v4406_v46 = vadd.f32 %v4390_v56, %v4370_v15 }
0x10f1   :  { %v6232_v22 = vpop.eup %6231  ;;  %6237 = vrcp.f32 %v4322_v1  ;;  %v4375_v1 = vmul.f32 %v7765_v45, %v7868_v10 }
0x10f2   :  { %4427 = vadd.xlane.f32.xlu1 %v4406_v46  ;;  %v7834_v49 = vmul.f32 %v6232_v22, %v4264_v48  ;;  %v7852_v48 = vadd.f32 %v8049_v19, %v7758_v11 }
0x10f3   :  { %v6234_v18 = vpop.eup %6233  ;;  %v4284_v38 = vpop.f32.mrb[228].mxu0 }
0x10f4   :  { %v4286_v3 = vpop.f32.mrb[229].mxu0  ;;  %v4391_v24 = vmul.f32 %v7768_v12, %v7834_v49  ;;  %v7840_v53 = vmul.f32 %v6234_v18, %v4268_v8  ;;  %v4374_v7 = vmul.f32 %v7765_v45, %v7852_v48 }
0x10f5   :  { %v4323_v51 = vmax.f32 %v4286_v3, 1e-20  ;;  %v4288_v29 = vpop.f32.mrb[230].mxu0 }
0x10f6   :  { %v4290_v62 = vpop.f32.mrb[231].mxu0  ;;  %v4407_v26 = vadd.f32 %v4391_v24, %v4371_v14  ;;  %v4392_v9 = vmul.f32 %v7768_v12, %v7840_v53 }
0x10f7   :  { %6239 = vrcp.f32 %v4323_v51  ;;  %v4324_v63 = vmax.f32 %v4290_v62, 1e-20  ;;  %v8052_v62 = vld [vmem:[#allocation45_spill] sm:$0xff] }
0x10f8   :  { %4429 = vadd.xlane.f32.xlu0 %v4407_v26  ;;  %v4408_v30 = vadd.f32 %v4392_v9, %v4372_v42  ;;  %v7888_v26 = vadd.f32 %v8052_v62, %v7758_v11 }
0x10f9   :  { %v6236_v59 = vpop.eup %6235  ;;  %6241 = vrcp.f32 %v4324_v63  ;;  %v8053_v63 = vld [vmem:[#allocation46_spill] sm:$0xff] }
0x10fa   :  { %4431 = vadd.xlane.f32.xlu1 %v4408_v30  ;;  %v7854_v32 = vmul.f32 %v6236_v59, %v4274_v23  ;;  %v7892_v58 = vadd.f32 %v8053_v63, %v7758_v11  ;;  %v4377_v19 = vmul.f32 %v7765_v45, %v7888_v26 }
0x10fb   :  { %v6238_v60 = vpop.eup %6237  ;;  %v4294_v4 = vpop.f32.mrb[232].mxu0 }
0x10fc   :  { %v4296_v8 = vpop.f32.mrb[233].mxu0  ;;  %v4393_v5 = vmul.f32 %v7768_v12, %v7854_v32  ;;  %v7860_v50 = vmul.f32 %v6238_v60, %v4278_v55  ;;  %v8051_v55 = vld [vmem:[#allocation44_spill] sm:$0xff] }
0x10fd   :  { %v4325_v41 = vmax.f32 %v4296_v8, 1e-20  ;;  %v4298_v61 = vpop.f32.mrb[234].mxu0  ;;  %v7872_v15 = vadd.f32 %v8051_v55, %v7758_v11  ;;  %v4378_v8 = vmul.f32 %v7765_v45, %v7892_v58 }
0x10fe   :  { %v4300_v44 = vpop.f32.mrb[235].mxu0  ;;  %v4409_v43 = vadd.f32 %v4393_v5, %v4373_v57  ;;  %v4394_v21 = vmul.f32 %v7768_v12, %v7860_v50 }
0x10ff   :  { %6243 = vrcp.f32 %v4325_v41  ;;  %v4326_v23 = vmax.f32 %v4300_v44, 1e-20  ;;  %v4376_v3 = vmul.f32 %v7765_v45, %v7872_v15 }
0x1100   :  { %4433 = vadd.xlane.f32.xlu0 %v4409_v43  ;;  %v4410_v34 = vadd.f32 %v4394_v21, %v4374_v7  ;;  %v8054_v7 = vld [vmem:[#allocation47_spill] sm:$0xff]  ;;  %v8055_v21 = vld [vmem:[#allocation48_spill] sm:$0xff] }
0x1101   :  { %v6240_v54 = vpop.eup %6239  ;;  %6245 = vrcp.f32 %v4326_v23  ;;  %v7912_v23 = vadd.f32 %v8055_v21, %v7758_v11 }
0x1102   :  { %4435 = vadd.xlane.f32.xlu1 %v4410_v34  ;;  %v7874_v6 = vmul.f32 %v6240_v54, %v4284_v38 }
0x1103   :  { %v6242_v37 = vpop.eup %6241  ;;  %v4304_v56 = vpop.f32.mrb[236].mxu0 }
0x1104   :  { %v4306_v46 = vpop.f32.mrb[237].mxu0  ;;  %v4395_v22 = vmul.f32 %v7768_v12, %v7874_v6  ;;  %v7880_v52 = vmul.f32 %v6242_v37, %v4288_v29  ;;  %v4380_v37 = vmul.f32 %v7765_v45, %v7912_v23 }
0x1105   :  { %v4327_v18 = vmax.f32 %v4306_v46, 1e-20  ;;  %v4308_v14 = vpop.f32.mrb[238].mxu0 }
0x1106   :  { %v4310_v24 = vpop.f32.mrb[239].mxu0  ;;  %v4411_v51 = vadd.f32 %v4395_v22, %v4375_v1  ;;  %v4396_v38 = vmul.f32 %v7768_v12, %v7880_v52 }
0x1107   :  { %6247 = vrcp.f32 %v4327_v18  ;;  %v4328_v42 = vmax.f32 %v4310_v24, 1e-20 }
0x1108   :  { %4437 = vadd.xlane.f32.xlu0 %v4411_v51  ;;  %v4412_v9 = vadd.f32 %v4396_v38, %v4376_v3 }
0x1109   :  { %v6244_v29 = vpop.eup %6243  ;;  %6249 = vrcp.f32 %v4328_v42 }
0x110a   :  { %4439 = vadd.xlane.f32.xlu1 %v4412_v9  ;;  %v7894_v30 = vmul.f32 %v6244_v29, %v4294_v4  ;;  %v7908_v4 = vadd.f32 %v8054_v7, %v7758_v11 }
0x110b   :  { %v6246_v59 = vpop.eup %6245 }
0x110c   :  { %v4397_v60 = vmul.f32 %v7768_v12, %v7894_v30  ;;  %v7900_v57 = vmul.f32 %v6246_v59, %v4298_v61  ;;  %v4379_v34 = vmul.f32 %v7765_v45, %v7908_v4 }
0x110e   :  { %v4413_v5 = vadd.f32 %v4397_v60, %v4377_v19  ;;  %v4398_v41 = vmul.f32 %v7768_v12, %v7900_v57 }
0x1110   :  { %4441 = vadd.xlane.f32.xlu0 %v4413_v5  ;;  %v4414_v44 = vadd.f32 %v4398_v41, %v4378_v8 }
0x1111   :  { %v6248_v43 = vpop.eup %6247 }
0x1112   :  { %4443 = vadd.xlane.f32.xlu1 %v4414_v44  ;;  %v7914_v61 = vmul.f32 %v6248_v43, %v4304_v56  ;;  %v7926_v56 = vld [vmem:[#allocation2 + $0xc0] sm:$0xff]  }
0x1113   :  { %v6250_v13 = vpop.eup %6249  ;;  %v4650_v22 = vunpack.c.l.bf16 %v7926_v56  ;;  %v4651_v18 = vunpack.c.h.bf16 %v7926_v56 }
0x1114   :  { %v4399_v54 = vmul.f32 %v7768_v12, %v7914_v61  ;;  %v7920_v55 = vmul.f32 %v6250_v13, %v4308_v14 }
0x1116   :  { %v4415_v1 = vadd.f32 %v4399_v54, %v4379_v34  ;;  %v4400_v11 = vmul.f32 %v7768_v12, %v7920_v55 }
0x1118   :  { %4445 = vadd.xlane.f32.xlu0 %v4415_v1  ;;  %v4416_v46 = vadd.f32 %v4400_v11, %v4380_v37 }
0x111a   :  { %4447 = vadd.xlane.f32.xlu1 %v4416_v46 }
0x111c   :  { %4652 = vadd.xlane.f32.xlu0 %v4650_v22 }
0x111e   :  { %4654 = vadd.xlane.f32.xlu1 %v4651_v18 }
0x116d   :  { %v4418_v14 = vpop.xlane.xlu0 %4417 }
0x116e   :  { %v4449_v3 = vsub.f32 0.0, %v4418_v14 }
0x116f   :  { %v4420_v24 = vpop.xlane.xlu1 %4419 }
0x1170   :  { %v4465_v51 = vmul.f32 1.442695, %v4449_v3  ;;  %v4450_v45 = vsub.f32 0.0, %v4420_v24 }
0x1172   :  { %6251 = vpow2.f32 %v4465_v51  ;;  %v4467_v38 = vmul.f32 1.442695, %v4450_v45 }
0x1174   :  { %6253 = vpow2.f32 %v4467_v38 }
0x1175   :  { %v4422_v12 = vpop.xlane.xlu0 %4421 }
0x1176   :  { %v4451_v42 = vsub.f32 0.0, %v4422_v12 }
0x1177   :  { %v4424_v62 = vpop.xlane.xlu1 %4423 }
0x1178   :  { %v4469_v9 = vmul.f32 1.442695, %v4451_v42  ;;  %v4452_v29 = vsub.f32 0.0, %v4424_v62 }
0x117a   :  { %6255 = vpow2.f32 %v4469_v9  ;;  %v4471_v63 = vmul.f32 1.442695, %v4452_v29 }
0x117c   :  { %v6252_v59 = vpop.eup %6251  ;;  %6257 = vpow2.f32 %v4471_v63 }
0x117d   :  { %v4497_v19 = vadd.f32 1.0, %v6252_v59  ;;  %v4426_v60 = vpop.xlane.xlu0 %4425 }
0x117e   :  { %v6254_v8 = vpop.eup %6253  ;;  %v4453_v5 = vsub.f32 0.0, %v4426_v60 }
0x117f   :  { %6259 = vrcp.f32 %v4497_v19  ;;  %v4498_v41 = vadd.f32 1.0, %v6254_v8  ;;  %v4428_v7 = vpop.xlane.xlu1 %4427 }
0x1180   :  { %v4473_v44 = vmul.f32 1.442695, %v4453_v5  ;;  %v4454_v43 = vsub.f32 0.0, %v4428_v7 }
0x1181   :  { %6261 = vrcp.f32 %v4498_v41 }
0x1182   :  { %6263 = vpow2.f32 %v4473_v44  ;;  %v4475_v21 = vmul.f32 1.442695, %v4454_v43 }
0x1184   :  { %v6256_v13 = vpop.eup %6255  ;;  %6265 = vpow2.f32 %v4475_v21 }
0x1185   :  { %v4499_v34 = vadd.f32 1.0, %v6256_v13  ;;  %v4430_v54 = vpop.xlane.xlu0 %4429 }
0x1186   :  { %v6258_v37 = vpop.eup %6257  ;;  %v4455_v1 = vsub.f32 0.0, %v4430_v54 }
0x1187   :  { %6267 = vrcp.f32 %v4499_v34  ;;  %v4500_v11 = vadd.f32 1.0, %v6258_v37  ;;  %v4432_v46 = vpop.xlane.xlu1 %4431 }
0x1188   :  { %v4477_v22 = vmul.f32 1.442695, %v4455_v1  ;;  %v4456_v18 = vsub.f32 0.0, %v4432_v46 }
0x1189   :  { %v6260_v14 = vpop.eup %6259  ;;  %6269 = vrcp.f32 %v4500_v11 }
0x118a   :  { %6271 = vpow2.f32 %v4477_v22  ;;  %v4479_v3 = vmul.f32 1.442695, %v4456_v18  ;;  %v4545_v24 = vsub.f32 1.0, %v6260_v14  ;;  %v4529_v63 = vmul.f32 %v6260_v14, %v7762_v33 }
0x118b   :  { %v6262_v51 = vpop.eup %6261 }
0x118c   :  { %v6264_v45 = vpop.eup %6263  ;;  %6273 = vpow2.f32 %v4479_v3  ;;  %v4546_v38 = vsub.f32 1.0, %v6262_v51  ;;  %v4561_v12 = vmul.f32 %v4545_v24, %v7774_v25  ;;  %v4530_v59 = vmul.f32 %v6262_v51, %v7772_v35 }
0x118d   :  { %v4501_v42 = vadd.f32 1.0, %v6264_v45  ;;  %v4434_v62 = vpop.xlane.xlu0 %4433 }
0x118e   :  { %v6266_v9 = vpop.eup %6265  ;;  %v4457_v29 = vsub.f32 0.0, %v4434_v62  ;;  %v4562_v19 = vmul.f32 %v4546_v38, %v7780_v2  ;;  %v4577_v7 = vadd.f32 %v4561_v12, %v4529_v63  ;;  %v8056_v2 = vld [vmem:[#allocation33_spill] sm:$0xff] }
0x118f   :  { %6275 = vrcp.f32 %v4501_v42  ;;  %v4502_v60 = vadd.f32 1.0, %v6266_v9  ;;  %v4436_v8 = vpop.xlane.xlu1 %4435 }
0x1190   :  { %v4481_v5 = vmul.f32 1.442695, %v4457_v29  ;;  %v4458_v41 = vsub.f32 0.0, %v4436_v8  ;;  %v4578_v44 = vadd.f32 %v4562_v19, %v4530_v59 }
0x1191   :  { %v6268_v43 = vpop.eup %6267  ;;  %6277 = vrcp.f32 %v4502_v60 }
0x1192   :  { %6279 = vpow2.f32 %v4481_v5  ;;  %v4483_v25 = vmul.f32 1.442695, %v4458_v41  ;;  %v4593_v21 = vpack.c.bf16 %v4578_v44, %v4577_v7  ;;  %v4547_v34 = vsub.f32 1.0, %v6268_v43 }
0x1193   :  { %v6270_v13 = vpop.eup %6269  ;;  %v4531_v22 = vmul.f32 %v6268_v43, %v7788_v0 }
0x1194   :  { %v6272_v54 = vpop.eup %6271  ;;  %6281 = vpow2.f32 %v4483_v25  ;;  %4607 = vmatprep.subr.bf16.mxu1 %v4593_v21  ;;  %v4548_v33 = vsub.f32 1.0, %v6270_v13  ;;  %v4563_v1 = vmul.f32 %v4547_v34, %v7794_v17  ;;  %v4532_v18 = vmul.f32 %v6270_v13, %v7792_v39 }
0x1195   :  { %v4503_v35 = vadd.f32 1.0, %v6272_v54  ;;  %4608 = vmatpush1.bf16.msra.mxu1 %v8056_v2  ;;  %v4438_v37 = vpop.xlane.xlu0 %4437 }
0x1196   :  { %v6274_v11 = vpop.eup %6273  ;;  %v4459_v46 = vsub.f32 0.0, %v4438_v37  ;;  %v4564_v14 = vmul.f32 %v4548_v33, %v7800_v20  ;;  %v4579_v38 = vadd.f32 %v4563_v1, %v4531_v22  ;;  %v8057_v20 = vld [vmem:[#allocation32_spill] sm:$0xff] }
0x1197   :  { %6283 = vrcp.f32 %v4503_v35  ;;  %v4504_v3 = vadd.f32 1.0, %v6274_v11  ;;  %v4440_v24 = vpop.xlane.xlu1 %4439 }
0x1198   :  { %v4485_v51 = vmul.f32 1.442695, %v4459_v46  ;;  %v4460_v45 = vsub.f32 0.0, %v4440_v24  ;;  %v4580_v12 = vadd.f32 %v4564_v14, %v4532_v18 }
0x1199   :  { %v6276_v42 = vpop.eup %6275  ;;  %6285 = vrcp.f32 %v4504_v3 }
0x119a   :  { %6287 = vpow2.f32 %v4485_v51  ;;  %v4487_v62 = vmul.f32 1.442695, %v4460_v45  ;;  %v4594_v17 = vpack.c.bf16 %v4580_v12, %v4579_v38  ;;  %v4549_v29 = vsub.f32 1.0, %v6276_v42 }
0x119b   :  { %v6278_v9 = vpop.eup %6277  ;;  %v4533_v5 = vmul.f32 %v6276_v42, %v7808_v27 }
0x119c   :  { %v6280_v63 = vpop.eup %6279  ;;  %6289 = vpow2.f32 %v4487_v62  ;;  %4609 = vmatprep.subr.bf16.mxu1 %v4594_v17  ;;  %v4550_v0 = vsub.f32 1.0, %v6278_v9  ;;  %v4565_v19 = vmul.f32 %v4549_v29, %v7814_v31  ;;  %v4534_v41 = vmul.f32 %v6278_v9, %v7812_v16 }
0x119d   :  { %v4505_v39 = vadd.f32 1.0, %v6280_v63  ;;  %4610 = vmatpush1.bf16.msra.mxu1 %v8057_v20  ;;  %v4442_v59 = vpop.xlane.xlu0 %4441 }
0x119e   :  { %v6282_v60 = vpop.eup %6281  ;;  %v4461_v8 = vsub.f32 0.0, %v4442_v59  ;;  %v4566_v7 = vmul.f32 %v4550_v0, %v7820_v36  ;;  %v4581_v13 = vadd.f32 %v4565_v19, %v4533_v5  ;;  %v8058_v36 = vld [vmem:[#allocation35_spill] sm:$0xff] }
0x119f   :  { %6291 = vrcp.f32 %v4505_v39  ;;  %v4506_v44 = vadd.f32 1.0, %v6282_v60  ;;  %v4444_v43 = vpop.xlane.xlu1 %4443 }
0x11a0   :  { %v4489_v25 = vmul.f32 1.442695, %v4461_v8  ;;  %v4462_v21 = vsub.f32 0.0, %v4444_v43  ;;  %v4582_v34 = vadd.f32 %v4566_v7, %v4534_v41 }
0x11a1   :  { %v6284_v54 = vpop.eup %6283  ;;  %6293 = vrcp.f32 %v4506_v44 }
0x11a2   :  { %6295 = vpow2.f32 %v4489_v25  ;;  %v4491_v33 = vmul.f32 1.442695, %v4462_v21  ;;  %v4595_v31 = vpack.c.bf16 %v4582_v34, %v4581_v13  ;;  %v4551_v2 = vsub.f32 1.0, %v6284_v54 }
0x11a3   :  { %v6286_v35 = vpop.eup %6285  ;;  %v4535_v18 = vmul.f32 %v6284_v54, %v7828_v47 }
0x11a4   :  { %v6288_v37 = vpop.eup %6287  ;;  %6297 = vpow2.f32 %v4491_v33  ;;  %4611 = vmatprep.subr.bf16.mxu1 %v4595_v31  ;;  %v4552_v27 = vsub.f32 1.0, %v6286_v35  ;;  %v4567_v11 = vmul.f32 %v4551_v2, %v7834_v49  ;;  %v4536_v14 = vmul.f32 %v6286_v35, %v7832_v40 }
0x11a5   :  { %v4507_v16 = vadd.f32 1.0, %v6288_v37  ;;  %4612 = vmatpush1.bf16.msra.mxu1 %v8058_v36  ;;  %v4446_v1 = vpop.xlane.xlu0 %4445 }
0x11a6   :  { %v6290_v46 = vpop.eup %6289  ;;  %v4463_v22 = vsub.f32 0.0, %v4446_v1  ;;  %v4568_v3 = vmul.f32 %v4552_v27, %v7840_v53  ;;  %v4583_v12 = vadd.f32 %v4567_v11, %v4535_v18  ;;  %v8059_v53 = vld [vmem:[#allocation34_spill] sm:$0xff]  ;;  %v8061_v1 = vld [vmem:[#allocation36_spill] sm:$0xff] }
0x11a7   :  { %6299 = vrcp.f32 %v4507_v16  ;;  %v4508_v24 = vadd.f32 1.0, %v6290_v46  ;;  %v4448_v51 = vpop.xlane.xlu1 %4447 }
0x11a8   :  { %v4493_v45 = vmul.f32 1.442695, %v4463_v22  ;;  %v4464_v38 = vsub.f32 0.0, %v4448_v51  ;;  %v4584_v42 = vadd.f32 %v4568_v3, %v4536_v14 }
0x11a9   :  { %v6292_v62 = vpop.eup %6291  ;;  %6301 = vrcp.f32 %v4508_v24 }
0x11aa   :  { %6303 = vpow2.f32 %v4493_v45  ;;  %v4495_v17 = vmul.f32 1.442695, %v4464_v38  ;;  %v4596_v49 = vpack.c.bf16 %v4584_v42, %v4583_v12  ;;  %v4553_v29 = vsub.f32 1.0, %v6292_v62  ;;  %v8062_v45 = vld [vmem:[#allocation39_spill] sm:$0xff]  ;;  %v6034_v42 = vld [vmem:[#allocation20 + $0x40] sm:$0xff]  }
0x11ab   :  { %v6294_v9 = vpop.eup %6293  ;;  %v4537_v20 = vmul.f32 %v6292_v62, %v7848_v28  ;;  %v8060_v28 = vld [vmem:[#allocation37_spill] sm:$0xff]  ;;  %v8063_v62 = vld [vmem:[#allocation38_spill] sm:$0xff] }
0x11ac   :  { %v6296_v63 = vpop.eup %6295  ;;  %6305 = vpow2.f32 %v4495_v17  ;;  %4613 = vmatprep.subr.bf16.mxu1 %v4596_v49  ;;  %v4554_v47 = vsub.f32 1.0, %v6294_v9  ;;  %v4569_v0 = vmul.f32 %v4553_v29, %v7854_v32  ;;  %v4538_v59 = vmul.f32 %v6294_v9, %v7852_v48  ;;  %v6035_v17 = vld [vmem:[#allocation20] sm:$0xff]   ;;  %v6036_v49 = vld [vmem:[#allocation20 + $0x48] sm:$0xff]   ;;  %v6041_v9 = vld [vmem:[#allocation20 + $0x18] sm:$0xff]  }
0x11ad   :  { %v4509_v40 = vadd.f32 1.0, %v6296_v63  ;;  %4614 = vmatpush1.bf16.msra.mxu1 %v8059_v53  ;;  %v6042_v29 = vld [vmem:[#allocation20 + $0x60] sm:$0xff]   ;;  %v6047_v53 = vld [vmem:[#allocation20 + $0x30] sm:$0xff]  }
0x11ae   :  { %v6298_v39 = vpop.eup %6297  ;;  %v4570_v19 = vmul.f32 %v4554_v47, %v7860_v50  ;;  %v4585_v8 = vadd.f32 %v4569_v0, %v4537_v20  ;;  %v6043_v63 = vld [vmem:[#allocation20 + $0x20] sm:$0xff]   ;;  %v6044_v47 = vld [vmem:[#allocation20 + $0x68] sm:$0xff]   ;;  %v6048_v0 = vld [vmem:[#allocation20 + $0x78] sm:$0xff]  }
0x11af   :  { %6307 = vrcp.f32 %v4509_v40  ;;  %v4510_v60 = vadd.f32 1.0, %v6298_v39  ;;  %v6045_v40 = vld [vmem:[#allocation20 + $0x28] sm:$0xff]   ;;  %v6049_v39 = vld [vmem:[#allocation20 + $0x38] sm:$0xff]   ;;  %v6050_v20 = vld [vmem:[#allocation20 + $0x80] sm:$0xff]  }
0x11b0   :  { %v4586_v5 = vadd.f32 %v4570_v19, %v4538_v59  ;;  %v6705_v59 = vmov 0.0   ;;  %v6051_v19 = vld [vmem:[#allocation20 + $0x88] sm:$0xff]  }
0x11b1   :  { %v6300_v41 = vpop.eup %6299  ;;  %6309 = vrcp.f32 %v4510_v60  ;;  %5784 = vmatprep.subr.bf16.mxu0 %v6705_v59  ;;  %v6052_v60 = vld [vmem:[#allocation20 + $0x90] sm:$0xff]   ;;  %5800 = vmatprep.mubr.msk.bf16.mxu0 %vm6706_vm0, %v6705_v59 }
0x11b2   :  { %v4597_v7 = vpack.c.bf16 %v4586_v5, %v4585_v8  ;;  %v4555_v44 = vsub.f32 1.0, %v6300_v41  ;;  %v4539_v50 = vmul.f32 %v6300_v41, %v7868_v10  ;;  %5785 = vmatpush3.bf16.msra.mxu0 %v6050_v20  ;;  %v6053_v8 = vld [vmem:[#allocation20 + $0x98] sm:$0xff]   ;;  %v6054_v5 = vld [vmem:[#allocation20 + $0xa0] sm:$0xff]   ;;  %v6055_v41 = vld [vmem:[#allocation20 + $0xa8] sm:$0xff]  }
0x11b3   :  { %v6302_v43 = vpop.eup %6301  ;;  %5786 = vmatprep.subr.bf16.mxu0 %v6705_v59 }
0x11b4   :  { %v6304_v25 = vpop.eup %6303  ;;  %4615 = vmatprep.subr.bf16.mxu1 %v4597_v7  ;;  %v4556_v21 = vsub.f32 1.0, %v6302_v43  ;;  %v4571_v32 = vmul.f32 %v4555_v44, %v7874_v6  ;;  %v4540_v34 = vmul.f32 %v6302_v43, %v7872_v15  ;;  %v4653_v7 = vpop.xlane.xlu0 %4652 }
0x11b5   :  { %v4511_v13 = vadd.f32 1.0, %v6304_v25  ;;  %4616 = vmatpush1.bf16.msra.mxu1 %v8060_v28  ;;  %v4655_v44 = vpop.xlane.xlu1 %4654  ;;  %v4656_v43 = vmax.f32 %v4653_v7, 1.0 }
0x11b6   :  { %v6306_v48 = vpop.eup %6305  ;;  %v4572_v54 = vmul.f32 %v4556_v21, %v7880_v52  ;;  %v4587_v31 = vadd.f32 %v4571_v32, %v4539_v50  ;;  %5787 = vmatpush3.bf16.msra.mxu0 %v6051_v19  ;;  %v4657_v25 = vmax.f32 %v4655_v44, 1.0 }
0x11b7   :  { %6311 = vrcp.f32 %v4511_v13  ;;  %v4512_v33 = vadd.f32 1.0, %v6306_v48  ;;  %5788 = vmatprep.subr.bf16.mxu0 %v6705_v59 }
0x11b8   :  { %v4588_v35 = vadd.f32 %v4572_v54, %v4540_v34 }
0x11b9   :  { %v6308_v2 = vpop.eup %6307  ;;  %6313 = vrcp.f32 %v4512_v33 }
0x11ba   :  { %v4598_v37 = vpack.c.bf16 %v4588_v35, %v4587_v31  ;;  %v4557_v27 = vsub.f32 1.0, %v6308_v2  ;;  %v4541_v10 = vmul.f32 %v6308_v2, %v7888_v26  ;;  %5789 = vmatpush3.bf16.msra.mxu0 %v6052_v60  ;;  %6315 = vrcp.f32 %v4656_v43  ;;  %v6056_v35 = vld [vmem:[#allocation20 + $0xb0] sm:$0xff]   ;;  %v6057_v2 = vld [vmem:[#allocation20 + $0xb8] sm:$0xff]  }
0x11bb   :  { %v6310_v16 = vpop.eup %6309  ;;  %5790 = vmatprep.subr.bf16.mxu0 %v6705_v59  ;;  %6317 = vrcp.f32 %v4657_v25 }
0x11bc   :  { %4617 = vmatprep.subr.bf16.mxu1 %v4598_v37  ;;  %v4558_v6 = vsub.f32 1.0, %v6310_v16  ;;  %v4573_v36 = vmul.f32 %v4557_v27, %v7894_v30  ;;  %v4542_v15 = vmul.f32 %v6310_v16, %v7892_v58  ;;  %v5151_v27 = vld [vmem:[#allocation22] ss:$0 sm:$0xff] }
0x11bd   :  { %4618 = vmatpush1.bf16.msra.mxu1 %v8061_v1 }
0x11be   :  { %v4574_v52 = vmul.f32 %v4558_v6, %v7900_v57  ;;  %v4589_v11 = vadd.f32 %v4573_v36, %v4541_v10  ;;  %5791 = vmatpush3.bf16.msra.mxu0 %v6053_v8 }
0x11bf   :  { %5792 = vmatprep.subr.bf16.mxu0 %v6705_v59 }
0x11c0   :  { %v4590_v46 = vadd.f32 %v4574_v52, %v4542_v15 }
0x11c1   :  { %v6312_v22 = vpop.eup %6311 }
0x11c2   :  { %v4599_v18 = vpack.c.bf16 %v4590_v46, %v4589_v11  ;;  %v4559_v14 = vsub.f32 1.0, %v6312_v22  ;;  %v4543_v30 = vmul.f32 %v6312_v22, %v7908_v4  ;;  %v6038_v4 = vld [vmem:[#allocation20 + $0x50] sm:$0xff]   ;;  %5793 = vmatpush3.bf16.msra.mxu0 %v6054_v5 }
0x11c3   :  { %v6314_v3 = vpop.eup %6313  ;;  %5794 = vmatprep.subr.bf16.mxu0 %v6705_v59 }
0x11c4   :  { %4619 = vmatprep.subr.bf16.mxu1 %v4599_v18  ;;  %v4560_v24 = vsub.f32 1.0, %v6314_v3  ;;  %v4575_v51 = vmul.f32 %v4559_v14, %v7914_v61  ;;  %v4544_v26 = vmul.f32 %v6314_v3, %v7912_v23  ;;  %v6037_v61 = vld [vmem:[#allocation20 + $0x8] sm:$0xff]   ;;  %v6039_v23 = vld [vmem:[#allocation20 + $0x10] sm:$0xff]   ;;  %v6316_v21 = vpop.eup %6315  ;;  %v5168_v18 = vld [vmem:[#allocation22 + $0x1] ss:$0 sm:$0xff] }
0x11c5   :  { %4620 = vmatpush1.bf16.msra.mxu1 %v8062_v45  ;;  %v6318_v13 = vpop.eup %6317 }
0x11c6   :  { %v4576_v58 = vmul.f32 %v4560_v24, %v7920_v55  ;;  %v4591_v38 = vadd.f32 %v4575_v51, %v4543_v30  ;;  %v6040_v55 = vld [vmem:[#allocation20 + $0x58] sm:$0xff]   ;;  %5795 = vmatpush3.bf16.msra.mxu0 %v6055_v41 }
0x11c7   :  { %5796 = vmatprep.subr.bf16.mxu0 %v6705_v59 }
0x11c8   :  { %v4592_v57 = vadd.f32 %v4576_v58, %v4544_v26 }
0x11ca   :  { %v4600_v12 = vpack.c.bf16 %v4592_v57, %v4591_v38  ;;  %5797 = vmatpush3.bf16.msra.mxu0 %v6056_v35 }
0x11cb   :  { %5798 = vmatprep.subr.bf16.mxu0 %v6705_v59 }
0x11cc   :  { %4621 = vmatprep.subr.bf16.mxu1 %v4600_v12 }
0x11cd   :  { %4622 = vmatpush1.bf16.msra.mxu1 %v8063_v62 }
0x11ce   :  { %5369 = vmatprep.subr.bf16.mxu1 %v6034_v42  ;;  %5799 = vmatpush3.bf16.msra.mxu0 %v6057_v2 }
0x11d0   :  { %4640 = vmatmul.mubr.bf16.vlgmr.msra.gmra.mrb[208].mxu1 %v7926_v56  ;;  %v6046_v56 = vld [vmem:[#allocation20 + $0x70] sm:$0xff]  }
0x11d1   :  { %5370 = vmatpush3.bf16.msra.mxu1 %v6035_v17 }
0x11d2   :  { %5371 = vmatprep.subr.bf16.mxu1 %v6036_v49 }
0x11d5   :  { %5372 = vmatpush3.bf16.msra.mxu1 %v6037_v61 }
0x11d6   :  { %5373 = vmatprep.subr.bf16.mxu1 %v6038_v4 }
0x11d9   :  { %5374 = vmatpush3.bf16.msra.mxu1 %v6039_v23 }
0x11da   :  { %5375 = vmatprep.subr.bf16.mxu1 %v6040_v55 }
0x11dd   :  { %5376 = vmatpush3.bf16.msra.mxu1 %v6041_v9 }
0x11de   :  { %5377 = vmatprep.subr.bf16.mxu1 %v6042_v29 }
0x11e1   :  { %5378 = vmatpush3.bf16.msra.mxu1 %v6043_v63 }
0x11e2   :  { %5379 = vmatprep.subr.bf16.mxu1 %v6044_v47 }
0x11e5   :  { %5380 = vmatpush3.bf16.msra.mxu1 %v6045_v40 }
0x11e6   :  { %5381 = vmatprep.subr.bf16.mxu1 %v6046_v56 }
0x11e9   :  { %5382 = vmatpush3.bf16.msra.mxu1 %v6047_v53 }
0x11ea   :  { %5383 = vmatprep.subr.bf16.mxu1 %v6048_v0 }
0x11ed   :  { %5384 = vmatpush3.bf16.msra.mxu1 %v6049_v39 }
0x12a3   :  { %v4641_v32 = vpop.f32.mrb[208].mxu1 }
0x12a4   :  { %v4643_v28 = vpop.f32.mrb[209].mxu1 }
0x12a5   :  { %v4645_v48 = vpop.f32.mrb[210].mxu1  ;;  %v4662_v54 = vmul.f32 %v6316_v21, %v4643_v28 }
0x12a6   :  { %v4664_v50 = vpack.c.bf16 %v4645_v48, %v4641_v32  ;;  %v4647_v34 = vpop.f32.mrb[211].mxu1 }
0x12a7   :  { %v4663_v33 = vmul.f32 %v6318_v13, %v4647_v34 }
0x12a9   :  { %v4665_v31 = vpack.c.bf16 %v4663_v33, %v4662_v54 }
0x12ab   :  { %4848 = vmatprep.mubr.bf16.mxu1 %v4665_v31 }
0x12ac   :  { %4849 = vmatmul.mubr.bf16.vlgmr.msra.gmra.mrb[212].mxu1 %v4664_v50 }
0x137f   :  { %v5385_v37 = vpop.f32.mrb[212].mxu1 }
0x1380   :  { %v5386_v16 = vpop.f32.mrb[213].mxu1 }
0x1381   :  { %v5387_v6 = vadd.f32 %v5386_v16, %v5385_v37  ;;  %v5388_v36 = vpop.f32.mrb[214].mxu1 }
0x1382   :  { %v5389_v1 = vpop.f32.mrb[215].mxu1 }
0x1383   :  { %v4851_v10 = vadd.f32 %v5387_v6, %v5151_v27  ;;  %v5390_v15 = vadd.f32 %v5389_v1, %v5388_v36 }
0x1385   :  { %v4854_v52 = vadd.f32 %v5390_v15, %v5151_v27  ;;  %v4857_v11 = vmax.f32 %v4851_v10, 0.0 }
0x1387   :  { %v4858_v46 = vmax.f32 %v4854_v52, 0.0 }
0x1389   :  { %v4859_v22 = vpack.c.bf16 %v4858_v46, %v4857_v11 }
0x138b   :  { %5801 = vmatmul.mubr.bf16.vlgmr.msra.gmra.mrb[240].mxu0 %v4859_v22 }
0x145e   :  { %v4946_v14 = vpop.f32.mrb[240].mxu0 }
0x145f   :  { %v4947_v3 = vadd.f32 %v5168_v18, %v4946_v14  ;;  %v5802_v24 = vpop.f32.mrb[241].mxu0 }
0x1460   :  { %v4949_v51 = vpop.f32.mrb[242].mxu0 }
0x1461   :  { %4953 = vst [vmem:[#allocation23] sm:$0xff] %v4947_v3  ;;  %v4950_v45 = vadd.f32 %v5168_v18, %v4949_v51  ;;  %v5803_v30 = vpop.f32.mrb[243].mxu0 }
0x1463   :  { %4954 = vst [vmem:[#allocation23 + $0x8] sm:$0xff] %v4950_v45 }
0x1464   :  { %6658 = shalt.err (!%p6655_p10)
}
0x1465   :  { %s6659_s17 = scalar_lea.hbm %s7996_s13, 256 }
0x1466   :  { %p6660_p11 = scmp.ne.s32.totalorder %s7996_s13, %s6659_s17  ;;  %p6663_p12 = scmp.lt.u32.totalorder %s6659_s17, %s7996_s13 }
0x1468   :  { %p6665_p13 = pnand %p6663_p12, %p6660_p11 }
0x146a   :  { %6668 = shalt.err (!%p6665_p13)
}
0x146b   :  { %s6708_s15 = smov 128   ;;  %s6709_s9 = smov 8  }
0x146c   :  { %4966 = dma.vmem_to_hbm [thread:$0]  %s4961_s6, 256, %s7996_s13, [#allocation4], %s6708_s15, %s6708_s15, %s6709_s9  }
0x146d   :  { %6683 = dma.done.wait [#allocation4], 256  }
0x146e   :  { %6684 = vsyncadd [#allocation4], 4294967040 }
0x146f   :  { %4970 = vsyncpa [#allocation3], 1 }
0x1470   :  { %4971 = vsyncpa [#allocation6], 1 }
0x1471   :  { %4972 = vsyncpa [#allocation9], 1 }
0x1472   :  { %4973 = vsyncpa [#allocation12], 1 }
0x1473   :  { %4974 = vsyncpa [#allocation15], 1 }
0x1474   :  { %4975 = vsyncpa [#allocation18], 1 }
0x1475   :  { %4976 = vsyncpa [#allocation21], 1 }
0x1476   :  { %4977 = vsyncpa [#allocation4], 1 }

</bundles_post_ra>
